<compile_context>
chip_gen: v5e
topology: v5e:2x2
jax: 0.10.0
libtpu: 0.0.40
codegen_flags: <defaults>
</compile_context>

<pallas_src>
import functools

import jax
import jax.numpy as jnp
from jax import lax
from jax.experimental import pallas as pl
from jax.experimental.pallas import tpu as pltpu

LANES = 128


# ----------------------------------------------------------------------------
# Fused kernel: one grid step == B_blk images of the batch.
# ----------------------------------------------------------------------------
def _unet_inner_kernel(lhs_ref, wd_ref, wu_ref, out_ref, stats_ref, midpad_ref,
                       *, oh, ow, bblk):
    lanes = out_ref.shape[-1]
    m = oh * ow
    rows = bblk * m

    # ---- down path: single fused MXU dot over all 16 taps x C_in ----------
    # (LeakyReLU was applied once per input element in the wrapper.)
    mid = jnp.dot(lhs_ref[...].reshape(rows, lhs_ref.shape[-1]), wd_ref[...],
                  preferred_element_type=jnp.float32)
    mid = jnp.maximum(mid, 0.0)                                  # fused ReLU

    # zero-halo'd mid in a VMEM scratch.  Re-zero every step so the kernel is
    # correct when the "parallel" batch axis is sharded across TensorCores.
    midpad_ref[...] = jnp.zeros_like(midpad_ref)
    midpad_ref[:, 1:oh + 1, 1:ow + 1, :] = (
        mid.reshape(bblk, oh, ow, lanes).astype(midpad_ref.dtype))

    # ---- up path: phase-decomposed ConvTranspose2d, 1 fused dot per phase --
    # out(2*mh+ph, 2*mw+pw) = sum_{dh,dw} midpad[mh+ph+dh, mw+pw+dw]
    #                                     @ W[:, :, 3-ph-2dh, 3-pw-2dw]
    s_acc = jnp.zeros((1, lanes), jnp.float32)
    q_acc = jnp.zeros((1, lanes), jnp.float32)
    for ph in range(2):
        for pw in range(2):
            wins = [midpad_ref[:, ph + dh:ph + dh + oh,
                               pw + dw:pw + dw + ow, :]
                    for dh in range(2) for dw in range(2)]
            up_lhs = jnp.concatenate(wins, axis=-1).reshape(rows, 4 * lanes)
            accu = jnp.dot(up_lhs, wu_ref[ph * 2 + pw],
                           preferred_element_type=jnp.float32)
            out_ref[:, ph * 2 + pw, :, :] = accu.reshape(bblk, m, lanes)
            s_acc = s_acc + jnp.sum(accu, axis=0, keepdims=True)
            q_acc = q_acc + jnp.sum(accu * accu, axis=0, keepdims=True)

    # per-step BatchNorm partial statistics (finalized in the wrapper)
    stats_ref[:, 0:1, :] = s_acc.reshape(1, 1, lanes)
    stats_ref[:, 1:2, :] = q_acc.reshape(1, 1, lanes)


# ----------------------------------------------------------------------------
# UnetBlock forward (innermost, non-outermost):  cat([x, model(x)], dim=1)
# ----------------------------------------------------------------------------
def unet_block_innermost(x, w_down, w_up, gamma, beta):
    N, C, H, W = x.shape
    ni = w_down.shape[0]                 # Conv2d weight:          [ni, C, 4, 4]
    nf = w_up.shape[1]                   # ConvTranspose2d weight: [ni, nf, 4, 4]
    assert H % 2 == 0 and W % 2 == 0
    assert ni <= LANES and nf <= LANES   # TODO(synk): channel-tile for >128
    OH, OW = H // 2, W // 2
    m = OH * OW

    # images per grid step: largest divisor of N up to 8 (raises M per dot,
    # amortizes per-step overhead).
    bblk = max(d for d in range(1, min(N, 8) + 1) if N % d == 0)
    nblk = N // bblk

    # ---- host-side layout plumbing ------------------------------------------
    # LeakyReLU(0.2) once per element, then zero-pad + im2col the 4x4/stride-2
    # patches (C is tiny, so the 16x duplication is a few KB and buys one
    # lane-dense fused-K matmul in the kernel).
    xl = jnp.where(x > 0, x, 0.2 * x).astype(jnp.float32)
    xp = jnp.pad(xl.transpose(0, 2, 3, 1), ((0, 0), (1, 1), (1, 1), (0, 0)))
    taps = [xp[:, kh:kh + H:2, kw:kw + W:2, :]
            for kh in range(4) for kw in range(4)]
    Kd = 16 * C
    Kd_pad = ((Kd + LANES - 1) // LANES) * LANES
    lhs = jnp.stack(taps, axis=3).reshape(N, m, Kd)
    lhs = jnp.pad(lhs, ((0, 0), (0, 0), (0, Kd_pad - Kd))).astype(jnp.bfloat16)

    # down-conv weight: rows ordered (kh, kw, Cin), padded to [Kd_pad, 128]
    wd_t = w_down.transpose(2, 3, 1, 0).reshape(Kd, ni)
    wd_t = jnp.pad(wd_t, ((0, Kd_pad - Kd), (0, LANES - ni))).astype(jnp.bfloat16)

    # up-conv weight, phase-decomposed: per output phase (ph, pw) one
    # [(dh, dw, mid-chan), nf] matrix, zero-padded to [4*128, 128]
    wu_phases = []
    for ph in range(2):
        for pw in range(2):
            blocks = []
            for dh in range(2):
                for dw in range(2):
                    kh, kw = 3 - ph - 2 * dh, 3 - pw - 2 * dw
                    blocks.append(jnp.pad(w_up[:, :, kh, kw],
                                          ((0, LANES - ni), (0, LANES - nf))))
            wu_phases.append(jnp.concatenate(blocks, axis=0))
    wu_t = jnp.stack(wu_phases, axis=0).astype(jnp.bfloat16)    # [4, 512, 128]

    kernel = functools.partial(_unet_inner_kernel, oh=OH, ow=OW, bblk=bblk)

    # VMEM budget (double-buffered blocks + scratch + temp margin), clamped to
    # a v7x-friendly ceiling instead of a hardcoded constant.
    blk_bytes = (bblk * m * Kd_pad * 2 + Kd_pad * LANES * 2
                 + 4 * 4 * LANES * LANES * 2 + bblk * 4 * m * LANES * 4
                 + 2 * LANES * 4)
    scratch_bytes = bblk * (OH + 2) * (OW + 2) * LANES * 2
    vmem_limit = int(min(max(2 * blk_bytes + scratch_bytes + (8 << 20),
                             32 << 20), 64 << 20))

    out_slab, stats = pl.pallas_call(
        kernel,
        out_shape=(
            jax.ShapeDtypeStruct((N, 4, m, LANES), jnp.float32),
            jax.ShapeDtypeStruct((nblk, 2, LANES), jnp.float32),
        ),
        grid=(nblk,),
        in_specs=[
            pl.BlockSpec((bblk, m, Kd_pad), lambda n: (n, 0, 0)),
            pl.BlockSpec((Kd_pad, LANES), lambda n: (0, 0)),
            pl.BlockSpec((4, 4 * LANES, LANES), lambda n: (0, 0, 0)),
        ],
        out_specs=(
            pl.BlockSpec((bblk, 4, m, LANES), lambda n: (n, 0, 0, 0)),
            pl.BlockSpec((1, 2, LANES), lambda n: (n, 0, 0)),
        ),
        scratch_shapes=[
            pltpu.VMEM((bblk, OH + 2, OW + 2, LANES), jnp.bfloat16),
        ],
        compiler_params=pltpu.CompilerParams(
            dimension_semantics=("parallel",),
            vmem_limit_bytes=vmem_limit),
    )(lhs, wd_t, wu_t)

    # ---- wrapper epilogue: finalize training-mode BatchNorm -----------------
    count = float(N * H * W)
    tot = jnp.sum(stats, axis=0)                                # (2, LANES)
    mean = tot[0, :nf] / count
    var = jnp.maximum(tot[1, :nf] / count - mean * mean, 0.0)   # biased, clamped
    scale = gamma.astype(jnp.float32) * lax.rsqrt(var + 1e-5)
    shift = beta.astype(jnp.float32) - mean * scale

    # scale/shift folded into the un-phase transpose (XLA fuses these)
    y = out_slab[:, :, :, :nf] * scale + shift                  # (N, 4, m, nf)
    y = y.reshape(N, 2, 2, OH, OW, nf)                          # (n,ph,pw,mh,mw,c)
    y = y.transpose(0, 5, 3, 1, 4, 2).reshape(N, nf, H, W)
    return jnp.concatenate([x, y], axis=1)


# ----------------------------------------------------------------------------
# Pure-JAX reference (for self-check)
# ----------------------------------------------------------------------------
def reference(x, w_down, w_up, gamma, beta):
    xl = jnp.where(x > 0, x, 0.2 * x)
    mid = lax.conv_general_dilated(
        xl, w_down, (2, 2), ((1, 1), (1, 1)),
        dimension_numbers=("NCHW", "OIHW", "NCHW"))
    midr = jnp.maximum(mid, 0.0)
    w_eff = jnp.flip(w_up, axis=(2, 3)).transpose(1, 0, 2, 3)
    up = lax.conv_general_dilated(
        midr, w_eff, (1, 1), ((2, 2), (2, 2)), lhs_dilation=(2, 2),
        dimension_numbers=("NCHW", "OIHW", "NCHW"))
    mean = jnp.mean(up, axis=(0, 2, 3), keepdims=True)
    var = jnp.mean(jnp.square(up - mean), axis=(0, 2, 3), keepdims=True)
    bn = ((up - mean) * lax.rsqrt(var + 1e-5)
          * gamma.reshape(1, -1, 1, 1) + beta.reshape(1, -1, 1, 1))
    return jnp.concatenate([x, bn], axis=1)


if __name__ == "__main__":
    # UnetBlock(nf=4, ni=8, innermost=True) -> input_c = nf = 4
    N, nf, ni, H, W = 2, 4, 8, 16, 16
    key = jax.random.PRNGKey(0)
    kx, kd, ku = jax.random.split(key, 3)

    x = jax.random.normal(kx, (N, nf, H, W), dtype=jnp.float32)
    w_down = 0.05 * jax.random.normal(kd, (ni, nf, 4, 4), dtype=jnp.float32)
    w_up = 0.05 * jax.random.normal(ku, (ni, nf, 4, 4), dtype=jnp.float32)
    gamma = jnp.ones((nf,), dtype=jnp.float32)   # BatchNorm2d default init
    beta = jnp.zeros((nf,), dtype=jnp.float32)

    out = jax.jit(unet_block_innermost)(x, w_down, w_up, gamma, beta)
    out = jax.block_until_ready(out)

    ref = reference(x, w_down, w_up, gamma, beta)
    assert out.shape == (N, 2 * nf, H, W), out.shape
    # bf16 matmul operands vs f32 reference -> slightly looser tolerance
    max_err = float(jnp.max(jnp.abs(out - ref)))
    assert jnp.allclose(out, ref, atol=3e-2, rtol=3e-2), max_err

    print("KERNEL_OK")
</pallas_src>

<mosaic_0001>
module attributes {stable_mosaic.version = 11 : i64} {
  func.func @_unet_inner_kernel(%arg0: i32, %arg1: memref<2x64x128xbf16, #tpu.memory_space<vmem>>, %arg2: memref<128x128xbf16, #tpu.memory_space<vmem>>, %arg3: memref<4x512x128xbf16, #tpu.memory_space<vmem>>, %arg4: memref<2x4x64x128xf32, #tpu.memory_space<vmem>>, %arg5: memref<1x2x128xf32, #tpu.memory_space<vmem>>, %arg6: memref<2x10x10x128xbf16, #tpu.memory_space<vmem>>) attributes {dimension_semantics = [#tpu.dimension_semantics<parallel>], iteration_bounds = array<i64: 1>, scalar_prefetch = 0 : i64, scratch_operands = 1 : i64, tpu.core_type = #tpu.core_type<tc>, window_params = [{transform_indices = @transform_0, window_bounds = array<i64: 2, 64, 128>}, {pipeline_mode = #tpu.pipeline_mode<synchronous>, transform_indices = @transform_1, window_bounds = array<i64: 128, 128>}, {pipeline_mode = #tpu.pipeline_mode<synchronous>, transform_indices = @transform_2, window_bounds = array<i64: 4, 512, 128>}, {transform_indices = @transform_3, window_bounds = array<i64: 2, 4, 64, 128>}, {transform_indices = @transform_4, window_bounds = array<i64: 1, 2, 128>}]} {
    %c0 = arith.constant 0 : index
    %c0_0 = arith.constant 0 : index
    %c0_1 = arith.constant 0 : index
    %0 = vector.load %arg1[%c0, %c0_0, %c0_1] : memref<2x64x128xbf16, #tpu.memory_space<vmem>>, vector<2x64x128xbf16>
    %1 = vector.shape_cast %0 : vector<2x64x128xbf16> to vector<128x128xbf16>
    %c0_2 = arith.constant 0 : index
    %c0_3 = arith.constant 0 : index
    %2 = vector.load %arg2[%c0_2, %c0_3] : memref<128x128xbf16, #tpu.memory_space<vmem>>, vector<128x128xbf16>
    %cst = arith.constant dense<0.000000e+00> : vector<128x128xf32>
    %3 = tpu.matmul %1, %2, %cst {dimension_numbers = #tpu.dot_dimension_numbers<[1], [0], [0], [1], [0, 0, 1, 1], [], []>} : vector<128x128xbf16>, vector<128x128xbf16>, vector<128x128xf32> -> vector<128x128xf32>
    %cst_4 = arith.constant 0.000000e+00 : f32
    %4 = vector.broadcast %cst_4 : f32 to vector<128x128xf32>
    %5 = arith.maximumf %3, %4 : vector<128x128xf32>
    %cst_5 = arith.constant 0.000000e+00 : bf16
    %6 = vector.broadcast %cst_5 : bf16 to vector<2x10x10x128xbf16>
    %c0_6 = arith.constant 0 : index
    %c0_7 = arith.constant 0 : index
    %c0_8 = arith.constant 0 : index
    %c0_9 = arith.constant 0 : index
    %7 = vector.load %arg6[%c0_6, %c0_7, %c0_8, %c0_9] : memref<2x10x10x128xbf16, #tpu.memory_space<vmem>>, vector<2x10x10x128xbf16>
    tpu.vector_store %arg6[%c0_6, %c0_7, %c0_8, %c0_9], %6 {strides = array<i32>} : memref<2x10x10x128xbf16, #tpu.memory_space<vmem>>, vector<2x10x10x128xbf16>,
    %8 = vector.shape_cast %5 : vector<128x128xf32> to vector<2x8x8x128xf32>
    %9 = arith.truncf %8 : vector<2x8x8x128xf32> to vector<2x8x8x128xbf16>
    %c0_10 = arith.constant 0 : index
    %c1 = arith.constant 1 : index
    %c1_11 = arith.constant 1 : index
    %c0_12 = arith.constant 0 : index
    %10 = vector.load %arg6[%c0_10, %c1, %c1_11, %c0_12] : memref<2x10x10x128xbf16, #tpu.memory_space<vmem>>, vector<2x8x8x128xbf16>
    tpu.vector_store %arg6[%c0_10, %c1, %c1_11, %c0_12], %9 {strides = array<i32>} : memref<2x10x10x128xbf16, #tpu.memory_space<vmem>>, vector<2x8x8x128xbf16>,
    %cst_13 = arith.constant 0.000000e+00 : f32
    %11 = vector.broadcast %cst_13 : f32 to vector<1x128xf32>
    %cst_14 = arith.constant 0.000000e+00 : f32
    %12 = vector.broadcast %cst_14 : f32 to vector<1x128xf32>
    %c0_15 = arith.constant 0 : index
    %c0_16 = arith.constant 0 : index
    %c0_17 = arith.constant 0 : index
    %c0_18 = arith.constant 0 : index
    %13 = vector.load %arg6[%c0_15, %c0_16, %c0_17, %c0_18] : memref<2x10x10x128xbf16, #tpu.memory_space<vmem>>, vector<2x8x8x128xbf16>
    %c0_19 = arith.constant 0 : index
    %c0_20 = arith.constant 0 : index
    %c1_21 = arith.constant 1 : index
    %c0_22 = arith.constant 0 : index
    %14 = vector.load %arg6[%c0_19, %c0_20, %c1_21, %c0_22] : memref<2x10x10x128xbf16, #tpu.memory_space<vmem>>, vector<2x8x8x128xbf16>
    %c0_23 = arith.constant 0 : index
    %c1_24 = arith.constant 1 : index
    %c0_25 = arith.constant 0 : index
    %c0_26 = arith.constant 0 : index
    %15 = vector.load %arg6[%c0_23, %c1_24, %c0_25, %c0_26] : memref<2x10x10x128xbf16, #tpu.memory_space<vmem>>, vector<2x8x8x128xbf16>
    %c0_27 = arith.constant 0 : index
    %c1_28 = arith.constant 1 : index
    %c1_29 = arith.constant 1 : index
    %c0_30 = arith.constant 0 : index
    %16 = vector.load %arg6[%c0_27, %c1_28, %c1_29, %c0_30] : memref<2x10x10x128xbf16, #tpu.memory_space<vmem>>, vector<2x8x8x128xbf16>
    %17 = tpu.concatenate %13, %14, %15, %16 in 3 : vector<2x8x8x128xbf16>, vector<2x8x8x128xbf16>, vector<2x8x8x128xbf16>, vector<2x8x8x128xbf16> -> vector<2x8x8x512xbf16>
    %18 = vector.shape_cast %17 : vector<2x8x8x512xbf16> to vector<128x512xbf16>
    %c0_31 = arith.constant 0 : index
    %c0_32 = arith.constant 0 : index
    %c0_33 = arith.constant 0 : index
    %19 = vector.load %arg3[%c0_31, %c0_32, %c0_33] : memref<4x512x128xbf16, #tpu.memory_space<vmem>>, vector<1x512x128xbf16>
    %20 = vector.shape_cast %19 : vector<1x512x128xbf16> to vector<512x128xbf16>
    %cst_34 = arith.constant dense<0.000000e+00> : vector<128x128xf32>
    %21 = tpu.matmul %18, %20, %cst_34 {dimension_numbers = #tpu.dot_dimension_numbers<[1], [0], [0], [1], [0, 0, 1, 1], [], []>} : vector<128x512xbf16>, vector<512x128xbf16>, vector<128x128xf32> -> vector<128x128xf32>
    %22 = vector.shape_cast %21 : vector<128x128xf32> to vector<2x64x128xf32>
    %c0_35 = arith.constant 0 : index
    %c0_36 = arith.constant 0 : index
    %c0_37 = arith.constant 0 : index
    %c0_38 = arith.constant 0 : index
    %23 = vector.load %arg4[%c0_35, %c0_36, %c0_37, %c0_38] : memref<2x4x64x128xf32, #tpu.memory_space<vmem>>, vector<2x1x64x128xf32>
    %24 = vector.shape_cast %23 : vector<2x1x64x128xf32> to vector<2x64x128xf32>
    %25 = vector.shape_cast %22 : vector<2x64x128xf32> to vector<2x1x64x128xf32>
    tpu.vector_store %arg4[%c0_35, %c0_36, %c0_37, %c0_38], %25 {strides = array<i32>} : memref<2x4x64x128xf32, #tpu.memory_space<vmem>>, vector<2x1x64x128xf32>,
    %cst_39 = arith.constant dense<0.000000e+00> : vector<128xf32>
    %26 = vector.multi_reduction <add>, %21, %cst_39 [0] : vector<128x128xf32> to vector<128xf32>
    %27 = vector.shape_cast %26 : vector<128xf32> to vector<1x128xf32>
    %28 = arith.addf %11, %27 : vector<1x128xf32>
    %29 = arith.mulf %21, %21 : vector<128x128xf32>
    %cst_40 = arith.constant dense<0.000000e+00> : vector<128xf32>
    %30 = vector.multi_reduction <add>, %29, %cst_40 [0] : vector<128x128xf32> to vector<128xf32>
    %31 = vector.shape_cast %30 : vector<128xf32> to vector<1x128xf32>
    %32 = arith.addf %12, %31 : vector<1x128xf32>
    %c0_41 = arith.constant 0 : index
    %c0_42 = arith.constant 0 : index
    %c1_43 = arith.constant 1 : index
    %c0_44 = arith.constant 0 : index
    %33 = vector.load %arg6[%c0_41, %c0_42, %c1_43, %c0_44] : memref<2x10x10x128xbf16, #tpu.memory_space<vmem>>, vector<2x8x8x128xbf16>
    %c0_45 = arith.constant 0 : index
    %c0_46 = arith.constant 0 : index
    %c2 = arith.constant 2 : index
    %c0_47 = arith.constant 0 : index
    %34 = vector.load %arg6[%c0_45, %c0_46, %c2, %c0_47] : memref<2x10x10x128xbf16, #tpu.memory_space<vmem>>, vector<2x8x8x128xbf16>
    %c0_48 = arith.constant 0 : index
    %c1_49 = arith.constant 1 : index
    %c1_50 = arith.constant 1 : index
    %c0_51 = arith.constant 0 : index
    %35 = vector.load %arg6[%c0_48, %c1_49, %c1_50, %c0_51] : memref<2x10x10x128xbf16, #tpu.memory_space<vmem>>, vector<2x8x8x128xbf16>
    %c0_52 = arith.constant 0 : index
    %c1_53 = arith.constant 1 : index
    %c2_54 = arith.constant 2 : index
    %c0_55 = arith.constant 0 : index
    %36 = vector.load %arg6[%c0_52, %c1_53, %c2_54, %c0_55] : memref<2x10x10x128xbf16, #tpu.memory_space<vmem>>, vector<2x8x8x128xbf16>
    %37 = tpu.concatenate %33, %34, %35, %36 in 3 : vector<2x8x8x128xbf16>, vector<2x8x8x128xbf16>, vector<2x8x8x128xbf16>, vector<2x8x8x128xbf16> -> vector<2x8x8x512xbf16>
    %38 = vector.shape_cast %37 : vector<2x8x8x512xbf16> to vector<128x512xbf16>
    %c1_56 = arith.constant 1 : index
    %c0_57 = arith.constant 0 : index
    %c0_58 = arith.constant 0 : index
    %39 = vector.load %arg3[%c1_56, %c0_57, %c0_58] : memref<4x512x128xbf16, #tpu.memory_space<vmem>>, vector<1x512x128xbf16>
    %40 = vector.shape_cast %39 : vector<1x512x128xbf16> to vector<512x128xbf16>
    %cst_59 = arith.constant dense<0.000000e+00> : vector<128x128xf32>
    %41 = tpu.matmul %38, %40, %cst_59 {dimension_numbers = #tpu.dot_dimension_numbers<[1], [0], [0], [1], [0, 0, 1, 1], [], []>} : vector<128x512xbf16>, vector<512x128xbf16>, vector<128x128xf32> -> vector<128x128xf32>
    %42 = vector.shape_cast %41 : vector<128x128xf32> to vector<2x64x128xf32>
    %c0_60 = arith.constant 0 : index
    %c1_61 = arith.constant 1 : index
    %c0_62 = arith.constant 0 : index
    %c0_63 = arith.constant 0 : index
    %43 = vector.load %arg4[%c0_60, %c1_61, %c0_62, %c0_63] : memref<2x4x64x128xf32, #tpu.memory_space<vmem>>, vector<2x1x64x128xf32>
    %44 = vector.shape_cast %43 : vector<2x1x64x128xf32> to vector<2x64x128xf32>
    %45 = vector.shape_cast %42 : vector<2x64x128xf32> to vector<2x1x64x128xf32>
    tpu.vector_store %arg4[%c0_60, %c1_61, %c0_62, %c0_63], %45 {strides = array<i32>} : memref<2x4x64x128xf32, #tpu.memory_space<vmem>>, vector<2x1x64x128xf32>,
    %cst_64 = arith.constant dense<0.000000e+00> : vector<128xf32>
    %46 = vector.multi_reduction <add>, %41, %cst_64 [0] : vector<128x128xf32> to vector<128xf32>
    %47 = vector.shape_cast %46 : vector<128xf32> to vector<1x128xf32>
    %48 = arith.addf %28, %47 : vector<1x128xf32>
    %49 = arith.mulf %41, %41 : vector<128x128xf32>
    %cst_65 = arith.constant dense<0.000000e+00> : vector<128xf32>
    %50 = vector.multi_reduction <add>, %49, %cst_65 [0] : vector<128x128xf32> to vector<128xf32>
    %51 = vector.shape_cast %50 : vector<128xf32> to vector<1x128xf32>
    %52 = arith.addf %32, %51 : vector<1x128xf32>
    %c0_66 = arith.constant 0 : index
    %c1_67 = arith.constant 1 : index
    %c0_68 = arith.constant 0 : index
    %c0_69 = arith.constant 0 : index
    %53 = vector.load %arg6[%c0_66, %c1_67, %c0_68, %c0_69] : memref<2x10x10x128xbf16, #tpu.memory_space<vmem>>, vector<2x8x8x128xbf16>
    %c0_70 = arith.constant 0 : index
    %c1_71 = arith.constant 1 : index
    %c1_72 = arith.constant 1 : index
    %c0_73 = arith.constant 0 : index
    %54 = vector.load %arg6[%c0_70, %c1_71, %c1_72, %c0_73] : memref<2x10x10x128xbf16, #tpu.memory_space<vmem>>, vector<2x8x8x128xbf16>
    %c0_74 = arith.constant 0 : index
    %c2_75 = arith.constant 2 : index
    %c0_76 = arith.constant 0 : index
    %c0_77 = arith.constant 0 : index
    %55 = vector.load %arg6[%c0_74, %c2_75, %c0_76, %c0_77] : memref<2x10x10x128xbf16, #tpu.memory_space<vmem>>, vector<2x8x8x128xbf16>
    %c0_78 = arith.constant 0 : index
    %c2_79 = arith.constant 2 : index
    %c1_80 = arith.constant 1 : index
    %c0_81 = arith.constant 0 : index
    %56 = vector.load %arg6[%c0_78, %c2_79, %c1_80, %c0_81] : memref<2x10x10x128xbf16, #tpu.memory_space<vmem>>, vector<2x8x8x128xbf16>
    %57 = tpu.concatenate %53, %54, %55, %56 in 3 : vector<2x8x8x128xbf16>, vector<2x8x8x128xbf16>, vector<2x8x8x128xbf16>, vector<2x8x8x128xbf16> -> vector<2x8x8x512xbf16>
    %58 = vector.shape_cast %57 : vector<2x8x8x512xbf16> to vector<128x512xbf16>
    %c2_82 = arith.constant 2 : index
    %c0_83 = arith.constant 0 : index
    %c0_84 = arith.constant 0 : index
    %59 = vector.load %arg3[%c2_82, %c0_83, %c0_84] : memref<4x512x128xbf16, #tpu.memory_space<vmem>>, vector<1x512x128xbf16>
    %60 = vector.shape_cast %59 : vector<1x512x128xbf16> to vector<512x128xbf16>
    %cst_85 = arith.constant dense<0.000000e+00> : vector<128x128xf32>
    %61 = tpu.matmul %58, %60, %cst_85 {dimension_numbers = #tpu.dot_dimension_numbers<[1], [0], [0], [1], [0, 0, 1, 1], [], []>} : vector<128x512xbf16>, vector<512x128xbf16>, vector<128x128xf32> -> vector<128x128xf32>
    %62 = vector.shape_cast %61 : vector<128x128xf32> to vector<2x64x128xf32>
    %c0_86 = arith.constant 0 : index
    %c2_87 = arith.constant 2 : index
    %c0_88 = arith.constant 0 : index
    %c0_89 = arith.constant 0 : index
    %63 = vector.load %arg4[%c0_86, %c2_87, %c0_88, %c0_89] : memref<2x4x64x128xf32, #tpu.memory_space<vmem>>, vector<2x1x64x128xf32>
    %64 = vector.shape_cast %63 : vector<2x1x64x128xf32> to vector<2x64x128xf32>
    %65 = vector.shape_cast %62 : vector<2x64x128xf32> to vector<2x1x64x128xf32>
    tpu.vector_store %arg4[%c0_86, %c2_87, %c0_88, %c0_89], %65 {strides = array<i32>} : memref<2x4x64x128xf32, #tpu.memory_space<vmem>>, vector<2x1x64x128xf32>,
    %cst_90 = arith.constant dense<0.000000e+00> : vector<128xf32>
    %66 = vector.multi_reduction <add>, %61, %cst_90 [0] : vector<128x128xf32> to vector<128xf32>
    %67 = vector.shape_cast %66 : vector<128xf32> to vector<1x128xf32>
    %68 = arith.addf %48, %67 : vector<1x128xf32>
    %69 = arith.mulf %61, %61 : vector<128x128xf32>
    %cst_91 = arith.constant dense<0.000000e+00> : vector<128xf32>
    %70 = vector.multi_reduction <add>, %69, %cst_91 [0] : vector<128x128xf32> to vector<128xf32>
    %71 = vector.shape_cast %70 : vector<128xf32> to vector<1x128xf32>
    %72 = arith.addf %52, %71 : vector<1x128xf32>
    %c0_92 = arith.constant 0 : index
    %c1_93 = arith.constant 1 : index
    %c1_94 = arith.constant 1 : index
    %c0_95 = arith.constant 0 : index
    %73 = vector.load %arg6[%c0_92, %c1_93, %c1_94, %c0_95] : memref<2x10x10x128xbf16, #tpu.memory_space<vmem>>, vector<2x8x8x128xbf16>
    %c0_96 = arith.constant 0 : index
    %c1_97 = arith.constant 1 : index
    %c2_98 = arith.constant 2 : index
    %c0_99 = arith.constant 0 : index
    %74 = vector.load %arg6[%c0_96, %c1_97, %c2_98, %c0_99] : memref<2x10x10x128xbf16, #tpu.memory_space<vmem>>, vector<2x8x8x128xbf16>
    %c0_100 = arith.constant 0 : index
    %c2_101 = arith.constant 2 : index
    %c1_102 = arith.constant 1 : index
    %c0_103 = arith.constant 0 : index
    %75 = vector.load %arg6[%c0_100, %c2_101, %c1_102, %c0_103] : memref<2x10x10x128xbf16, #tpu.memory_space<vmem>>, vector<2x8x8x128xbf16>
    %c0_104 = arith.constant 0 : index
    %c2_105 = arith.constant 2 : index
    %c2_106 = arith.constant 2 : index
    %c0_107 = arith.constant 0 : index
    %76 = vector.load %arg6[%c0_104, %c2_105, %c2_106, %c0_107] : memref<2x10x10x128xbf16, #tpu.memory_space<vmem>>, vector<2x8x8x128xbf16>
    %77 = tpu.concatenate %73, %74, %75, %76 in 3 : vector<2x8x8x128xbf16>, vector<2x8x8x128xbf16>, vector<2x8x8x128xbf16>, vector<2x8x8x128xbf16> -> vector<2x8x8x512xbf16>
    %78 = vector.shape_cast %77 : vector<2x8x8x512xbf16> to vector<128x512xbf16>
    %c3 = arith.constant 3 : index
    %c0_108 = arith.constant 0 : index
    %c0_109 = arith.constant 0 : index
    %79 = vector.load %arg3[%c3, %c0_108, %c0_109] : memref<4x512x128xbf16, #tpu.memory_space<vmem>>, vector<1x512x128xbf16>
    %80 = vector.shape_cast %79 : vector<1x512x128xbf16> to vector<512x128xbf16>
    %cst_110 = arith.constant dense<0.000000e+00> : vector<128x128xf32>
    %81 = tpu.matmul %78, %80, %cst_110 {dimension_numbers = #tpu.dot_dimension_numbers<[1], [0], [0], [1], [0, 0, 1, 1], [], []>} : vector<128x512xbf16>, vector<512x128xbf16>, vector<128x128xf32> -> vector<128x128xf32>
    %82 = vector.shape_cast %81 : vector<128x128xf32> to vector<2x64x128xf32>
    %c0_111 = arith.constant 0 : index
    %c3_112 = arith.constant 3 : index
    %c0_113 = arith.constant 0 : index
    %c0_114 = arith.constant 0 : index
    %83 = vector.load %arg4[%c0_111, %c3_112, %c0_113, %c0_114] : memref<2x4x64x128xf32, #tpu.memory_space<vmem>>, vector<2x1x64x128xf32>
    %84 = vector.shape_cast %83 : vector<2x1x64x128xf32> to vector<2x64x128xf32>
    %85 = vector.shape_cast %82 : vector<2x64x128xf32> to vector<2x1x64x128xf32>
    tpu.vector_store %arg4[%c0_111, %c3_112, %c0_113, %c0_114], %85 {strides = array<i32>} : memref<2x4x64x128xf32, #tpu.memory_space<vmem>>, vector<2x1x64x128xf32>,
    %cst_115 = arith.constant dense<0.000000e+00> : vector<128xf32>
    %86 = vector.multi_reduction <add>, %81, %cst_115 [0] : vector<128x128xf32> to vector<128xf32>
    %87 = vector.shape_cast %86 : vector<128xf32> to vector<1x128xf32>
    %88 = arith.addf %68, %87 : vector<1x128xf32>
    %89 = arith.mulf %81, %81 : vector<128x128xf32>
    %cst_116 = arith.constant dense<0.000000e+00> : vector<128xf32>
    %90 = vector.multi_reduction <add>, %89, %cst_116 [0] : vector<128x128xf32> to vector<128xf32>
    %91 = vector.shape_cast %90 : vector<128xf32> to vector<1x128xf32>
    %92 = arith.addf %72, %91 : vector<1x128xf32>
    %93 = vector.shape_cast %88 : vector<1x128xf32> to vector<1x1x128xf32>
    %c0_117 = arith.constant 0 : index
    %c0_118 = arith.constant 0 : index
    %c0_119 = arith.constant 0 : index
    %94 = vector.load %arg5[%c0_117, %c0_118, %c0_119] : memref<1x2x128xf32, #tpu.memory_space<vmem>>, vector<1x1x128xf32>
    tpu.vector_store %arg5[%c0_117, %c0_118, %c0_119], %93 {strides = array<i32>} : memref<1x2x128xf32, #tpu.memory_space<vmem>>, vector<1x1x128xf32>,
    %95 = vector.shape_cast %92 : vector<1x128xf32> to vector<1x1x128xf32>
    %c0_120 = arith.constant 0 : index
    %c1_121 = arith.constant 1 : index
    %c0_122 = arith.constant 0 : index
    %96 = vector.load %arg5[%c0_120, %c1_121, %c0_122] : memref<1x2x128xf32, #tpu.memory_space<vmem>>, vector<1x1x128xf32>
    tpu.vector_store %arg5[%c0_120, %c1_121, %c0_122], %95 {strides = array<i32>} : memref<1x2x128xf32, #tpu.memory_space<vmem>>, vector<1x1x128xf32>,
    return
  }
  func.func @transform_0(%arg0: i32) -> (i32, i32, i32) {
    %c0_i32 = arith.constant 0 : i32
    %c0_i32_0 = arith.constant 0 : i32
    %c0_i32_1 = arith.constant 0 : i32
    return %arg0, %c0_i32, %c0_i32_0 : i32, i32, i32
  }
  func.func @transform_1(%arg0: i32) -> (i32, i32) {
    %c0_i32 = arith.constant 0 : i32
    %c0_i32_0 = arith.constant 0 : i32
    %c0_i32_1 = arith.constant 0 : i32
    return %c0_i32, %c0_i32_0 : i32, i32
  }
  func.func @transform_2(%arg0: i32) -> (i32, i32, i32) {
    %c0_i32 = arith.constant 0 : i32
    %c0_i32_0 = arith.constant 0 : i32
    %c0_i32_1 = arith.constant 0 : i32
    %c0_i32_2 = arith.constant 0 : i32
    return %c0_i32, %c0_i32_0, %c0_i32_1 : i32, i32, i32
  }
  func.func @transform_3(%arg0: i32) -> (i32, i32, i32, i32) {
    %c0_i32 = arith.constant 0 : i32
    %c0_i32_0 = arith.constant 0 : i32
    %c0_i32_1 = arith.constant 0 : i32
    %c0_i32_2 = arith.constant 0 : i32
    return %arg0, %c0_i32, %c0_i32_0, %c0_i32_1 : i32, i32, i32, i32
  }
  func.func @transform_4(%arg0: i32) -> (i32, i32, i32) {
    %c0_i32 = arith.constant 0 : i32
    %c0_i32_0 = arith.constant 0 : i32
    %c0_i32_1 = arith.constant 0 : i32
    return %arg0, %c0_i32, %c0_i32_0 : i32, i32, i32
  }
}

</mosaic_0001>

<bundles_post_ra>
// kernel: unet_block_innermost.1
= control target key start
LH: loop header
LB: loop body
LE: loop exit
PB: predicated region body
PF: predicated region fallthrough
CT: control target
= control target key end

     0   :  { %v7230_v20 = vmov 0   ;;  %vm428_vm0 = vsmask.f32 7938  ;;  %vm427_vm1 = vcmask 1043456   ;;  %vm434_vm2 = vsmask.f32 256  ;;  %s9478_s1 = inlined_call_operand.vmem [shape: bf16[128,128], index: 1, kind: input, shape index: {}]   ;;  %s9479_s2 = inlined_call_operand.vmem [shape: bf16[4,512,128], index: 2, kind: input, shape index: {}]   ;;  %s9480_s0 = inlined_call_operand.vmem [shape: bf16[2,64,128], index: 0, kind: input, shape index: {}]   ;;  %s9481_s3 = inlined_call_operand.vmem [shape: f32[2,4,64,128], index: 3, kind: output, shape index: {0}]   ;;  %s9482_s4 = inlined_call_operand.vmem [shape: f32[1,2,128], index: 4, kind: output, shape index: {1}]  }
   0x1   :  { %v7076_v0 = vld [vmem:[%s9478_s1 + $0x38] sm:$0xff]  ;;  %v7075_v1 = vld [vmem:[%s9478_s1 + $0x30] sm:$0xff]  ;;  %v7074_v2 = vld [vmem:[%s9478_s1 + $0x28] sm:$0xff]  ;;  %212 = vst [vmem:[#allocation2 + $0x8] sm:$0xf] %v7230_v20  ;;  %vm433_vm3 = vcmask 1040384  }
   0x2   :  { %145 = vmatpush.bf16.msra.mxu0 %v7076_v0  ;;  %7205 = vmatpush.bf16.msra.mxu1 %v7076_v0  ;;  %v7073_v3 = vld [vmem:[%s9478_s1 + $0x20] sm:$0xff]  ;;  %v7072_v4 = vld [vmem:[%s9478_s1 + $0x18] sm:$0xff]  ;;  %v7071_v5 = vld [vmem:[%s9478_s1 + $0x10] sm:$0xff]  ;;  %213 = vst [vmem:[#allocation2 + $0xc] sm:$0x1] %v7230_v20 }
   0x3   :  { %7206 = vmatpush.bf16.msra.mxu2 %v7076_v0  ;;  %7207 = vmatpush.bf16.msra.mxu3 %v7076_v0  ;;  %v7070_v6 = vld [vmem:[%s9478_s1 + $0x8] sm:$0xff]  ;;  %v7069_v7 = vld [vmem:[%s9478_s1] sm:$0xff]  ;;  %v7084_v8 = vld [vmem:[%s9479_s2 + $0x38] sm:$0xff]  ;;  %210 = vst [vmem:[#allocation2] sm:$0xf] %v7230_v20 }
   0x4   :  { %v7061_v9 = vld [vmem:[%s9480_s0] sm:$0xff]  ;;  %v7063_v10 = vld [vmem:[%s9480_s0 + $0x10] sm:$0xff]  ;;  %v7062_v14 = vld [vmem:[%s9480_s0 + $0x8] sm:$0xff]  ;;  %211 = vst [vmem:[#allocation2 + $0x4] sm:$0x1] %v7230_v20 }
   0x5   :  { %v7065_v11 = vld [vmem:[%s9480_s0 + $0x20] sm:$0xff]  ;;  %v7067_v12 = vld [vmem:[%s9480_s0 + $0x30] sm:$0xff]  ;;  %v7064_v15 = vld [vmem:[%s9480_s0 + $0x18] sm:$0xff]  ;;  %214 = vst [vmem:[#allocation2 + $0x10] sm:$0xf] %v7230_v20 }
   0x6   :  { %146 = vmatpush.bf16.msra.mxu0 %v7075_v1  ;;  %7208 = vmatpush.bf16.msra.mxu1 %v7075_v1  ;;  %v7083_v13 = vld [vmem:[%s9479_s2 + $0x30] sm:$0xff]  ;;  %v7066_v16 = vld [vmem:[%s9480_s0 + $0x28] sm:$0xff]  ;;  %v7068_v17 = vld [vmem:[%s9480_s0 + $0x38] sm:$0xff]  ;;  %215 = vst [vmem:[#allocation2 + $0x14] sm:$0x1] %v7230_v20 }
   0x7   :  { %7209 = vmatpush.bf16.msra.mxu2 %v7075_v1  ;;  %7210 = vmatpush.bf16.msra.mxu3 %v7075_v1  ;;  %v7082_v18 = vld [vmem:[%s9479_s2 + $0x28] sm:$0xff]  ;;  %v7100_v19 = vld [vmem:[%s9479_s2 + $0xb8] sm:$0xff]  ;;  %v7081_v22 = vld [vmem:[%s9479_s2 + $0x20] sm:$0xff]  ;;  %216 = vst [vmem:[#allocation2 + $0x18] sm:$0xf] %v7230_v20 }
   0x8   :  { %v7092_v21 = vld [vmem:[%s9479_s2 + $0x78] sm:$0xff]  ;;  %v7099_v23 = vld [vmem:[%s9479_s2 + $0xb0] sm:$0xff]  ;;  %217 = vst [vmem:[#allocation2 + $0x1c] sm:$0x1] %v7230_v20  ;;  %v7098_v26 = vld [vmem:[%s9479_s2 + $0xa8] sm:$0xff] }
   0x9   :  { %v7091_v24 = vld [vmem:[%s9479_s2 + $0x70] sm:$0xff]  ;;  %218 = vst [vmem:[#allocation2 + $0x20] sm:$0xf] %v7230_v20  ;;  %v7080_v25 = vld [vmem:[%s9479_s2 + $0x18] sm:$0xff]  ;;  %v7090_v27 = vld [vmem:[%s9479_s2 + $0x68] sm:$0xff] }
   0xa   :  { %147 = vmatpush.bf16.msra.mxu0 %v7074_v2  ;;  %7211 = vmatpush.bf16.msra.mxu1 %v7074_v2  ;;  %219 = vst [vmem:[#allocation2 + $0x24] sm:$0x1] %v7230_v20  ;;  %v7108_v28 = vld [vmem:[%s9479_s2 + $0xf8] sm:$0xff]  ;;  %v7079_v29 = vld [vmem:[%s9479_s2 + $0x10] sm:$0xff]  ;;  %v7097_v30 = vld [vmem:[%s9479_s2 + $0xa0] sm:$0xff] }
   0xb   :  { %7212 = vmatpush.bf16.msra.mxu2 %v7074_v2  ;;  %7213 = vmatpush.bf16.msra.mxu3 %v7074_v2  ;;  %220 = vst [vmem:[#allocation2 + $0x28] sm:$0xf] %v7230_v20  ;;  %v7089_v31 = vld [vmem:[%s9479_s2 + $0x60] sm:$0xff]  ;;  %v7107_v32 = vld [vmem:[%s9479_s2 + $0xf0] sm:$0xff]  ;;  %v7078_v33 = vld [vmem:[%s9479_s2 + $0x8] sm:$0xff] }
   0xc   :  { %221 = vst [vmem:[#allocation2 + $0x2c] sm:$0x1] %v7230_v20  ;;  %v7096_v34 = vld [vmem:[%s9479_s2 + $0x98] sm:$0xff]  ;;  %v7106_v36 = vld [vmem:[%s9479_s2 + $0xe8] sm:$0xff]  ;;  %v7077_v37 = vld [vmem:[%s9479_s2] sm:$0xff] }
   0xd   :  { %222 = vst [vmem:[#allocation2 + $0x30] sm:$0xf] %v7230_v20  ;;  %v7088_v35 = vld [vmem:[%s9479_s2 + $0x58] sm:$0xff]  ;;  %v7095_v38 = vld [vmem:[%s9479_s2 + $0x90] sm:$0xff]  ;;  %v7105_v40 = vld [vmem:[%s9479_s2 + $0xe0] sm:$0xff] }
   0xe   :  { %148 = vmatpush.bf16.msra.mxu0 %v7073_v3  ;;  %7214 = vmatpush.bf16.msra.mxu1 %v7073_v3  ;;  %223 = vst [vmem:[#allocation2 + $0x34] sm:$0x1] %v7230_v20  ;;  %v7087_v39 = vld [vmem:[%s9479_s2 + $0x50] sm:$0xff]  ;;  %v7397_v41 = vld [vmem:[#allocation2] sm:$0xf]  ;;  %v7094_v43 = vld [vmem:[%s9479_s2 + $0x88] sm:$0xff] }
   0xf   :  { %7215 = vmatpush.bf16.msra.mxu2 %v7073_v3  ;;  %7216 = vmatpush.bf16.msra.mxu3 %v7073_v3  ;;  %224 = vst [vmem:[#allocation2 + $0x38] sm:$0xf] %v7230_v20  ;;  %v545_v42 = vld [vmem:[#allocation2 + $0x4] sm:$0x1]  ;;  %v625_v44 = vunpack.c.l.b16 %v7397_v41  ;;  %v7086_v46 = vld [vmem:[%s9479_s2 + $0x48] sm:$0xff]  ;;  %v7104_v47 = vld [vmem:[%s9479_s2 + $0xd8] sm:$0xff] }
  0x10   :  { %225 = vst [vmem:[#allocation2 + $0x3c] sm:$0x1] %v7230_v20  ;;  %v626_v45 = vunpack.c.l.b16 %v545_v42  ;;  %v7093_v48 = vld [vmem:[%s9479_s2 + $0x80] sm:$0xff]  ;;  %v7103_v51 = vld [vmem:[%s9479_s2 + $0xd0] sm:$0xff]  ;;  %v7102_v59 = vld [vmem:[%s9479_s2 + $0xc8] sm:$0xff] }
  0x11   :  { %226 = vst [vmem:[#allocation2 + $0x40] sm:$0xf] %v7230_v20  ;;  %v7085_v50 = vld [vmem:[%s9479_s2 + $0x40] sm:$0xff]  ;;  %v430_v63 = vld [vmem:[#allocation2 + $0x8] sm:$0xf]  ;;  %vm7440_vm4 = vmand %vm427_vm1, %vm428_vm0 }
  0x12   :  { %149 = vmatpush.bf16.msra.mxu0 %v7072_v4  ;;  %7217 = vmatpush.bf16.msra.mxu1 %v7072_v4  ;;  %227 = vst [vmem:[#allocation2 + $0x44] sm:$0x1] %v7230_v20  ;;  %v657_v49 = vpack.c.b16 %v626_v45, %v625_v44  ;;  %v436_v0 = vld [vmem:[#allocation2 + $0xc] sm:$0x1]  ;;  %v457_v1 = vld [vmem:[#allocation2 + $0x28] sm:$0xf]  ;;  %vm7447_vm5 = vmand %vm433_vm3, %vm434_vm2 }
  0x13   :  { %7218 = vmatpush.bf16.msra.mxu2 %v7072_v4  ;;  %7219 = vmatpush.bf16.msra.mxu3 %v7072_v4  ;;  %228 = vst [vmem:[#allocation2 + $0x48] sm:$0xf] %v7230_v20  ;;  %vm2273_vm6 = vsmask.f32 3328  ;;  %vm2274_vm7 = vsmask.f32 7440 }
  0x14   :  { %229 = vst [vmem:[#allocation2 + $0x4c] sm:$0x1] %v7230_v20  ;;  %v676_v56 = vshll.u32 %v657_v49, 16  ;;  %v674_v2 = vshrl.u32 %v657_v49, 16  ;;  %vm7806_vm8 = vmor %vm2273_vm6, %vm2274_vm7 }
  0x15   :  { %230 = vst [vmem:[#allocation2 + $0x50] sm:$0xf] %v7230_v20 }
  0x16   :  { %150 = vmatpush.bf16.msra.mxu0 %v7071_v5  ;;  %7220 = vmatpush.bf16.msra.mxu1 %v7071_v5  ;;  %231 = vst [vmem:[#allocation2 + $0x54] sm:$0x1] %v7230_v20  ;;  %v678_v3 = vrot.slane %v676_v56, 1  ;;  %v7480_v56 = vld [vmem:[#allocation2 + $0x4] sm:$0x1] }
  0x17   :  { %7221 = vmatpush.bf16.msra.mxu2 %v7071_v5  ;;  %7222 = vmatpush.bf16.msra.mxu3 %v7071_v5  ;;  %232 = vst [vmem:[#allocation2 + $0x58] sm:$0xf] %v7230_v20 }
  0x18   :  { %233 = vst [vmem:[#allocation2 + $0x5c] sm:$0x1] %v7230_v20 }
  0x19   :  { %234 = vst [vmem:[#allocation2 + $0x60] sm:$0xf] %v7230_v20 }
  0x1a   :  { %151 = vmatpush.bf16.msra.mxu0 %v7070_v6  ;;  %7223 = vmatpush.bf16.msra.mxu1 %v7070_v6  ;;  %235 = vst [vmem:[#allocation2 + $0x64] sm:$0x1] %v7230_v20 }
  0x1b   :  { %7224 = vmatpush.bf16.msra.mxu2 %v7070_v6  ;;  %7225 = vmatpush.bf16.msra.mxu3 %v7070_v6  ;;  %236 = vst [vmem:[#allocation2 + $0x68] sm:$0xf] %v7230_v20 }
  0x1c   :  { %237 = vst [vmem:[#allocation2 + $0x6c] sm:$0x1] %v7230_v20 }
  0x1d   :  { %238 = vst [vmem:[#allocation2 + $0x70] sm:$0xf] %v7230_v20 }
  0x1e   :  { %152 = vmatpush.bf16.msra.mxu0 %v7069_v7  ;;  %7226 = vmatpush.bf16.msra.mxu1 %v7069_v7  ;;  %239 = vst [vmem:[#allocation2 + $0x74] sm:$0x1] %v7230_v20  ;;  %v481_v49 = vld [vmem:[#allocation2 + $0x58] sm:$0xf] }
  0x1f   :  { %7227 = vmatpush.bf16.msra.mxu2 %v7069_v7  ;;  %7228 = vmatpush.bf16.msra.mxu3 %v7069_v7  ;;  %240 = vst [vmem:[#allocation2 + $0x78] sm:$0xf] %v7230_v20 }
  0x20   :  { %241 = vst [vmem:[#allocation2 + $0x7c] sm:$0x1] %v7230_v20 }
  0x21   :  { %153 = vmatmul.bf16.vlgmr.msra.gmra.mxu0 %v7061_v9  ;;  %163 = vmatmul.bf16.vlgmr.msra.gmra.mxu1 %v7063_v10  ;;  %242 = vst [vmem:[#allocation2 + $0x80] sm:$0xf] %v7230_v20  ;;  %v460_v10 = vld [vmem:[#allocation2 + $0x2c] sm:$0x1] }
  0x22   :  { %1329 = vmatpush.bf16.msrb.mxu1 %v7084_v8  ;;  %173 = vmatmul.bf16.vlgmr.msra.gmra.mxu2 %v7065_v11  ;;  %243 = vst [vmem:[#allocation2 + $0x84] sm:$0x1] %v7230_v20 }
  0x23   :  { %183 = vmatmul.bf16.vlgmr.msra.gmra.mxu3 %v7067_v12  ;;  %1378 = vmatpush.bf16.msrb.mxu2 %v7092_v21  ;;  %244 = vst [vmem:[#allocation2 + $0x88] sm:$0xf] %v7230_v20 }
  0x24   :  { %1427 = vmatpush.bf16.msrb.mxu3 %v7100_v19  ;;  %1476 = vmatpush.bf16.msrb.mxu0 %v7108_v28  ;;  %245 = vst [vmem:[#allocation2 + $0x8c] sm:$0x1] %v7230_v20 }
  0x25   :  { %246 = vst [vmem:[#allocation2 + $0x90] sm:$0xf] %v7230_v20 }
  0x26   :  { %1330 = vmatpush.bf16.msrb.mxu1 %v7083_v13  ;;  %247 = vst [vmem:[#allocation2 + $0x94] sm:$0x1] %v7230_v20 }
  0x27   :  { %1379 = vmatpush.bf16.msrb.mxu2 %v7091_v24  ;;  %248 = vst [vmem:[#allocation2 + $0x98] sm:$0xf] %v7230_v20  ;;  %v7132_v24 = vld [vmem:[%s9479_s2 + $0x1b8] sm:$0xff] }
  0x28   :  { %1428 = vmatpush.bf16.msrb.mxu3 %v7099_v23  ;;  %1477 = vmatpush.bf16.msrb.mxu0 %v7107_v32  ;;  %249 = vst [vmem:[#allocation2 + $0x9c] sm:$0x1] %v7230_v20  ;;  %v7457_v23 = vor.u32 %v678_v3, %v674_v2 }
  0x2a   :  { %1331 = vmatpush.bf16.msrb.mxu1 %v7082_v18 }
  0x2b   :  { %1380 = vmatpush.bf16.msrb.mxu2 %v7090_v27 }
  0x2c   :  { %1429 = vmatpush.bf16.msrb.mxu3 %v7098_v26  ;;  %1478 = vmatpush.bf16.msrb.mxu0 %v7106_v36 }
  0x2e   :  { %1332 = vmatpush.bf16.msrb.mxu1 %v7081_v22 }
  0x2f   :  { %1381 = vmatpush.bf16.msrb.mxu2 %v7089_v31 }
  0x30   :  { %1430 = vmatpush.bf16.msrb.mxu3 %v7097_v30  ;;  %1479 = vmatpush.bf16.msrb.mxu0 %v7105_v40 }
  0x31   :  { %158 = vmatmul.bf16.gmra.mxu0 %v7062_v14  ;;  %168 = vmatmul.bf16.gmra.mxu1 %v7064_v15  ;;  %v7124_v14 = vld [vmem:[%s9479_s2 + $0x178] sm:$0xff] }
  0x32   :  { %178 = vmatmul.bf16.gmra.mxu2 %v7066_v16  ;;  %1333 = vmatpush.bf16.msrb.mxu1 %v7080_v25  ;;  %v7101_v25 = vld [vmem:[%s9479_s2 + $0xc0] sm:$0xff] }
  0x33   :  { %188 = vmatmul.bf16.gmra.mxu3 %v7068_v17  ;;  %1382 = vmatpush.bf16.msrb.mxu2 %v7088_v35 }
  0x34   :  { %1431 = vmatpush.bf16.msrb.mxu3 %v7096_v34  ;;  %1480 = vmatpush.bf16.msrb.mxu0 %v7104_v47 }
  0x36   :  { %1334 = vmatpush.bf16.msrb.mxu1 %v7079_v29  ;;  %v7116_v29 = vld [vmem:[%s9479_s2 + $0x138] sm:$0xff] }
  0x37   :  { %1383 = vmatpush.bf16.msrb.mxu2 %v7087_v39  ;;  %v463_v39 = vld [vmem:[#allocation2 + $0x30] sm:$0xf] }
  0x38   :  { %1432 = vmatpush.bf16.msrb.mxu3 %v7095_v38  ;;  %1481 = vmatpush.bf16.msrb.mxu0 %v7103_v51  ;;  %v442_v38 = vld [vmem:[#allocation2 + $0x14] sm:$0x1]  ;;  %v7140_v51 = vld [vmem:[%s9479_s2 + $0x1f8] sm:$0xff] }
  0x3a   :  { %1335 = vmatpush.bf16.msrb.mxu1 %v7078_v33 }
  0x3b   :  { %1384 = vmatpush.bf16.msrb.mxu2 %v7086_v46 }
  0x3c   :  { %1433 = vmatpush.bf16.msrb.mxu3 %v7094_v43  ;;  %1482 = vmatpush.bf16.msrb.mxu0 %v7102_v59 }
  0x3e   :  { %1336 = vmatpush.bf16.msrb.mxu1 %v7077_v37  ;;  %v439_v37 = vld [vmem:[#allocation2 + $0x10] sm:$0xf] }
  0x3f   :  { %1385 = vmatpush.bf16.msrb.mxu2 %v7085_v50  ;;  %v977_v50 = vunpack.c.l.b16 %v7457_v23 }
  0x40   :  { %1434 = vmatpush.bf16.msrb.mxu3 %v7093_v48  ;;  %1483 = vmatpush.bf16.msrb.mxu0 %v7101_v25 }
  0x42   :  { %3109 = vmatpush.bf16.msra.mxu1 %v7116_v29  ;;  %v472_v29 = vld [vmem:[#allocation2 + $0x3c] sm:$0x1] }
  0x43   :  { %3158 = vmatpush.bf16.msra.mxu2 %v7124_v14 }
  0x44   :  { %3207 = vmatpush.bf16.msra.mxu3 %v7132_v24  ;;  %3256 = vmatpush.bf16.msra.mxu0 %v7140_v51 }
  0x9e   :  { %v154_v52 = vpop.f32.mrf.mxu0  ;;  %v164_v53 = vpop.f32.mrf.mxu1 }
  0x9f   :  { %v194_v54 = vmax.f32 %v154_v52, 0.0  ;;  %v198_v55 = vmax.f32 %v164_v53, 0.0 }
  0xa1   :  { %v250_v57 = vpack.c.bf16 %v194_v54, %v194_v54  ;;  %v254_v58 = vpack.c.bf16 %v198_v55, %v198_v55 }
  0xa3   :  { %v267_v60 = vshrl.u32 %v250_v57, 16  ;;  %v299_v61 = vshrl.u32 %v254_v58, 16  ;;  %v302_v62 = vshll.u32 %v254_v58, 16  ;;  %v270_v5 = vshll.u32 %v250_v57, 16 }
  0xa5   :  { %v269_v4 = vrot.slane %v267_v60, 7  ;;  %v301_v7 = vrot.slane %v299_v61, 7  ;;  %v174_v8 = vpop.f32.mrf.mxu2  ;;  %v466_v61 = vld [vmem:[#allocation2 + $0x34] sm:$0x1] }
  0xa6   :  { %v156_v11 = vpop.f32.mrf.mxu0  ;;  %v166_v12 = vpop.f32.mrf.mxu1  ;;  %v202_v13 = vmax.f32 %v174_v8, 0.0 }
  0xa7   :  { %v272_v15 = vor.u32 %v270_v5, %v269_v4  ;;  %v273_v16 = vrot.slane %v269_v4, 4  ;;  %v304_v17 = vor.u32 %v302_v62, %v301_v7  ;;  %v305_v18 = vrot.slane %v301_v7, 4  ;;  %v484_v62 = vld [vmem:[#allocation2 + $0x5c] sm:$0x1] }
  0xa8   :  { %v195_v19 = vmax.f32 %v156_v11, 0.0  ;;  %v199_v21 = vmax.f32 %v166_v12, 0.0  ;;  %v258_v22 = vpack.c.bf16 %v202_v13, %v202_v13  ;;  %v1730_v12 = vunpack.c.l.b16 %v7480_v56 }
  0xa9   :  { %v431_v26 = vsel %vm7440_vm4, %v272_v15, %v430_v63  ;;  %v437_v20 = vsel %vm7447_vm5, %v273_v16, %v436_v0  ;;  %v458_v27 = vsel %vm7440_vm4, %v304_v17, %v457_v1  ;;  %v461_v28 = vsel %vm7447_vm5, %v305_v18, %v460_v10  ;;  %v445_v18 = vld [vmem:[#allocation2 + $0x18] sm:$0xf] }
  0xaa   :  { %432 = vst [vmem:[#allocation2 + $0x8] sm:$0xf] %v431_v26  ;;  %v251_v30 = vpack.c.bf16 %v195_v19, %v195_v19  ;;  %v255_v31 = vpack.c.bf16 %v199_v21, %v199_v21  ;;  %v331_v32 = vshrl.u32 %v258_v22, 16  ;;  %v334_v33 = vshll.u32 %v258_v22, 16  ;;  %v448_v19 = vld [vmem:[#allocation2 + $0x1c] sm:$0x1] }
  0xab   :  { %438 = vst [vmem:[#allocation2 + $0xc] sm:$0x1] %v437_v20  ;;  %v469_v21 = vld [vmem:[#allocation2 + $0x38] sm:$0xf]  ;;  %v7123_v26 = vld [vmem:[%s9479_s2 + $0x170] sm:$0xff] }
  0xac   :  { %459 = vst [vmem:[#allocation2 + $0x28] sm:$0xf] %v458_v27  ;;  %v275_v34 = vshrl.u32 %v251_v30, 16  ;;  %v307_v35 = vshrl.u32 %v255_v31, 16  ;;  %v310_v36 = vshll.u32 %v255_v31, 16  ;;  %v333_v40 = vrot.slane %v331_v32, 7  ;;  %3159 = vmatpush.bf16.msra.mxu2 %v7123_v26 }
  0xad   :  { %462 = vst [vmem:[#allocation2 + $0x2c] sm:$0x1] %v461_v28  ;;  %v176_v42 = vpop.f32.mrf.mxu2  ;;  %v278_v45 = vshll.u32 %v251_v30, 16  ;;  %v7131_v20 = vld [vmem:[%s9479_s2 + $0x1b0] sm:$0xff]  ;;  %v478_v26 = vld [vmem:[#allocation2 + $0x44] sm:$0x1] }
  0xae   :  { %v277_v43 = vrot.slane %v275_v34, 7  ;;  %v309_v46 = vrot.slane %v307_v35, 7  ;;  %v159_v47 = vpop.f32.mrf.mxu0  ;;  %v169_v48 = vpop.f32.mrf.mxu1  ;;  %v336_v54 = vor.u32 %v334_v33, %v333_v40  ;;  %v337_v55 = vrot.slane %v333_v40, 4  ;;  %3208 = vmatpush.bf16.msra.mxu3 %v7131_v20 }
  0xaf   :  { %v196_v52 = vmax.f32 %v159_v47, 0.0  ;;  %v200_v53 = vmax.f32 %v169_v48, 0.0  ;;  %v203_v4 = vmax.f32 %v176_v42, 0.0 }
  0xb0   :  { %v280_v57 = vor.u32 %v278_v45, %v277_v43  ;;  %v281_v58 = vrot.slane %v277_v43, 4  ;;  %v312_v59 = vor.u32 %v310_v36, %v309_v46  ;;  %v313_v60 = vrot.slane %v309_v46, 4 }
  0xb1   :  { %v252_v63 = vpack.c.bf16 %v196_v52, %v196_v52  ;;  %v256_v0 = vpack.c.bf16 %v200_v53, %v200_v53  ;;  %v530_v1 = vld [vmem:[#allocation2 + $0x8] sm:$0xf]  ;;  %v482_v3 = vsel %vm7440_vm4, %v336_v54, %v481_v49  ;;  %v485_v25 = vsel %vm7447_vm5, %v337_v55, %v484_v62  ;;  %v7115_v49 = vld [vmem:[%s9479_s2 + $0x130] sm:$0xff] }
  0xb2   :  { %v7482_v2 = vld [vmem:[#allocation2 + $0x8] sm:$0xf]  ;;  %v440_v5 = vsel %vm7440_vm4, %v280_v57, %v439_v37  ;;  %v443_v7 = vsel %vm7447_vm5, %v281_v58, %v442_v38  ;;  %v464_v8 = vsel %vm7440_vm4, %v312_v59, %v463_v39  ;;  %v546_v10 = vld [vmem:[#allocation2 + $0xc] sm:$0x1]  ;;  %483 = vst [vmem:[#allocation2 + $0x58] sm:$0xf] %v482_v3  ;;  %v467_v13 = vsel %vm7447_vm5, %v313_v60, %v466_v61 }
  0xb3   :  { %v577_v11 = vld [vmem:[#allocation2 + $0xc] sm:$0x1]  ;;  %441 = vst [vmem:[#allocation2 + $0x10] sm:$0xf] %v440_v5  ;;  %v283_v14 = vshrl.u32 %v252_v63, 16  ;;  %v315_v15 = vshrl.u32 %v256_v0, 16  ;;  %v627_v22 = vunpack.c.l.b16 %v530_v1  ;;  %v628_v24 = vunpack.c.l.b16 %v546_v10  ;;  %3110 = vmatpush.bf16.msra.mxu1 %v7115_v49 }
  0xb4   :  { %v318_v16 = vshll.u32 %v256_v0, 16  ;;  %444 = vst [vmem:[#allocation2 + $0x14] sm:$0x1] %v443_v7  ;;  %v286_v17 = vshll.u32 %v252_v63, 16  ;;  %v817_v30 = vunpack.c.l.b16 %v7482_v2  ;;  %v818_v31 = vunpack.c.l.b16 %v577_v11  ;;  %v7508_v39 = vld [vmem:[#allocation2] sm:$0xf] }
  0xb5   :  { %465 = vst [vmem:[#allocation2 + $0x30] sm:$0xf] %v464_v8  ;;  %v285_v27 = vrot.slane %v283_v14, 7  ;;  %v317_v28 = vrot.slane %v315_v15, 7  ;;  %v179_v32 = vpop.f32.mrf.mxu2  ;;  %v658_v34 = vpack.c.b16 %v628_v24, %v627_v22  ;;  %v1073_v35 = vpack.c.b16 %v627_v22, %v625_v44  ;;  %v7510_v46 = vld [vmem:[#allocation2 + $0x28] sm:$0xf] }
  0xb6   :  { %468 = vst [vmem:[#allocation2 + $0x34] sm:$0x1] %v467_v13  ;;  %v161_v33 = vpop.f32.mrf.mxu0  ;;  %v171_v36 = vpop.f32.mrf.mxu1  ;;  %v7506_v37 = vpack.c.bf16 %v203_v4, %v203_v4  ;;  %v204_v38 = vmax.f32 %v179_v32, 0.0  ;;  %v7524_v63 = vpack.c.b16 %v818_v31, %v817_v30  ;;  %v635_v1 = vunpack.c.l.b16 %v7510_v46  ;;  %v451_v10 = vld [vmem:[#allocation2 + $0x20] sm:$0xf]  ;;  %v7139_v22 = vld [vmem:[%s9479_s2 + $0x1f0] sm:$0xff] }
  0xb7   :  { %v288_v40 = vor.u32 %v286_v17, %v285_v27  ;;  %v289_v42 = vrot.slane %v285_v27, 4  ;;  %v320_v43 = vor.u32 %v318_v16, %v317_v28  ;;  %v321_v45 = vrot.slane %v317_v28, 4  ;;  %486 = vst [vmem:[#allocation2 + $0x5c] sm:$0x1] %v485_v25  ;;  %1337 = vmatmul.bf16.vlgmr.msrb.gmra.mxu1 %v1073_v35  ;;  %v454_v17 = vld [vmem:[#allocation2 + $0x24] sm:$0x1]  ;;  %3257 = vmatpush.bf16.msra.mxu0 %v7139_v22 }
  0xb8   :  { %v197_v47 = vmax.f32 %v161_v33, 0.0  ;;  %v201_v48 = vmax.f32 %v171_v36, 0.0  ;;  %v681_v41 = vshrl.u32 %v658_v34, 16  ;;  %v683_v44 = vshll.u32 %v658_v34, 16  ;;  %v475_v25 = vld [vmem:[#allocation2 + $0x40] sm:$0xf] }
  0xb9   :  { %v446_v51 = vsel %vm7440_vm4, %v288_v40, %v445_v18  ;;  %v449_v52 = vsel %vm7447_vm5, %v289_v42, %v448_v19  ;;  %v470_v53 = vsel %vm7440_vm4, %v320_v43, %v469_v21  ;;  %v473_v54 = vsel %vm7447_vm5, %v321_v45, %v472_v29  ;;  %v487_v33 = vld [vmem:[#allocation2 + $0x60] sm:$0xf]  ;;  %v490_v34 = vld [vmem:[#allocation2 + $0x64] sm:$0x1] }
  0xba   :  { %447 = vst [vmem:[#allocation2 + $0x18] sm:$0xf] %v446_v51  ;;  %v253_v55 = vpack.c.bf16 %v197_v47, %v197_v47  ;;  %v562_v57 = vld [vmem:[#allocation2 + $0x10] sm:$0xf]  ;;  %v257_v58 = vpack.c.bf16 %v201_v48, %v201_v48  ;;  %v685_v59 = vrot.slane %v683_v44, 1  ;;  %v339_v60 = vshrl.u32 %v7506_v37, 16 }
  0xbb   :  { %450 = vst [vmem:[#allocation2 + $0x1c] sm:$0x1] %v449_v52  ;;  %v578_v61 = vld [vmem:[#allocation2 + $0x14] sm:$0x1]  ;;  %v819_v62 = vunpack.c.l.b16 %v562_v57  ;;  %v7526_v0 = vld [vmem:[#allocation2 + $0x10] sm:$0xf]  ;;  %v1729_v2 = vunpack.c.l.b16 %v7508_v39  ;;  %v7530_v7 = vpack.c.bf16 %v204_v38, %v204_v38 }
  0xbc   :  { %471 = vst [vmem:[#allocation2 + $0x38] sm:$0xf] %v470_v53  ;;  %v291_v3 = vshrl.u32 %v253_v55, 16  ;;  %v820_v4 = vunpack.c.l.b16 %v578_v61  ;;  %v323_v5 = vshrl.u32 %v257_v58, 16  ;;  %v294_v8 = vshll.u32 %v253_v55, 16 }
  0xbd   :  { %474 = vst [vmem:[#allocation2 + $0x3c] sm:$0x1] %v473_v54  ;;  %v1075_v11 = vpack.c.b16 %v819_v62, %v817_v30  ;;  %v326_v13 = vshll.u32 %v257_v58, 16  ;;  %v686_v14 = vor.u32 %v685_v59, %v681_v41  ;;  %v547_v15 = vld [vmem:[#allocation2 + $0x14] sm:$0x1]  ;;  %v629_v19 = vunpack.c.l.b16 %v7526_v0  ;;  %v7122_v58 = vld [vmem:[%s9479_s2 + $0x168] sm:$0xff] }
  0xbe   :  { %v293_v16 = vrot.slane %v291_v3, 7  ;;  %v325_v18 = vrot.slane %v323_v5, 7  ;;  %v630_v21 = vunpack.c.l.b16 %v547_v15  ;;  %v7536_v24 = vpack.c.b16 %v820_v4, %v819_v62  ;;  %v7554_v52 = vld [vmem:[#allocation2 + $0x2c] sm:$0x1]  ;;  %3160 = vmatpush.bf16.msra.mxu2 %v7122_v58 }
  0xbf   :  { %1435 = vmatmul.bf16.vlgmr.msrb.gmra.mxu3 %v1075_v11  ;;  %v979_v20 = vunpack.c.l.b16 %v686_v14  ;;  %v341_v27 = vrot.slane %v339_v60, 7  ;;  %v342_v28 = vshll.u32 %v7506_v37, 16  ;;  %v866_v42 = vshrl.u32 %v7524_v63, 16  ;;  %v7130_v0 = vld [vmem:[%s9479_s2 + $0x1a8] sm:$0xff] }
  0xc0   :  { %v296_v29 = vor.u32 %v294_v8, %v293_v16  ;;  %v297_v30 = vrot.slane %v293_v16, 4  ;;  %v328_v31 = vor.u32 %v326_v13, %v325_v18  ;;  %v329_v32 = vrot.slane %v325_v18, 4  ;;  %v493_v8 = vld [vmem:[#allocation2 + $0x68] sm:$0xf]  ;;  %v496_v13 = vld [vmem:[#allocation2 + $0x6c] sm:$0x1]  ;;  %3209 = vmatpush.bf16.msra.mxu3 %v7130_v0 }
  0xc1   :  { %v1074_v35 = vpack.c.b16 %v979_v20, %v977_v50  ;;  %v532_v36 = vld [vmem:[#allocation2 + $0x18] sm:$0xf]  ;;  %v344_v38 = vor.u32 %v342_v28, %v341_v27  ;;  %v345_v40 = vrot.slane %v341_v27, 4  ;;  %v659_v41 = vpack.c.b16 %v630_v21, %v629_v19  ;;  %v7571_v21 = vpop.f32.mrf.mxu3  ;;  %v7138_v58 = vld [vmem:[%s9479_s2 + $0x1e8] sm:$0xff] }
  0xc2   :  { %v7542_v43 = vld [vmem:[#allocation2 + $0x18] sm:$0xf]  ;;  %v452_v37 = vsel %vm7440_vm4, %v296_v29, %v451_v10  ;;  %v455_v45 = vsel %vm7447_vm5, %v297_v30, %v454_v17  ;;  %v476_v47 = vsel %vm7440_vm4, %v328_v31, %v475_v25  ;;  %v548_v48 = vld [vmem:[#allocation2 + $0x1c] sm:$0x1]  ;;  %v479_v50 = vsel %vm7447_vm5, %v329_v32, %v478_v26  ;;  %3258 = vmatpush.bf16.msra.mxu0 %v7138_v58 }
  0xc3   :  { %v579_v23 = vld [vmem:[#allocation2 + $0x1c] sm:$0x1]  ;;  %453 = vst [vmem:[#allocation2 + $0x20] sm:$0xf] %v452_v37  ;;  %1386 = vmatmul.bf16.vlgmr.msrb.gmra.mxu2 %v1074_v35  ;;  %v631_v44 = vunpack.c.l.b16 %v532_v36  ;;  %v632_v49 = vunpack.c.l.b16 %v548_v48  ;;  %v488_v51 = vsel %vm7440_vm4, %v344_v38, %v487_v33  ;;  %v491_v53 = vsel %vm7447_vm5, %v345_v40, %v490_v34  ;;  %v7580_v40 = vld [vmem:[#allocation2 + $0x8] sm:$0xf] }
  0xc4   :  { %456 = vst [vmem:[#allocation2 + $0x24] sm:$0x1] %v455_v45  ;;  %v868_v54 = vshll.u32 %v7524_v63, 16  ;;  %v875_v55 = vshll.u32 %v7536_v24, 16  ;;  %v821_v57 = vunpack.c.l.b16 %v7542_v43  ;;  %v822_v61 = vunpack.c.l.b16 %v579_v23 }
  0xc5   :  { %477 = vst [vmem:[#allocation2 + $0x40] sm:$0xf] %v476_v47  ;;  %v660_v59 = vpack.c.b16 %v632_v49, %v631_v44  ;;  %v1077_v60 = vpack.c.b16 %v631_v44, %v629_v19  ;;  %v347_v62 = vshrl.u32 %v7530_v7, 16  ;;  %v873_v3 = vshrl.u32 %v7536_v24, 16  ;;  %v565_v47 = vld [vmem:[#allocation2 + $0x28] sm:$0xf] }
  0xc6   :  { %480 = vst [vmem:[#allocation2 + $0x44] sm:$0x1] %v479_v50  ;;  %v870_v63 = vrot.slane %v868_v54, 1  ;;  %v877_v4 = vrot.slane %v875_v55, 1  ;;  %v350_v5 = vshll.u32 %v7530_v7, 16  ;;  %v851_v10 = vpack.c.b16 %v822_v61, %v821_v57  ;;  %v7114_v7 = vld [vmem:[%s9479_s2 + $0x128] sm:$0xff]  ;;  %v181_v55 = vpop.f32.mrf.mxu2 }
  0xc7   :  { %489 = vst [vmem:[#allocation2 + $0x60] sm:$0xf] %v488_v51  ;;  %v349_v11 = vrot.slane %v347_v62, 7  ;;  %v690_v14 = vshll.u32 %v659_v41, 16  ;;  %v636_v15 = vunpack.c.l.b16 %v7554_v52  ;;  %1342 = vmatmul.bf16.gmra.mxu1 %v1077_v60  ;;  %v688_v18 = vshrl.u32 %v659_v41, 16 }
  0xc8   :  { %492 = vst [vmem:[#allocation2 + $0x64] sm:$0x1] %v491_v53  ;;  %v871_v16 = vor.u32 %v870_v63, %v866_v42  ;;  %v878_v17 = vor.u32 %v877_v4, %v873_v3  ;;  %v697_v19 = vshll.u32 %v660_v59, 16  ;;  %v695_v26 = vshrl.u32 %v660_v59, 16  ;;  %3111 = vmatpush.bf16.msra.mxu1 %v7114_v7  ;;  %v581_v44 = vld [vmem:[#allocation2 + $0x2c] sm:$0x1] }
  0xc9   :  { %v352_v22 = vor.u32 %v350_v5, %v349_v11  ;;  %v353_v24 = vrot.slane %v349_v11, 4  ;;  %v692_v25 = vrot.slane %v690_v14, 1  ;;  %v882_v31 = vshll.u32 %v851_v10, 16  ;;  %v566_v53 = vld [vmem:[#allocation2 + $0x30] sm:$0xf]  ;;  %v186_v46 = vpop.f32.mrf.mxu3 }
  0xca   :  { %v978_v20 = vunpack.c.l.b16 %v871_v16  ;;  %v980_v27 = vunpack.c.l.b16 %v878_v17  ;;  %v564_v28 = vld [vmem:[#allocation2 + $0x20] sm:$0xf]  ;;  %v699_v29 = vrot.slane %v697_v19, 1  ;;  %v880_v23 = vshrl.u32 %v851_v10, 16  ;;  %v582_v54 = vld [vmem:[#allocation2 + $0x34] sm:$0x1] }
  0xcb   :  { %v533_v30 = vld [vmem:[#allocation2 + $0x20] sm:$0xf]  ;;  %v580_v32 = vld [vmem:[#allocation2 + $0x24] sm:$0x1]  ;;  %v823_v33 = vunpack.c.l.b16 %v564_v28  ;;  %v494_v34 = vsel %vm7440_vm4, %v352_v22, %v493_v8  ;;  %v497_v35 = vsel %vm7447_vm5, %v353_v24, %v496_v13  ;;  %v693_v36 = vor.u32 %v692_v25, %v688_v18  ;;  %v7590_v13 = vld [vmem:[#allocation2 + $0x30] sm:$0xf] }
  0xcc   :  { %v549_v38 = vld [vmem:[#allocation2 + $0x24] sm:$0x1]  ;;  %v1076_v42 = vpack.c.b16 %v980_v27, %v978_v20  ;;  %v824_v43 = vunpack.c.l.b16 %v580_v32  ;;  %495 = vst [vmem:[#allocation2 + $0x68] sm:$0xf] %v494_v34  ;;  %v700_v37 = vor.u32 %v699_v29, %v695_v26  ;;  %v633_v45 = vunpack.c.l.b16 %v533_v30  ;;  %v551_v14 = vld [vmem:[#allocation2 + $0x34] sm:$0x1] }
  0xcd   :  { %v1079_v48 = vpack.c.b16 %v823_v33, %v821_v57  ;;  %498 = vst [vmem:[#allocation2 + $0x6c] sm:$0x1] %v497_v35  ;;  %v634_v41 = vunpack.c.l.b16 %v549_v38  ;;  %v884_v50 = vrot.slane %v882_v31, 1  ;;  %v981_v51 = vunpack.c.l.b16 %v693_v36  ;;  %v7121_v24 = vld [vmem:[%s9479_s2 + $0x160] sm:$0xff]  ;;  %v7599_v27 = vld [vmem:[#allocation2 + $0x38] sm:$0xf] }
  0xce   :  { %1484 = vmatmul.bf16.vlgmr.msrb.gmra.mxu0 %v1076_v42  ;;  %v852_v49 = vpack.c.b16 %v824_v43, %v823_v33  ;;  %v983_v52 = vunpack.c.l.b16 %v700_v37  ;;  %v1731_v59 = vunpack.c.l.b16 %v7580_v40  ;;  %v662_v60 = vpack.c.b16 %v636_v15, %v635_v1  ;;  %v7129_v25 = vld [vmem:[%s9479_s2 + $0x1a0] sm:$0xff]  ;;  %v552_v33 = vld [vmem:[#allocation2 + $0x3c] sm:$0x1]  ;;  %3161 = vmatpush.bf16.msra.mxu2 %v7121_v24 }
  0xcf   :  { %1440 = vmatmul.bf16.gmra.mxu3 %v1079_v48  ;;  %v661_v57 = vpack.c.b16 %v634_v41, %v633_v45  ;;  %v1081_v61 = vpack.c.b16 %v635_v1, %v633_v45  ;;  %v885_v62 = vor.u32 %v884_v50, %v880_v23  ;;  %v825_v3 = vunpack.c.l.b16 %v565_v47  ;;  %v499_v48 = vld [vmem:[#allocation2 + $0x70] sm:$0xf]  ;;  %v502_v41 = vld [vmem:[#allocation2 + $0x74] sm:$0x1] }
  0xd0   :  { %v1078_v0 = vpack.c.b16 %v983_v52, %v981_v51  ;;  %v889_v63 = vshll.u32 %v852_v49, 16  ;;  %v826_v4 = vunpack.c.l.b16 %v581_v44  ;;  %v887_v5 = vshrl.u32 %v852_v49, 16  ;;  %3210 = vmatpush.bf16.msra.mxu3 %v7129_v25  ;;  %v7113_v49 = vld [vmem:[%s9479_s2 + $0x120] sm:$0xff] }
  0xd1   :  { %v827_v8 = vunpack.c.l.b16 %v566_v53  ;;  %v828_v10 = vunpack.c.l.b16 %v582_v54  ;;  %v205_v11 = vmax.f32 %v181_v55, 0.0  ;;  %v982_v17 = vunpack.c.l.b16 %v885_v62  ;;  %v505_v54 = vld [vmem:[#allocation2 + $0x78] sm:$0xf]  ;;  %v508_v55 = vld [vmem:[#allocation2 + $0x7c] sm:$0x1]  ;;  %3112 = vmatpush.bf16.msra.mxu1 %v7113_v49 }
  0xd2   :  { %v891_v16 = vrot.slane %v889_v63, 1  ;;  %v206_v15 = vmax.f32 %v7571_v21, 0.0  ;;  %v702_v18 = vshrl.u32 %v661_v57, 16  ;;  %v704_v19 = vshll.u32 %v661_v57, 16  ;;  %v583_v63 = vld [vmem:[#allocation2 + $0x3c] sm:$0x1] }
  0xd3   :  { %1391 = vmatmul.bf16.gmra.mxu2 %v1078_v0  ;;  %v261_v1 = vpack.c.bf16 %v205_v11, %v205_v11  ;;  %v709_v7 = vshrl.u32 %v662_v60, 16  ;;  %v711_v22 = vshll.u32 %v662_v60, 16  ;;  %v637_v21 = vunpack.c.l.b16 %v7590_v13  ;;  %v7610_v0 = vld [vmem:[#allocation2 + $0x38] sm:$0xf] }
  0xd4   :  { %v892_v26 = vor.u32 %v891_v16, %v887_v5  ;;  %v262_v20 = vpack.c.bf16 %v206_v15, %v206_v15  ;;  %v638_v28 = vunpack.c.l.b16 %v551_v14  ;;  %v706_v31 = vrot.slane %v704_v19, 1  ;;  %v189_v15 = vpop.f32.mrf.mxu3 }
  0xd5   :  { %v355_v29 = vshrl.u32 %v261_v1, 16  ;;  %v358_v30 = vshll.u32 %v261_v1, 16  ;;  %v713_v32 = vrot.slane %v711_v22, 1  ;;  %v853_v35 = vpack.c.b16 %v826_v4, %v825_v3  ;;  %v584_v1 = vld [vmem:[#allocation2 + $0x44] sm:$0x1] }
  0xd6   :  { %v984_v34 = vunpack.c.l.b16 %v892_v26  ;;  %v363_v36 = vshrl.u32 %v262_v20, 16  ;;  %v366_v38 = vshll.u32 %v262_v20, 16  ;;  %v1083_v42 = vpack.c.b16 %v827_v8, %v825_v3  ;;  %v7137_v20 = vld [vmem:[%s9479_s2 + $0x1e0] sm:$0xff] }
  0xd7   :  { %v357_v43 = vrot.slane %v355_v29, 7  ;;  %v707_v37 = vor.u32 %v706_v31, %v702_v18  ;;  %v714_v45 = vor.u32 %v713_v32, %v709_v7  ;;  %1347 = vmatmul.bf16.gmra.mxu1 %v1081_v61  ;;  %v854_v47 = vpack.c.b16 %v828_v10, %v827_v8  ;;  %3259 = vmatpush.bf16.msra.mxu0 %v7137_v20  ;;  %v7112_v20 = vld [vmem:[%s9479_s2 + $0x118] sm:$0xff] }
  0xd8   :  { %v365_v23 = vrot.slane %v363_v36, 7  ;;  %v639_v50 = vunpack.c.l.b16 %v7599_v27  ;;  %v640_v44 = vunpack.c.l.b16 %v552_v33  ;;  %v1080_v51 = vpack.c.b16 %v984_v34, %v982_v17  ;;  %v568_v17 = vld [vmem:[#allocation2 + $0x40] sm:$0xf]  ;;  %v514_v34 = vld [vmem:[#allocation2 + $0x84] sm:$0x1]  ;;  %3113 = vmatpush.bf16.msra.mxu1 %v7112_v20  ;;  %v7127_v20 = vld [vmem:[%s9479_s2 + $0x190] sm:$0xff] }
  0xd9   :  { %v360_v52 = vor.u32 %v358_v30, %v357_v43  ;;  %v361_v53 = vrot.slane %v357_v43, 4  ;;  %v7608_v58 = vpack.c.b16 %v638_v28, %v637_v21  ;;  %v985_v61 = vunpack.c.l.b16 %v707_v37  ;;  %v511_v33 = vld [vmem:[#allocation2 + $0x80] sm:$0xf] }
  0xda   :  { %v368_v57 = vor.u32 %v366_v38, %v365_v23  ;;  %v369_v60 = vrot.slane %v365_v23, 4  ;;  %v207_v62 = vmax.f32 %v186_v46, 0.0  ;;  %v987_v5 = vunpack.c.l.b16 %v714_v45 }
  0xdb   :  { %v500_v3 = vsel %vm7440_vm4, %v360_v52, %v499_v48  ;;  %v503_v4 = vsel %vm7447_vm5, %v361_v53, %v502_v41  ;;  %v894_v8 = vshrl.u32 %v853_v35, 16  ;;  %v896_v16 = vshll.u32 %v853_v35, 16  ;;  %v7634_v48 = vld [vmem:[#allocation2 + $0x58] sm:$0xf]  ;;  %v554_v52 = vld [vmem:[#allocation2 + $0x5c] sm:$0x1] }
  0xdc   :  { %501 = vst [vmem:[#allocation2 + $0x70] sm:$0xf] %v500_v3  ;;  %v506_v10 = vsel %vm7440_vm4, %v368_v57, %v505_v54  ;;  %v509_v11 = vsel %vm7447_vm5, %v369_v60, %v508_v55  ;;  %v263_v14 = vpack.c.bf16 %v207_v62, %v207_v62  ;;  %v901_v18 = vshrl.u32 %v854_v47, 16  ;;  %v7128_v60 = vld [vmem:[%s9479_s2 + $0x198] sm:$0xff] }
  0xdd   :  { %504 = vst [vmem:[#allocation2 + $0x74] sm:$0x1] %v503_v4  ;;  %v903_v46 = vshll.u32 %v854_v47, 16  ;;  %v829_v19 = vunpack.c.l.b16 %v7610_v0  ;;  %v830_v7 = vunpack.c.l.b16 %v583_v63  ;;  %v7623_v22 = vpack.c.b16 %v640_v44, %v639_v50  ;;  %v517_v0 = vld [vmem:[#allocation2 + $0x88] sm:$0xf]  ;;  %3211 = vmatpush.bf16.msra.mxu3 %v7128_v60 }
  0xde   :  { %1489 = vmatmul.bf16.gmra.mxu0 %v1080_v51  ;;  %507 = vst [vmem:[#allocation2 + $0x78] sm:$0xf] %v506_v10  ;;  %v371_v24 = vshrl.u32 %v263_v14, 16  ;;  %v374_v25 = vshll.u32 %v263_v14, 16  ;;  %v898_v26 = vrot.slane %v896_v16, 1  ;;  %v1082_v28 = vpack.c.b16 %v987_v5, %v985_v61 }
  0xdf   :  { %1445 = vmatmul.bf16.gmra.mxu3 %v1083_v42  ;;  %510 = vst [vmem:[#allocation2 + $0x7c] sm:$0x1] %v509_v11  ;;  %v905_v29 = vrot.slane %v903_v46, 1  ;;  %v831_v30 = vunpack.c.l.b16 %v568_v17  ;;  %v208_v31 = vmax.f32 %v189_v15, 0.0  ;;  %v832_v36 = vunpack.c.l.b16 %v584_v1  ;;  %v7632_v42 = vld [vmem:[#allocation2 + $0x50] sm:$0xf] }
  0xe0   :  { %v373_v32 = vrot.slane %v371_v24, 7  ;;  %v899_v35 = vor.u32 %v898_v26, %v894_v8  ;;  %v7628_v38 = vpack.c.b16 %v830_v7, %v829_v19  ;;  %v716_v45 = vshrl.u32 %v7608_v58, 16  ;;  %v553_v51 = vld [vmem:[#allocation2 + $0x54] sm:$0x1]  ;;  %v520_v10 = vld [vmem:[#allocation2 + $0x8c] sm:$0x1]  ;;  %v191_v26 = vpop.f32.mrf.mxu3 }
  0xe1   :  { %v906_v43 = vor.u32 %v905_v29, %v901_v18  ;;  %v264_v37 = vpack.c.bf16 %v208_v31, %v208_v31  ;;  %v718_v47 = vshll.u32 %v7608_v58, 16  ;;  %v723_v49 = vshrl.u32 %v7623_v22, 16  ;;  %v7120_v58 = vld [vmem:[%s9479_s2 + $0x158] sm:$0xff]  ;;  %3212 = vmatpush.bf16.msra.mxu3 %v7127_v20 }
  0xe2   :  { %v376_v41 = vor.u32 %v374_v25, %v373_v32  ;;  %v377_v23 = vrot.slane %v373_v32, 4  ;;  %v986_v44 = vunpack.c.l.b16 %v899_v35  ;;  %v725_v63 = vshll.u32 %v7623_v22, 16  ;;  %3162 = vmatpush.bf16.msra.mxu2 %v7120_v58  ;;  %v7654_v18 = vld [vmem:[#allocation2 + $0x58] sm:$0xf]  ;;  %v586_v25 = vld [vmem:[#allocation2 + $0x64] sm:$0x1] }
  0xe3   :  { %1396 = vmatmul.bf16.gmra.mxu2 %v1082_v28  ;;  %v988_v53 = vunpack.c.l.b16 %v906_v43  ;;  %v379_v54 = vshrl.u32 %v264_v37, 16  ;;  %v382_v55 = vshll.u32 %v264_v37, 16  ;;  %v720_v57 = vrot.slane %v718_v47, 1 }
  0xe4   :  { %v512_v61 = vsel %vm7440_vm4, %v376_v41, %v511_v33  ;;  %v515_v62 = vsel %vm7447_vm5, %v377_v23, %v514_v34  ;;  %v641_v3 = vunpack.c.l.b16 %v7632_v42  ;;  %v1085_v4 = vpack.c.b16 %v639_v50, %v637_v21  ;;  %v570_v21 = vld [vmem:[#allocation2 + $0x60] sm:$0xf]  ;;  %v585_v50 = vld [vmem:[#allocation2 + $0x5c] sm:$0x1] }
  0xe5   :  { %513 = vst [vmem:[#allocation2 + $0x80] sm:$0xf] %v512_v61  ;;  %v856_v5 = vpack.c.b16 %v832_v36, %v831_v30  ;;  %v381_v8 = vrot.slane %v379_v54, 7  ;;  %v642_v11 = vunpack.c.l.b16 %v553_v51  ;;  %v1087_v14 = vpack.c.b16 %v831_v30, %v829_v19  ;;  %v539_v23 = vld [vmem:[#allocation2 + $0x60] sm:$0xf] }
  0xe6   :  { %516 = vst [vmem:[#allocation2 + $0x84] sm:$0x1] %v515_v62  ;;  %v727_v16 = vrot.slane %v725_v63, 1  ;;  %v643_v17 = vunpack.c.l.b16 %v7634_v48  ;;  %v644_v15 = vunpack.c.l.b16 %v554_v52  ;;  %v1084_v46 = vpack.c.b16 %v988_v53, %v986_v44  ;;  %v540_v53 = vld [vmem:[#allocation2 + $0x68] sm:$0xf]  ;;  %v7136_v62 = vld [vmem:[%s9479_s2 + $0x1d8] sm:$0xff] }
  0xe7   :  { %v384_v13 = vor.u32 %v382_v55, %v381_v8  ;;  %v385_v1 = vrot.slane %v381_v8, 4  ;;  %v721_v27 = vor.u32 %v720_v57, %v716_v45  ;;  %1352 = vmatmul.bf16.gmra.mxu1 %v1085_v4  ;;  %v665_v22 = vpack.c.b16 %v642_v11, %v641_v3  ;;  %v555_v54 = vld [vmem:[#allocation2 + $0x64] sm:$0x1]  ;;  %v556_v61 = vld [vmem:[#allocation2 + $0x6c] sm:$0x1]  ;;  %3260 = vmatpush.bf16.msra.mxu0 %v7136_v62 }
  0xe8   :  { %v728_v7 = vor.u32 %v727_v16, %v723_v49  ;;  %v908_v24 = vshrl.u32 %v7628_v38, 16  ;;  %v910_v19 = vshll.u32 %v7628_v38, 16  ;;  %v915_v30 = vshrl.u32 %v856_v5, 16 }
  0xe9   :  { %v518_v28 = vsel %vm7440_vm4, %v384_v13, %v517_v0  ;;  %v521_v29 = vsel %vm7447_vm5, %v385_v1, %v520_v10  ;;  %v917_v31 = vshll.u32 %v856_v5, 16  ;;  %v666_v32 = vpack.c.b16 %v644_v15, %v643_v17  ;;  %v523_v13 = vld [vmem:[#allocation2 + $0x90] sm:$0xf]  ;;  %v526_v1 = vld [vmem:[#allocation2 + $0x94] sm:$0x1] }
  0xea   :  { %519 = vst [vmem:[#allocation2 + $0x88] sm:$0xf] %v518_v28  ;;  %v912_v33 = vrot.slane %v910_v19, 1  ;;  %v833_v34 = vunpack.c.l.b16 %v7654_v18  ;;  %v834_v35 = vunpack.c.l.b16 %v585_v50  ;;  %v835_v38 = vunpack.c.l.b16 %v570_v21 }
  0xeb   :  { %522 = vst [vmem:[#allocation2 + $0x8c] sm:$0x1] %v521_v29  ;;  %v919_v36 = vrot.slane %v917_v31, 1  ;;  %v836_v43 = vunpack.c.l.b16 %v586_v25  ;;  %v209_v37 = vmax.f32 %v191_v26, 0.0  ;;  %v989_v45 = vunpack.c.l.b16 %v721_v27 }
  0xec   :  { %v991_v47 = vunpack.c.l.b16 %v728_v7  ;;  %v913_v48 = vor.u32 %v912_v33, %v908_v24  ;;  %v7668_v41 = vpack.c.b16 %v834_v35, %v833_v34  ;;  %v730_v52 = vshrl.u32 %v665_v22, 16  ;;  %v572_v24 = vld [vmem:[#allocation2 + $0x70] sm:$0xf] }
  0xed   :  { %v920_v44 = vor.u32 %v919_v36, %v915_v30  ;;  %v7670_v49 = vpack.c.b16 %v836_v43, %v835_v38  ;;  %v265_v51 = vpack.c.bf16 %v209_v37, %v209_v37  ;;  %v732_v57 = vshll.u32 %v665_v22, 16  ;;  %v571_v22 = vld [vmem:[#allocation2 + $0x68] sm:$0xf] }
  0xee   :  { %1494 = vmatmul.bf16.gmra.mxu0 %v1084_v46  ;;  %v990_v55 = vunpack.c.l.b16 %v913_v48  ;;  %v737_v58 = vshrl.u32 %v666_v32, 16  ;;  %v739_v60 = vshll.u32 %v666_v32, 16  ;;  %v645_v5 = vunpack.c.l.b16 %v539_v23  ;;  %v588_v32 = vld [vmem:[#allocation2 + $0x74] sm:$0x1] }
  0xef   :  { %1450 = vmatmul.bf16.gmra.mxu3 %v1087_v14  ;;  %v992_v0 = vunpack.c.l.b16 %v920_v44  ;;  %v387_v63 = vshrl.u32 %v265_v51, 16  ;;  %v390_v4 = vshll.u32 %v265_v51, 16  ;;  %v734_v8 = vrot.slane %v732_v57, 1  ;;  %v557_v44 = vld [vmem:[#allocation2 + $0x74] sm:$0x1] }
  0xf0   :  { %v741_v10 = vrot.slane %v739_v60, 1  ;;  %v646_v11 = vunpack.c.l.b16 %v555_v54  ;;  %v647_v16 = vunpack.c.l.b16 %v540_v53  ;;  %v1086_v15 = vpack.c.b16 %v991_v47, %v989_v45  ;;  %v541_v47 = vld [vmem:[#allocation2 + $0x70] sm:$0xf]  ;;  %v542_v53 = vld [vmem:[#allocation2 + $0x78] sm:$0xf] }
  0xf1   :  { %v1089_v18 = vpack.c.b16 %v643_v17, %v641_v3  ;;  %v389_v46 = vrot.slane %v387_v63, 7  ;;  %v648_v27 = vunpack.c.l.b16 %v556_v61  ;;  %v7677_v21 = vpack.c.b16 %v992_v0, %v990_v55  ;;  %v587_v3 = vld [vmem:[#allocation2 + $0x6c] sm:$0x1]  ;;  %v7119_v17 = vld [vmem:[%s9479_s2 + $0x150] sm:$0xff]  ;;  %v558_v54 = vld [vmem:[#allocation2 + $0x7c] sm:$0x1] }
  0xf2   :  { %v7679_v14 = vpack.c.b16 %v835_v38, %v833_v34  ;;  %v735_v50 = vor.u32 %v734_v8, %v730_v52  ;;  %v922_v7 = vshrl.u32 %v7668_v41, 16  ;;  %v667_v26 = vpack.c.b16 %v646_v11, %v645_v5  ;;  %3163 = vmatpush.bf16.msra.mxu2 %v7119_v17  ;;  %v7111_v55 = vld [vmem:[%s9479_s2 + $0x110] sm:$0xff] }
  0xf3   :  { %1401 = vmatmul.bf16.gmra.mxu2 %v1086_v15  ;;  %v392_v19 = vor.u32 %v390_v4, %v389_v46  ;;  %v393_v25 = vrot.slane %v389_v46, 4  ;;  %v924_v42 = vshll.u32 %v7668_v41, 16  ;;  %v742_v28 = vor.u32 %v741_v10, %v737_v58  ;;  %3114 = vmatpush.bf16.msra.mxu1 %v7111_v55  ;;  %v7126_v55 = vld [vmem:[%s9479_s2 + $0x188] sm:$0xff] }
  0xf4   :  { %v668_v29 = vpack.c.b16 %v648_v27, %v647_v16  ;;  %v929_v30 = vshrl.u32 %v7670_v49, 16  ;;  %v931_v31 = vshll.u32 %v7670_v49, 16  ;;  %v837_v36 = vunpack.c.l.b16 %v571_v22  ;;  %v7706_v22 = vld [vmem:[#allocation2] sm:$0xe]  ;;  %3213 = vmatpush.bf16.msra.mxu3 %v7126_v55  ;;  %v591_v55 = vld [vmem:[#allocation2 + $0x8c] sm:$0x1] }
  0xf5   :  { %v524_v33 = vsel %vm7440_vm4, %v392_v19, %v523_v13  ;;  %v527_v34 = vsel %vm7447_vm5, %v393_v25, %v526_v1  ;;  %v926_v35 = vrot.slane %v924_v42, 1  ;;  %v7695_v38 = vpack.c.b16 %v647_v16, %v645_v5  ;;  %v7702_v13 = vld [vmem:[#allocation2 + $0xc] sm:$0x1]  ;;  %v7135_v42 = vld [vmem:[%s9479_s2 + $0x1d0] sm:$0xff] }
  0xf6   :  { %525 = vst [vmem:[#allocation2 + $0x90] sm:$0xf] %v524_v33  ;;  %v933_v43 = vrot.slane %v931_v31, 1  ;;  %v838_v37 = vunpack.c.l.b16 %v587_v3  ;;  %v839_v45 = vunpack.c.l.b16 %v572_v24  ;;  %v840_v41 = vunpack.c.l.b16 %v588_v32  ;;  %v7708_v24 = vld [vmem:[#allocation2 + $0x8] sm:$0xe]  ;;  %3261 = vmatpush.bf16.msra.mxu0 %v7135_v42 }
  0xf7   :  { %528 = vst [vmem:[#allocation2 + $0x94] sm:$0x1] %v527_v34  ;;  %v927_v48 = vor.u32 %v926_v35, %v922_v7  ;;  %v744_v23 = vshrl.u32 %v667_v26, 16  ;;  %v746_v6 = vshll.u32 %v667_v26, 16  ;;  %1357 = vmatmul.bf16.gmra.mxu1 %v1089_v18  ;;  %v993_v9 = vunpack.c.l.b16 %v735_v50  ;;  %v7716_v3 = vld [vmem:[#allocation2 + $0x78] sm:$0xf] }
  0xf8   :  { %v995_v49 = vunpack.c.l.b16 %v742_v28  ;;  %v934_v51 = vor.u32 %v933_v43, %v929_v30  ;;  %v859_v52 = vpack.c.b16 %v838_v37, %v837_v36  ;;  %v751_v60 = vshrl.u32 %v668_v29, 16  ;;  %v589_v30 = vld [vmem:[#allocation2 + $0x7c] sm:$0x1]  ;;  %v590_v31 = vld [vmem:[#allocation2 + $0x84] sm:$0x1] }
  0xf9   :  { %v994_v57 = vunpack.c.l.b16 %v927_v48  ;;  %v748_v58 = vrot.slane %v746_v6, 1  ;;  %v753_v61 = vshll.u32 %v668_v29, 16  ;;  %v860_v0 = vpack.c.b16 %v840_v41, %v839_v45  ;;  %v7719_v29 = vld [vmem:[#allocation2 + $0x80] sm:$0xf]  ;;  %v544_v37 = vld [vmem:[#allocation2 + $0x88] sm:$0xf] }
  0xfa   :  { %v996_v62 = vunpack.c.l.b16 %v934_v51  ;;  %v649_v63 = vunpack.c.l.b16 %v541_v47  ;;  %v650_v4 = vunpack.c.l.b16 %v557_v44  ;;  %v651_v10 = vunpack.c.l.b16 %v542_v53  ;;  %v543_v43 = vld [vmem:[#allocation2 + $0x80] sm:$0xf]  ;;  %v559_v47 = vld [vmem:[#allocation2 + $0x84] sm:$0x1]  ;;  %v560_v48 = vld [vmem:[#allocation2 + $0x8c] sm:$0x1] }
  0xfb   :  { %v749_v5 = vor.u32 %v748_v58, %v744_v23  ;;  %v755_v8 = vrot.slane %v753_v61, 1  ;;  %v652_v11 = vunpack.c.l.b16 %v558_v54  ;;  %v1090_v16 = vpack.c.b16 %v995_v49, %v993_v9  ;;  %v7118_v54 = vld [vmem:[%s9479_s2 + $0x148] sm:$0xff] }
  0xfc   :  { %v7700_v15 = vpack.c.b16 %v839_v45, %v837_v36  ;;  %v669_v18 = vpack.c.b16 %v650_v4, %v649_v63  ;;  %v938_v46 = vshll.u32 %v859_v52, 16  ;;  %v7704_v1 = vpack.c.b16 %v996_v62, %v994_v57  ;;  %3164 = vmatpush.bf16.msra.mxu2 %v7118_v54 }
  0xfd   :  { %v756_v27 = vor.u32 %v755_v8, %v751_v60  ;;  %v936_v50 = vshrl.u32 %v859_v52, 16  ;;  %v943_v7 = vshrl.u32 %v860_v0, 16  ;;  %v7711_v19 = vpack.c.b16 %v651_v10, %v649_v63 }
  0xfe   :  { %1499 = vmatmul.bf16.gmra.mxu0 %v7677_v21  ;;  %v940_v25 = vrot.slane %v938_v46, 1  ;;  %v945_v26 = vshll.u32 %v860_v0, 16  ;;  %v758_v17 = vshrl.u32 %v669_v18, 16  ;;  %v997_v20 = vunpack.c.l.b16 %v749_v5 }
  0xff   :  { %1455 = vmatmul.bf16.gmra.mxu3 %v7679_v14  ;;  %v670_v28 = vpack.c.b16 %v652_v11, %v651_v10  ;;  %v841_v21 = vunpack.c.l.b16 %v7716_v3  ;;  %v1732_v32 = vunpack.c.l.b16 %v7702_v13  ;;  %v999_v33 = vunpack.c.l.b16 %v756_v27 }
 0x100   :  { %v947_v34 = vrot.slane %v945_v26, 1  ;;  %v842_v35 = vunpack.c.l.b16 %v589_v30  ;;  %v843_v36 = vunpack.c.l.b16 %v7719_v29  ;;  %v844_v45 = vunpack.c.l.b16 %v590_v31 }
 0x101   :  { %v760_v14 = vshll.u32 %v669_v18, 16  ;;  %v1777_v41 = vunpack.c.l.b16 %v7706_v22  ;;  %v1778_v23 = vunpack.c.l.b16 %v7708_v24  ;;  %v941_v6 = vor.u32 %v940_v25, %v936_v50 }
 0x102   :  { %v948_v44 = vor.u32 %v947_v34, %v943_v7  ;;  %v861_v9 = vpack.c.b16 %v842_v35, %v841_v21  ;;  %v765_v49 = vshrl.u32 %v670_v28, 16  ;;  %v862_v51 = vpack.c.b16 %v844_v45, %v843_v36  ;;  %v7110_v7 = vld [vmem:[%s9479_s2 + $0x108] sm:$0xff] }
 0x103   :  { %1406 = vmatmul.bf16.gmra.mxu2 %v1090_v16  ;;  %v762_v52 = vrot.slane %v760_v14, 1  ;;  %v767_v53 = vshll.u32 %v670_v28, 16  ;;  %v653_v57 = vunpack.c.l.b16 %v543_v43  ;;  %v7732_v58 = vpack.c.b16 %v999_v33, %v997_v20  ;;  %3115 = vmatpush.bf16.msra.mxu1 %v7110_v7 }
 0x104   :  { %v654_v60 = vunpack.c.l.b16 %v559_v47  ;;  %v655_v61 = vunpack.c.l.b16 %v544_v37  ;;  %v656_v62 = vunpack.c.l.b16 %v560_v48  ;;  %v952_v4 = vshll.u32 %v861_v9, 16  ;;  %v7746_v47 = vld [vmem:[#allocation2 + $0x8] sm:$0xf] }
 0x105   :  { %v763_v0 = vor.u32 %v762_v52, %v758_v17  ;;  %v769_v63 = vrot.slane %v767_v53, 1  ;;  %v959_v5 = vshll.u32 %v862_v51, 16  ;;  %v998_v8 = vunpack.c.l.b16 %v941_v6  ;;  %v576_v52 = vld [vmem:[#allocation2 + $0x90] sm:$0xf] }
 0x106   :  { %v1000_v10 = vunpack.c.l.b16 %v948_v44  ;;  %v671_v11 = vpack.c.b16 %v654_v60, %v653_v57  ;;  %v672_v16 = vpack.c.b16 %v656_v62, %v655_v61  ;;  %v950_v27 = vshrl.u32 %v861_v9, 16  ;;  %v7750_v9 = vld [vmem:[#allocation2 + $0xc] sm:$0x1] }
 0x107   :  { %v770_v18 = vor.u32 %v769_v63, %v765_v49  ;;  %v1001_v46 = vunpack.c.l.b16 %v763_v0  ;;  %v954_v50 = vrot.slane %v952_v4, 1  ;;  %1362 = vmatmul.bf16.gmra.mxu1 %v7695_v38  ;;  %v957_v22 = vshrl.u32 %v862_v51, 16  ;;  %v7134_v49 = vld [vmem:[%s9479_s2 + $0x1c8] sm:$0xff] }
 0x108   :  { %v961_v24 = vrot.slane %v959_v5, 1  ;;  %v772_v25 = vshrl.u32 %v671_v11, 16  ;;  %v774_v26 = vshll.u32 %v671_v11, 16  ;;  %v779_v17 = vshrl.u32 %v672_v16, 16  ;;  %v575_v51 = vld [vmem:[#allocation2 + $0x88] sm:$0xf]  ;;  %3262 = vmatpush.bf16.msra.mxu0 %v7134_v49 }
 0x109   :  { %v1003_v42 = vunpack.c.l.b16 %v770_v18  ;;  %v955_v3 = vor.u32 %v954_v50, %v950_v27  ;;  %v781_v20 = vshll.u32 %v672_v16, 16  ;;  %v1793_v30 = vpack.c.b16 %v1730_v12, %v1777_v41  ;;  %v7763_v5 = vld [vmem:[#allocation2 + $0x14] sm:$0x1]  ;;  %v1682_v18 = vld [vmem:[#allocation2 + $0x10] sm:$0xe] }
 0x10a   :  { %v962_v28 = vor.u32 %v961_v24, %v957_v22  ;;  %v776_v29 = vrot.slane %v774_v26, 1  ;;  %v1794_v38 = vpack.c.b16 %v1732_v32, %v1778_v23  ;;  %v7742_v31 = vpack.c.b16 %v1000_v10, %v998_v8  ;;  %v7752_v23 = vld [vmem:[#allocation2 + $0x10] sm:$0xf]  ;;  %v1681_v8 = vld [vmem:[#allocation2 + $0x8] sm:$0xe]  ;;  %v7125_v26 = vld [vmem:[%s9479_s2 + $0x180] sm:$0xff] }
 0x10b   :  { %v7744_v33 = vpack.c.b16 %v843_v36, %v841_v21  ;;  %v1002_v34 = vunpack.c.l.b16 %v955_v3  ;;  %v783_v35 = vrot.slane %v781_v20, 1  ;;  %v1810_v45 = vshrl.u32 %v1793_v30, 16  ;;  %v7772_v24 = vld [vmem:[#allocation2 + $0x10] sm:$0xf]  ;;  %3214 = vmatpush.bf16.msra.mxu3 %v7125_v26 }
 0x10c   :  { %v1004_v43 = vunpack.c.l.b16 %v962_v28  ;;  %v777_v37 = vor.u32 %v776_v29, %v772_v25  ;;  %v1812_v14 = vshll.u32 %v1793_v30, 16  ;;  %v7748_v48 = vpack.c.b16 %v655_v61, %v653_v57  ;;  %v592_v57 = vld [vmem:[#allocation2 + $0x94] sm:$0x1]  ;;  %v7117_v25 = vld [vmem:[%s9479_s2 + $0x140] sm:$0xff] }
 0x10d   :  { %v784_v6 = vor.u32 %v783_v35, %v779_v17  ;;  %v1817_v44 = vshrl.u32 %v1794_v38, 16  ;;  %v1819_v41 = vshll.u32 %v1794_v38, 16  ;;  %v7755_v21 = vpack.c.b16 %v1003_v42, %v1001_v46  ;;  %v7782_v28 = vld [vmem:[#allocation2 + $0x14] sm:$0x1]  ;;  %3165 = vmatpush.bf16.msra.mxu2 %v7117_v25 }
 0x10e   :  { %1504 = vmatmul.bf16.gmra.mxu0 %v7704_v1  ;;  %v7757_v36 = vpack.c.b16 %v1004_v43, %v1002_v34  ;;  %v1005_v53 = vunpack.c.l.b16 %v777_v37  ;;  %v1814_v54 = vrot.slane %v1812_v14, 1  ;;  %v845_v60 = vunpack.c.l.b16 %v575_v51  ;;  %v7109_v34 = vld [vmem:[%s9479_s2 + $0x100] sm:$0xff] }
 0x10f   :  { %1460 = vmatmul.bf16.gmra.mxu3 %v7700_v15  ;;  %v847_v61 = vunpack.c.l.b16 %v576_v52  ;;  %v1007_v62 = vunpack.c.l.b16 %v784_v6  ;;  %v1821_v1 = vrot.slane %v1819_v41, 1  ;;  %v846_v0 = vunpack.c.l.b16 %v591_v55  ;;  %3116 = vmatpush.bf16.msra.mxu1 %v7109_v34 }
 0x110   :  { %v848_v63 = vunpack.c.l.b16 %v592_v57  ;;  %v1815_v4 = vor.u32 %v1814_v54, %v1810_v45  ;;  %v1953_v10 = vunpack.c.l.b16 %v7746_v47  ;;  %v1954_v46 = vunpack.c.l.b16 %v7750_v9  ;;  %v7164_v47 = vld [vmem:[%s9479_s2 + $0x2b8] sm:$0xff] }
 0x111   :  { %v7766_v11 = vpack.c.b16 %v847_v61, %v845_v60  ;;  %v7768_v15 = vpack.c.b16 %v1007_v62, %v1005_v53  ;;  %v1822_v16 = vor.u32 %v1821_v1, %v1817_v44  ;;  %v863_v27 = vpack.c.b16 %v846_v0, %v845_v60  ;;  %4282 = vmatpush.bf16.msrb.mxu3 %v7164_v47 }
 0x112   :  { %v2145_v50 = vunpack.c.l.b16 %v1815_v4  ;;  %v2147_v7 = vunpack.c.h.b16 %v1815_v4  ;;  %v1955_v22 = vunpack.c.l.b16 %v7752_v23  ;;  %v1956_v17 = vunpack.c.l.b16 %v7763_v5  ;;  %v1635_v4 = vld [vmem:[#allocation2 + $0x10] sm:$0xe]  ;;  %v7844_v23 = vld [vmem:[#allocation2 + $0x18] sm:$0xf] }
 0x113   :  { %1411 = vmatmul.bf16.gmra.mxu2 %v7732_v58  ;;  %v2149_v42 = vunpack.c.l.b16 %v1822_v16  ;;  %v2151_v3 = vunpack.c.h.b16 %v1822_v16  ;;  %v2001_v20 = vunpack.c.l.b16 %v1681_v8  ;;  %v864_v29 = vpack.c.b16 %v848_v63, %v847_v61  ;;  %v7802_v61 = vld [vmem:[#allocation2 + $0x18] sm:$0xf] }
 0x114   :  { %v2209_v30 = vpack.c.b16 %v2145_v50, %v1729_v2  ;;  %v2211_v58 = vpack.c.b16 %v2147_v7, %v1730_v12  ;;  %v2002_v38 = vunpack.c.l.b16 %v1682_v18  ;;  %v1733_v2 = vunpack.c.l.b16 %v7772_v24  ;;  %v7893_v24 = vld [vmem:[#allocation2 + $0x2c] sm:$0x1] }
 0x115   :  { %v2213_v35 = vpack.c.b16 %v2149_v42, %v1731_v59  ;;  %v2215_v43 = vpack.c.b16 %v2151_v3, %v1732_v32  ;;  %v2017_v39 = vpack.c.b16 %v1954_v46, %v2001_v20  ;;  %v1734_v45 = vunpack.c.l.b16 %v7782_v28  ;;  %v7133_v20 = vld [vmem:[%s9479_s2 + $0x1c0] sm:$0xff] }
 0x116   :  { %v2277_v56 = vshrl.u32 %v2209_v30, 16  ;;  %v2280_v12 = vshll.u32 %v2209_v30, 16  ;;  %v2286_v37 = vshll.u32 %v2211_v58, 16  ;;  %v2018_v40 = vpack.c.b16 %v1956_v17, %v2002_v38  ;;  %v7817_v30 = vld [vmem:[#allocation2 + $0x1c] sm:$0x1]  ;;  %3263 = vmatpush.bf16.msra.mxu0 %v7133_v20 }
 0x117   :  { %v2305_v14 = vshrl.u32 %v2213_v35, 16  ;;  %v2308_v6 = vshll.u32 %v2213_v35, 16  ;;  %v2314_v44 = vshll.u32 %v2215_v43, 16  ;;  %1367 = vmatmul.bf16.gmra.mxu1 %v7711_v19  ;;  %v2034_v41 = vshrl.u32 %v2017_v39, 16 }
 0x118   :  { %v2279_v59 = vrot.slane %v2277_v56, 4  ;;  %v2282_v13 = vrot.slane %v2280_v12, 5  ;;  %v2288_v32 = vrot.slane %v2286_v37, 5  ;;  %v964_v52 = vshrl.u32 %v863_v27, 16  ;;  %v1636_v37 = vld [vmem:[#allocation2 + $0x18] sm:$0xe] }
 0x119   :  { %v2307_v49 = vrot.slane %v2305_v14, 4  ;;  %v2310_v51 = vrot.slane %v2308_v6, 5  ;;  %v966_v53 = vshll.u32 %v863_v27, 16  ;;  %v971_v55 = vshrl.u32 %v864_v29, 16 }
 0x11a   :  { %v2283_v54 = vor.u32 %v2282_v13, %v2279_v59  ;;  %v973_v57 = vshll.u32 %v864_v29, 16  ;;  %v2036_v60 = vshll.u32 %v2017_v39, 16  ;;  %v2316_v1 = vrot.slane %v2314_v44, 5 }
 0x11b   :  { %v2311_v19 = vor.u32 %v2310_v51, %v2307_v49  ;;  %v968_v0 = vrot.slane %v966_v53, 1  ;;  %v2043_v63 = vshll.u32 %v2018_v40, 16  ;;  %v2041_v27 = vshrl.u32 %v2018_v40, 16 }
 0x11c   :  { %v2284_v8 = vrot.slane %v2283_v54, 4  ;;  %v975_v16 = vrot.slane %v973_v57, 1  ;;  %v2038_v18 = vrot.slane %v2036_v60, 1  ;;  %v1735_v26 = vunpack.c.l.b16 %v7802_v61  ;;  %v1683_v57 = vld [vmem:[#allocation2 + $0x18] sm:$0xe] }
 0x11d   :  { %v2312_v50 = vrot.slane %v2311_v19, 4  ;;  %v969_v7 = vor.u32 %v968_v0, %v964_v52  ;;  %v2045_v25 = vrot.slane %v2043_v63, 1  ;;  %v1779_v58 = vunpack.c.l.b16 %v1635_v4  ;;  %v7156_v52 = vld [vmem:[%s9479_s2 + $0x278] sm:$0xff]  ;;  %v7852_v63 = vld [vmem:[#allocation2 + $0x20] sm:$0xf] }
 0x11e   :  { %1509 = vmatmul.bf16.gmra.mxu0 %v7742_v31  ;;  %v2289_v42 = vsel %vm7806_vm8, %v2284_v8, %v2288_v32  ;;  %v976_v3 = vor.u32 %v975_v16, %v971_v55  ;;  %v2039_v29 = vor.u32 %v2038_v18, %v2034_v41  ;;  %v1736_v40 = vunpack.c.l.b16 %v7817_v30  ;;  %4233 = vmatpush.bf16.msrb.mxu2 %v7156_v52 }
 0x11f   :  { %1465 = vmatmul.bf16.gmra.mxu3 %v7744_v33  ;;  %v2317_v38 = vsel %vm7806_vm8, %v2312_v50, %v2316_v1  ;;  %v2789_v34 = vunpack.c.l.b16 %v2289_v42  ;;  %v1006_v35 = vunpack.c.l.b16 %v969_v7  ;;  %v2046_v31 = vor.u32 %v2045_v25, %v2041_v27  ;;  %v7854_v27 = vld [vmem:[#allocation2 + $0x24] sm:$0x1] }
 0x120   :  { %v2793_v43 = vunpack.c.l.b16 %v2317_v38  ;;  %v1008_v39 = vunpack.c.l.b16 %v976_v3  ;;  %v2146_v56 = vunpack.c.l.b16 %v2039_v29  ;;  %v2148_v12 = vunpack.c.h.b16 %v2039_v29  ;;  %v1684_v3 = vld [vmem:[#allocation2 + $0x20] sm:$0xe] }
 0x121   :  { %v2150_v14 = vunpack.c.l.b16 %v2046_v31  ;;  %v2152_v6 = vunpack.c.h.b16 %v2046_v31  ;;  %v2790_v44 = vunpack.c.h.b16 %v2289_v42  ;;  %v2794_v32 = vunpack.c.h.b16 %v2317_v38 }
 0x122   :  { %v7823_v59 = vpack.c.b16 %v2793_v43, %v2789_v34  ;;  %v2210_v33 = vpack.c.b16 %v2146_v56, %v1953_v10  ;;  %v2212_v13 = vpack.c.b16 %v2148_v12, %v1954_v46  ;;  %v7830_v41 = vpack.c.b16 %v1008_v39, %v1006_v35  ;;  %v7859_v34 = vld [vmem:[#allocation2 + $0x20] sm:$0xf]  ;;  %v7862_v56 = vld [vmem:[#allocation2 + $0x24] sm:$0x1] }
 0x123   :  { %1416 = vmatmul.bf16.gmra.mxu2 %v7755_v21  ;;  %v2214_v49 = vpack.c.b16 %v2150_v14, %v1955_v22  ;;  %v2216_v51 = vpack.c.b16 %v2152_v6, %v1956_v17  ;;  %v1780_v9 = vunpack.c.l.b16 %v1636_v37  ;;  %v1795_v53 = vpack.c.b16 %v1734_v45, %v1779_v58  ;;  %v7846_v22 = vld [vmem:[#allocation2 + $0x1c] sm:$0x1] }
 0x124   :  { %v2291_v10 = vshrl.u32 %v2210_v33, 16  ;;  %v2294_v46 = vshll.u32 %v2210_v33, 16  ;;  %v2300_v21 = vshll.u32 %v2212_v13, 16  ;;  %v7850_v0 = vpack.c.b16 %v2794_v32, %v2790_v44 }
 0x125   :  { %v2319_v5 = vshrl.u32 %v2214_v49, 16  ;;  %v2322_v17 = vshll.u32 %v2214_v49, 16  ;;  %v2328_v54 = vshll.u32 %v2216_v51, 16  ;;  %v1796_v55 = vpack.c.b16 %v1736_v40, %v1780_v9 }
 0x126   :  { %v2293_v60 = vrot.slane %v2291_v10, 4  ;;  %v2296_v19 = vrot.slane %v2294_v46, 5  ;;  %v2302_v1 = vrot.slane %v2300_v21, 5  ;;  %v1824_v16 = vshrl.u32 %v1795_v53, 16  ;;  %v7148_v21 = vld [vmem:[%s9479_s2 + $0x238] sm:$0xff] }
 0x127   :  { %v2321_v4 = vrot.slane %v2319_v5, 4  ;;  %v2324_v8 = vrot.slane %v2322_v17, 5  ;;  %v1826_v18 = vshll.u32 %v1795_v53, 16  ;;  %1372 = vmatmul.bf16.gmra.mxu1 %v7748_v48  ;;  %v2330_v7 = vrot.slane %v2328_v54, 5  ;;  %v7172_v53 = vld [vmem:[%s9479_s2 + $0x2f8] sm:$0xff] }
 0x128   :  { %v2297_v50 = vor.u32 %v2296_v19, %v2293_v60  ;;  %v1831_v25 = vshrl.u32 %v1796_v55, 16  ;;  %v1833_v42 = vshll.u32 %v1796_v55, 16  ;;  %v1957_v58 = vunpack.c.l.b16 %v7844_v23  ;;  %4184 = vmatpush.bf16.msrb.mxu1 %v7148_v21  ;;  %4331 = vmatpush.bf16.msrb.mxu0 %v7172_v53  ;;  %v7155_v53 = vld [vmem:[%s9479_s2 + $0x270] sm:$0xff] }
 0x129   :  { %v2325_v20 = vor.u32 %v2324_v8, %v2321_v4  ;;  %v1828_v29 = vrot.slane %v1826_v18, 1  ;;  %v1958_v38 = vunpack.c.l.b16 %v7846_v22  ;;  %v1959_v43 = vunpack.c.l.b16 %v7852_v63  ;;  %4234 = vmatpush.bf16.msrb.mxu2 %v7155_v53 }
 0x12a   :  { %v2298_v35 = vrot.slane %v2297_v50, 4  ;;  %v1835_v31 = vrot.slane %v1833_v42, 1  ;;  %v2003_v39 = vunpack.c.l.b16 %v1683_v57  ;;  %v1960_v37 = vunpack.c.l.b16 %v7854_v27  ;;  %v1637_v50 = vld [vmem:[#allocation2 + $0x20] sm:$0xe] }
 0x12b   :  { %v2326_v48 = vrot.slane %v2325_v20, 4  ;;  %v1829_v12 = vor.u32 %v1828_v29, %v1824_v16  ;;  %v2004_v14 = vunpack.c.l.b16 %v1684_v3  ;;  %v1737_v13 = vunpack.c.l.b16 %v7859_v34  ;;  %v7900_v29 = vld [vmem:[#allocation2 + $0x28] sm:$0xf] }
 0x12c   :  { %v2303_v6 = vsel %vm7806_vm8, %v2298_v35, %v2302_v1  ;;  %v1836_v44 = vor.u32 %v1835_v31, %v1831_v25  ;;  %v2019_v33 = vpack.c.b16 %v1958_v38, %v2003_v39  ;;  %v1738_v52 = vunpack.c.l.b16 %v7862_v56  ;;  %v1638_v1 = vld [vmem:[#allocation2 + $0x28] sm:$0xe] }
 0x12d   :  { %v2331_v32 = vsel %vm7806_vm8, %v2326_v48, %v2330_v7  ;;  %v2153_v49 = vunpack.c.l.b16 %v1829_v12  ;;  %v2155_v51 = vunpack.c.h.b16 %v1829_v12  ;;  %v2791_v47 = vunpack.c.l.b16 %v2303_v6  ;;  %v7898_v7 = vld [vmem:[#allocation2 + $0x28] sm:$0xf]  ;;  %v7905_v12 = vld [vmem:[#allocation2 + $0x2c] sm:$0x1] }
 0x12e   :  { %1514 = vmatmul.bf16.gmra.mxu0 %v7757_v36  ;;  %v2795_v9 = vunpack.c.l.b16 %v2331_v32  ;;  %v2157_v10 = vunpack.c.l.b16 %v1836_v44  ;;  %v2159_v46 = vunpack.c.h.b16 %v1836_v44  ;;  %v2796_v17 = vunpack.c.h.b16 %v2331_v32  ;;  %v7162_v34 = vld [vmem:[%s9479_s2 + $0x2a8] sm:$0xff] }
 0x12f   :  { %1470 = vmatmul.bf16.gmra.mxu3 %v7766_v11  ;;  %v2217_v5 = vpack.c.b16 %v2153_v49, %v1733_v2  ;;  %v2219_v36 = vpack.c.b16 %v2155_v51, %v1734_v45  ;;  %v2020_v54 = vpack.c.b16 %v1960_v37, %v2004_v14  ;;  %v2792_v11 = vunpack.c.h.b16 %v2303_v6 }
 0x130   :  { %v7887_v55 = vpack.c.b16 %v2795_v9, %v2791_v47  ;;  %v2221_v57 = vpack.c.b16 %v2157_v10, %v1735_v26  ;;  %v2223_v60 = vpack.c.b16 %v2159_v46, %v1736_v40  ;;  %v2048_v19 = vshrl.u32 %v2019_v33, 16  ;;  %v7908_v47 = vld [vmem:[#allocation2 + $0x30] sm:$0xf] }
 0x131   :  { %v2333_v2 = vshrl.u32 %v2217_v5, 16  ;;  %v2336_v28 = vshll.u32 %v2217_v5, 16  ;;  %v2342_v45 = vshll.u32 %v2219_v36, 16  ;;  %v2050_v18 = vshll.u32 %v2019_v33, 16  ;;  %v7163_v5 = vld [vmem:[%s9479_s2 + $0x2b0] sm:$0xff] }
 0x132   :  { %v2361_v4 = vshrl.u32 %v2221_v57, 16  ;;  %v2364_v8 = vshll.u32 %v2221_v57, 16  ;;  %v2370_v16 = vshll.u32 %v2223_v60, 16  ;;  %v7896_v40 = vpack.c.b16 %v2796_v17, %v2792_v11  ;;  %4283 = vmatpush.bf16.msrb.mxu3 %v7163_v5 }
 0x133   :  { %1421 = vmatmul.bf16.gmra.mxu2 %v7768_v15  ;;  %v2335_v61 = vrot.slane %v2333_v2, 4  ;;  %v2338_v26 = vrot.slane %v2336_v28, 5  ;;  %v2344_v30 = vrot.slane %v2342_v45, 5  ;;  %v2052_v3 = vrot.slane %v2050_v18, 1 }
 0x134   :  { %v2363_v25 = vrot.slane %v2361_v4, 4  ;;  %v2366_v42 = vrot.slane %v2364_v8, 5  ;;  %v2055_v20 = vshrl.u32 %v2020_v54, 16  ;;  %v7902_v35 = vpop.f32.mrf.mxu1  ;;  %v2372_v39 = vrot.slane %v2370_v16, 5 }
 0x135   :  { %v2339_v31 = vor.u32 %v2338_v26, %v2335_v61  ;;  %v2057_v48 = vshll.u32 %v2020_v54, 16  ;;  %v1740_v15 = vunpack.c.l.b16 %v7893_v24  ;;  %v2053_v6 = vor.u32 %v2052_v3, %v2048_v19 }
 0x136   :  { %v2367_v14 = vor.u32 %v2366_v42, %v2363_v25  ;;  %v1781_v44 = vunpack.c.l.b16 %v1637_v50  ;;  %v1782_v33 = vunpack.c.l.b16 %v1638_v1  ;;  %v1739_v51 = vunpack.c.l.b16 %v7898_v7  ;;  %4284 = vmatpush.bf16.msrb.mxu3 %v7162_v34 }
 0x137   :  { %v2340_v32 = vrot.slane %v2339_v31, 4  ;;  %v2059_v49 = vrot.slane %v2057_v48, 1  ;;  %v1961_v9 = vunpack.c.l.b16 %v7900_v29  ;;  %3117 = vmatmul.bf16.vlgmr.msra.gmra.mxu1 %v7823_v59  ;;  %v2154_v46 = vunpack.c.l.b16 %v2053_v6 }
 0x138   :  { %v2368_v10 = vrot.slane %v2367_v14, 4  ;;  %v2156_v21 = vunpack.c.h.b16 %v2053_v6  ;;  %v1962_v36 = vunpack.c.l.b16 %v7905_v12  ;;  %v1797_v59 = vpack.c.b16 %v1738_v52, %v1781_v44  ;;  %v7171_v44 = vld [vmem:[%s9479_s2 + $0x2f0] sm:$0xff] }
 0x139   :  { %v2345_v17 = vsel %vm7806_vm8, %v2340_v32, %v2344_v30  ;;  %v2060_v54 = vor.u32 %v2059_v49, %v2055_v20  ;;  %v1798_v57 = vpack.c.b16 %v1740_v15, %v1782_v33  ;;  %v2218_v11 = vpack.c.b16 %v2154_v46, %v1957_v58  ;;  %v1685_v20 = vld [vmem:[#allocation2 + $0x28] sm:$0xe]  ;;  %v7950_v33 = vld [vmem:[#allocation2 + $0x30] sm:$0xf]  ;;  %v7953_v46 = vld [vmem:[#allocation2 + $0x34] sm:$0x1]  ;;  %4332 = vmatpush.bf16.msrb.mxu0 %v7171_v44 }
 0x13a   :  { %v2373_v60 = vsel %vm7806_vm8, %v2368_v10, %v2372_v39  ;;  %v2220_v2 = vpack.c.b16 %v2156_v21, %v1958_v38  ;;  %v1963_v28 = vunpack.c.l.b16 %v7908_v47  ;;  %v2797_v45 = vunpack.c.l.b16 %v2345_v17  ;;  %v7938_v38 = vld [vmem:[#allocation2 + $0x34] sm:$0x1] }
 0x13b   :  { %v2801_v19 = vunpack.c.l.b16 %v2373_v60  ;;  %v2158_v1 = vunpack.c.l.b16 %v2060_v54  ;;  %v2160_v4 = vunpack.c.h.b16 %v2060_v54  ;;  %v2347_v8 = vshrl.u32 %v2218_v11, 16 }
 0x13c   :  { %v2350_v16 = vshll.u32 %v2218_v11, 16  ;;  %v2356_v18 = vshll.u32 %v2220_v2, 16  ;;  %v2802_v50 = vunpack.c.h.b16 %v2373_v60  ;;  %v7932_v61 = vpop.f32.mrf.mxu1  ;;  %v2798_v58 = vunpack.c.h.b16 %v2345_v17 }
 0x13d   :  { %v2857_v26 = vpack.c.b16 %v2801_v19, %v2797_v45  ;;  %v2222_v23 = vpack.c.b16 %v2158_v1, %v1959_v43  ;;  %v2224_v22 = vpack.c.b16 %v2160_v4, %v1960_v37  ;;  %v2349_v30 = vrot.slane %v2347_v8, 4  ;;  %v1686_v43 = vld [vmem:[#allocation2 + $0x30] sm:$0xe] }
 0x13e   :  { %1519 = vmatmul.bf16.gmra.mxu0 %v7830_v41  ;;  %v2352_v25 = vrot.slane %v2350_v16, 5  ;;  %v2358_v42 = vrot.slane %v2356_v18, 5  ;;  %v1838_v3 = vshrl.u32 %v1797_v59, 16  ;;  %v1840_v63 = vshll.u32 %v1797_v59, 16  ;;  %v7147_v41 = vld [vmem:[%s9479_s2 + $0x230] sm:$0xff] }
 0x13f   :  { %3215 = vmatmul.bf16.vlgmr.msra.gmra.mxu3 %v7887_v55  ;;  %v2375_v31 = vshrl.u32 %v2222_v23, 16  ;;  %v2378_v39 = vshll.u32 %v2222_v23, 16  ;;  %v2384_v48 = vshll.u32 %v2224_v22, 16  ;;  %v7942_v27 = vpack.c.b16 %v2802_v50, %v2798_v58  ;;  %4185 = vmatpush.bf16.msrb.mxu1 %v7147_v41 }
 0x140   :  { %v2353_v14 = vor.u32 %v2352_v25, %v2349_v30  ;;  %v1845_v37 = vshrl.u32 %v1798_v57, 16  ;;  %v1847_v6 = vshll.u32 %v1798_v57, 16  ;;  %v1842_v49 = vrot.slane %v1840_v63, 1 }
 0x141   :  { %v2377_v55 = vrot.slane %v2375_v31, 4  ;;  %v2380_v32 = vrot.slane %v2378_v39, 5  ;;  %v1964_v10 = vunpack.c.l.b16 %v7938_v38  ;;  %v2005_v17 = vunpack.c.l.b16 %v1685_v20 }
 0x142   :  { %v1436_v21 = vpop.f32.mrf.mxu3  ;;  %v2354_v53 = vrot.slane %v2353_v14, 4  ;;  %v1849_v5 = vrot.slane %v1847_v6, 1  ;;  %v2006_v54 = vunpack.c.l.b16 %v1686_v43  ;;  %v2386_v57 = vrot.slane %v2384_v48, 5 }
 0x143   :  { %3166 = vmatmul.bf16.vlgmr.msra.gmra.mxu2 %v7850_v0  ;;  %v2381_v59 = vor.u32 %v2380_v32, %v2377_v55  ;;  %v1843_v60 = vor.u32 %v1842_v49, %v1838_v3  ;;  %v1741_v11 = vunpack.c.l.b16 %v7950_v33  ;;  %v7961_v19 = vpack.c.b16 %v1962_v36, %v2005_v17  ;;  %v7988_v55 = vld [vmem:[#allocation2 + $0x38] sm:$0xf]  ;;  %v1639_v17 = vld [vmem:[#allocation2 + $0x30] sm:$0xe] }
 0x144   :  { %v2359_v2 = vsel %vm7806_vm8, %v2354_v53, %v2358_v42  ;;  %v1850_v45 = vor.u32 %v1849_v5, %v1845_v37  ;;  %v1742_v1 = vunpack.c.l.b16 %v7953_v46  ;;  %v7964_v4 = vpop.f32.mrf.mxu1  ;;  %v7968_v18 = vpack.c.b16 %v1964_v10, %v2006_v54  ;;  %v7992_v5 = vld [vmem:[#allocation2 + $0x3c] sm:$0x1] }
 0x145   :  { %v2382_v8 = vrot.slane %v2381_v59, 4  ;;  %v2161_v16 = vunpack.c.l.b16 %v1843_v60  ;;  %v2163_v0 = vunpack.c.h.b16 %v1843_v60  ;;  %v2799_v23 = vunpack.c.l.b16 %v2359_v2 }
 0x146   :  { %v1387_v50 = vpop.f32.mrf.mxu2  ;;  %v2165_v22 = vunpack.c.l.b16 %v1850_v45  ;;  %v2167_v58 = vunpack.c.h.b16 %v1850_v45  ;;  %v2800_v30 = vunpack.c.h.b16 %v2359_v2  ;;  %v2062_v24 = vshrl.u32 %v7961_v19, 16  ;;  %v1640_v2 = vld [vmem:[#allocation2 + $0x38] sm:$0xe] }
 0x147   :  { %v1388_v25 = vadd.f32 %v1387_v50, %v7902_v35  ;;  %v2387_v42 = vsel %vm7806_vm8, %v2382_v8, %v2386_v57  ;;  %v2225_v3 = vpack.c.b16 %v2161_v16, %v1737_v13  ;;  %v2227_v20 = vpack.c.b16 %v2163_v0, %v1738_v52  ;;  %3122 = vmatmul.bf16.gmra.mxu1 %v2857_v26  ;;  %v7154_v35 = vld [vmem:[%s9479_s2 + $0x268] sm:$0xff] }
 0x148   :  { %v2803_v31 = vunpack.c.l.b16 %v2387_v42  ;;  %v2229_v39 = vpack.c.b16 %v2165_v22, %v1739_v51  ;;  %v2231_v48 = vpack.c.b16 %v2167_v58, %v1740_v15  ;;  %v2804_v63 = vunpack.c.h.b16 %v2387_v42  ;;  %4235 = vmatpush.bf16.msrb.mxu2 %v7154_v35 }
 0x149   :  { %v1437_v13 = vadd.f32 %v1436_v21, %v1388_v25  ;;  %v2389_v56 = vshrl.u32 %v2225_v3, 16  ;;  %v2392_v52 = vshll.u32 %v2225_v3, 16  ;;  %v2398_v26 = vshll.u32 %v2227_v20, 16 }
 0x14a   :  { %v1438_v43 = vpop.f32.mrf.mxu3  ;;  %v2417_v14 = vshrl.u32 %v2229_v39, 16  ;;  %v2420_v7 = vshll.u32 %v2229_v39, 16  ;;  %v2426_v51 = vshll.u32 %v2231_v48, 16  ;;  %v2859_v37 = vpack.c.b16 %v2803_v31, %v2799_v23 }
 0x14b   :  { %v1485_v15 = vpop.f32.mrf.mxu0  ;;  %v2391_v6 = vrot.slane %v2389_v56, 4  ;;  %v2394_v41 = vrot.slane %v2392_v52, 5  ;;  %v2400_v44 = vrot.slane %v2398_v26, 5  ;;  %v7990_v53 = vpack.c.b16 %v2804_v63, %v2800_v30  ;;  %v8005_v30 = vld [vmem:[#allocation2 + $0x3c] sm:$0x1] }
 0x14c   :  { %v1486_v32 = vadd.f32 %v1485_v15, %v1437_v13  ;;  %v2419_v49 = vrot.slane %v2417_v14, 4  ;;  %v2422_v21 = vrot.slane %v2420_v7, 5  ;;  %v2064_v59 = vshll.u32 %v7961_v19, 16  ;;  %v8002_v23 = vpop.f32.mrf.mxu1  ;;  %v7146_v7 = vld [vmem:[%s9479_s2 + $0x228] sm:$0xff] }
 0x14d   :  { %v2395_v54 = vor.u32 %v2394_v41, %v2391_v6  ;;  %v2069_v57 = vshrl.u32 %v7968_v18, 16  ;;  %v2071_v60 = vshll.u32 %v7968_v18, 16  ;;  %v2428_v0 = vrot.slane %v2426_v51, 5  ;;  %v7170_v51 = vld [vmem:[%s9479_s2 + $0x2e8] sm:$0xff]  ;;  %4186 = vmatpush.bf16.msrb.mxu1 %v7146_v7 }
 0x14e   :  { %1525 = vst [vmem:[%s9481_s3] sm:$0xff] %v1486_v32  ;;  %v1563_v45 = vmul.f32 %v1486_v32, %v1486_v32  ;;  %3264 = vmatmul.bf16.vlgmr.msra.gmra.mxu0 %v7896_v40  ;;  %v1389_v8 = vpop.f32.mrf.mxu2  ;;  %v2423_v16 = vor.u32 %v2422_v21, %v2419_v49  ;;  %v1743_v50 = vunpack.c.l.b16 %v7988_v55  ;;  %v2066_v18 = vrot.slane %v2064_v59, 1 }
 0x14f   :  { %v1390_v19 = vadd.f32 %v1389_v8, %v7932_v61  ;;  %3220 = vmatmul.bf16.gmra.mxu3 %v2859_v37  ;;  %v2396_v22 = vrot.slane %v2395_v54, 4  ;;  %v2073_v58 = vrot.slane %v2071_v60, 1  ;;  %v1744_v42 = vunpack.c.l.b16 %v7992_v5  ;;  %4333 = vmatpush.bf16.msrb.mxu0 %v7170_v51 }
 0x150   :  { %v2424_v25 = vrot.slane %v2423_v16, 4  ;;  %v1783_v3 = vunpack.c.l.b16 %v1639_v17  ;;  %v1784_v40 = vunpack.c.l.b16 %v1640_v2  ;;  %v2067_v39 = vor.u32 %v2066_v18, %v2062_v24 }
 0x151   :  { %v1439_v20 = vadd.f32 %v1438_v43, %v1390_v19  ;;  %v2401_v31 = vsel %vm7806_vm8, %v2396_v22, %v2400_v44  ;;  %v2074_v48 = vor.u32 %v2073_v58, %v2069_v57  ;;  %v1966_v13 = vunpack.c.l.b16 %v8005_v30  ;;  %v8040_v22 = vld [vmem:[#allocation2 + $0x38] sm:$0xf] }
 0x152   :  { %v1441_v63 = vpop.f32.mrf.mxu3  ;;  %v2429_v61 = vsel %vm7806_vm8, %v2424_v25, %v2428_v0  ;;  %v2805_v35 = vunpack.c.l.b16 %v2401_v31  ;;  %v2806_v34 = vunpack.c.h.b16 %v2401_v31  ;;  %v2162_v52 = vunpack.c.l.b16 %v2067_v39  ;;  %v8043_v25 = vld [vmem:[#allocation2 + $0x40] sm:$0xf] }
 0x153   :  { %v1487_v56 = vpop.f32.mrf.mxu0  ;;  %3171 = vmatmul.bf16.gmra.mxu2 %v7942_v27  ;;  %v2164_v26 = vunpack.c.h.b16 %v2067_v39  ;;  %v2166_v14 = vunpack.c.l.b16 %v2074_v48  ;;  %v8016_v43 = vpack.c.b16 %v1742_v1, %v1783_v3  ;;  %v2809_v15 = vunpack.c.l.b16 %v2429_v61  ;;  %v8046_v39 = vld [vmem:[#allocation2 + $0x44] sm:$0x1] }
 0x154   :  { %v1488_v24 = vadd.f32 %v1487_v56, %v1439_v20  ;;  %v2168_v37 = vunpack.c.h.b16 %v2074_v48  ;;  %v2810_v6 = vunpack.c.h.b16 %v2429_v61  ;;  %v2226_v27 = vpack.c.b16 %v2162_v52, %v1961_v9  ;;  %v8038_v8 = vpop.f32.mrf.mxu1 }
 0x155   :  { %v2228_v41 = vpack.c.b16 %v2164_v26, %v1962_v36  ;;  %v2230_v44 = vpack.c.b16 %v2166_v14, %v1963_v28  ;;  %v1800_v49 = vpack.c.b16 %v1744_v42, %v1784_v40  ;;  %v2861_v59 = vpack.c.b16 %v2809_v15, %v2805_v35  ;;  %v1687_v26 = vld [vmem:[#allocation2 + $0x38] sm:$0xe] }
 0x156   :  { %1526 = vst [vmem:[%s9481_s3 + $0x8] sm:$0xff] %v1488_v24  ;;  %v1541_v21 = vadd.f32 %v1488_v24, %v1486_v32  ;;  %v1564_v17 = vmul.f32 %v1488_v24, %v1488_v24  ;;  %v1392_v54 = vpop.f32.mrf.mxu2  ;;  %v2232_v29 = vpack.c.b16 %v2168_v37, %v1964_v10  ;;  %v2403_v9 = vshrl.u32 %v2226_v27, 16 }
 0x157   :  { %v1393_v12 = vadd.f32 %v1392_v54, %v7964_v4  ;;  %v2406_v47 = vshll.u32 %v2226_v27, 16  ;;  %v2412_v36 = vshll.u32 %v2228_v41, 16  ;;  %3127 = vmatmul.bf16.gmra.mxu1 %v2861_v59  ;;  %v2431_v57 = vshrl.u32 %v2230_v44, 16 }
 0x158   :  { %v1579_v28 = vadd.f32 %v1564_v17, %v1563_v45  ;;  %v2434_v60 = vshll.u32 %v2230_v44, 16  ;;  %v2440_v2 = vshll.u32 %v2232_v29, 16  ;;  %v2405_v16 = vrot.slane %v2403_v9, 4  ;;  %v1688_v44 = vld [vmem:[#allocation2 + $0x40] sm:$0xe] }
 0x159   :  { %v1442_v32 = vadd.f32 %v1441_v63, %v1393_v12  ;;  %v2408_v0 = vrot.slane %v2406_v47, 5  ;;  %v2862_v19 = vpack.c.b16 %v2810_v6, %v2806_v34  ;;  %v2414_v10 = vrot.slane %v2412_v36, 5 }
 0x15a   :  { %v1443_v38 = vpop.f32.mrf.mxu3  ;;  %v2433_v4 = vrot.slane %v2431_v57, 4  ;;  %v2436_v18 = vrot.slane %v2434_v60, 5  ;;  %v1852_v58 = vshrl.u32 %v8016_v43, 16  ;;  %v1854_v40 = vshll.u32 %v8016_v43, 16  ;;  %v7153_v60 = vld [vmem:[%s9479_s2 + $0x260] sm:$0xff] }
 0x15b   :  { %v1490_v45 = vpop.f32.mrf.mxu0  ;;  %v2409_v3 = vor.u32 %v2408_v0, %v2405_v16  ;;  %v1859_v20 = vshrl.u32 %v1800_v49, 16  ;;  %v1861_v31 = vshll.u32 %v1800_v49, 16  ;;  %v2442_v61 = vrot.slane %v2440_v2, 5  ;;  %4236 = vmatpush.bf16.msrb.mxu2 %v7153_v60 }
 0x15c   :  { %v1491_v48 = vadd.f32 %v1490_v45, %v1442_v32  ;;  %v2437_v63 = vor.u32 %v2436_v18, %v2433_v4  ;;  %v1965_v35 = vunpack.c.l.b16 %v8040_v22  ;;  %v1856_v56 = vrot.slane %v1854_v40, 1  ;;  %v8066_v2 = vpop.f32.mrf.mxu1 }
 0x15d   :  { %v2410_v34 = vrot.slane %v2409_v3, 4  ;;  %v1863_v52 = vrot.slane %v1861_v31, 1  ;;  %v1967_v14 = vunpack.c.l.b16 %v8043_v25  ;;  %v1968_v15 = vunpack.c.l.b16 %v8046_v39 }
 0x15e   :  { %1527 = vst [vmem:[%s9481_s3 + $0x10] sm:$0xff] %v1491_v48  ;;  %v1542_v43 = vadd.f32 %v1541_v21, %v1491_v48  ;;  %v1565_v7 = vmul.f32 %v1491_v48, %v1491_v48  ;;  %3269 = vmatmul.bf16.gmra.mxu0 %v7990_v53  ;;  %v1394_v51 = vpop.f32.mrf.mxu2  ;;  %v2438_v24 = vrot.slane %v2437_v63, 4  ;;  %v1857_v27 = vor.u32 %v1856_v56, %v1852_v58  ;;  %v8084_v56 = vld [vmem:[#allocation2 + $0x50] sm:$0xf] }
 0x15f   :  { %v1395_v37 = vadd.f32 %v1394_v51, %v8002_v23  ;;  %v2415_v6 = vsel %vm7806_vm8, %v2410_v34, %v2414_v10  ;;  %v1864_v41 = vor.u32 %v1863_v52, %v1859_v20  ;;  %v2007_v54 = vunpack.c.l.b16 %v1687_v26  ;;  %v8086_v51 = vld [vmem:[#allocation2 + $0x54] sm:$0x1] }
 0x160   :  { %v1580_v49 = vadd.f32 %v1579_v28, %v1565_v7  ;;  %v2443_v17 = vsel %vm7806_vm8, %v2438_v24, %v2442_v61  ;;  %v2807_v21 = vunpack.c.l.b16 %v2415_v6  ;;  %v2169_v29 = vunpack.c.l.b16 %v1857_v27  ;;  %v7161_v28 = vld [vmem:[%s9479_s2 + $0x2a0] sm:$0xff] }
 0x161   :  { %v1444_v59 = vadd.f32 %v1443_v38, %v1395_v37  ;;  %v2811_v53 = vunpack.c.l.b16 %v2443_v17  ;;  %v2171_v12 = vunpack.c.h.b16 %v1857_v27  ;;  %v2173_v47 = vunpack.c.l.b16 %v1864_v41  ;;  %4285 = vmatpush.bf16.msrb.mxu3 %v7161_v28 }
 0x162   :  { %v1446_v9 = vpop.f32.mrf.mxu3  ;;  %v2175_v36 = vunpack.c.h.b16 %v1864_v41  ;;  %v2808_v23 = vunpack.c.h.b16 %v2415_v6  ;;  %v2008_v57 = vunpack.c.l.b16 %v1688_v44  ;;  %v2233_v0 = vpack.c.b16 %v2169_v29, %v1741_v11  ;;  %v1641_v41 = vld [vmem:[#allocation2 + $0x50] sm:$0xe] }
 0x163   :  { %v1492_v32 = vpop.f32.mrf.mxu0  ;;  %v2863_v16 = vpack.c.b16 %v2811_v53, %v2807_v21  ;;  %3176 = vmatmul.bf16.gmra.mxu2 %v2862_v19  ;;  %v2235_v38 = vpack.c.b16 %v2171_v12, %v1742_v1  ;;  %v2812_v10 = vunpack.c.h.b16 %v2443_v17  ;;  %v2237_v18 = vpack.c.b16 %v2173_v47, %v1743_v50 }
 0x164   :  { %v1493_v4 = vadd.f32 %v1492_v32, %v1444_v59  ;;  %v2239_v58 = vpack.c.b16 %v2175_v36, %v1744_v42  ;;  %v2023_v45 = vpack.c.b16 %v1966_v13, %v2007_v54  ;;  %v2445_v19 = vshrl.u32 %v2233_v0, 16  ;;  %v8092_v47 = vpop.f32.mrf.mxu1 }
 0x165   :  { %3225 = vmatmul.bf16.gmra.mxu3 %v2863_v16  ;;  %v2448_v3 = vshll.u32 %v2233_v0, 16  ;;  %v2454_v33 = vshll.u32 %v2235_v38, 16  ;;  %v2024_v46 = vpack.c.b16 %v1968_v15, %v2008_v57  ;;  %v2473_v5 = vshrl.u32 %v2237_v18, 16 }
 0x166   :  { %1528 = vst [vmem:[%s9481_s3 + $0x18] sm:$0xff] %v1493_v4  ;;  %v1543_v11 = vadd.f32 %v1542_v43, %v1493_v4  ;;  %v1566_v1 = vmul.f32 %v1493_v4, %v1493_v4  ;;  %v1397_v55 = vpop.f32.mrf.mxu2  ;;  %v2476_v50 = vshll.u32 %v2237_v18, 16  ;;  %v2447_v40 = vrot.slane %v2445_v19, 4 }
 0x167   :  { %v1398_v42 = vadd.f32 %v1397_v55, %v8038_v8  ;;  %v2450_v20 = vrot.slane %v2448_v3, 5  ;;  %v2456_v31 = vrot.slane %v2454_v33, 5  ;;  %v2475_v63 = vrot.slane %v2473_v5, 4  ;;  %v8088_v8 = vld [vmem:[#allocation2 + $0x5c] sm:$0x1] }
 0x168   :  { %v1581_v48 = vadd.f32 %v1580_v49, %v1566_v1  ;;  %v2478_v61 = vrot.slane %v2476_v50, 5  ;;  %v2482_v34 = vshll.u32 %v2239_v58, 16  ;;  %v2076_v7 = vshrl.u32 %v2023_v45, 16  ;;  %v8103_v1 = vld [vmem:[#allocation2 + $0x58] sm:$0xf] }
 0x169   :  { %v1447_v52 = vadd.f32 %v1446_v9, %v1398_v42  ;;  %v2451_v26 = vor.u32 %v2450_v20, %v2447_v40  ;;  %v2078_v43 = vshll.u32 %v2023_v45, 16  ;;  %v2864_v6 = vpack.c.b16 %v2812_v10, %v2808_v23  ;;  %v1642_v45 = vld [vmem:[#allocation2 + $0x58] sm:$0xe]  ;;  %v7145_v42 = vld [vmem:[%s9479_s2 + $0x220] sm:$0xff] }
 0x16a   :  { %v2479_v24 = vor.u32 %v2478_v61, %v2475_v63  ;;  %v2484_v37 = vrot.slane %v2482_v34, 5  ;;  %v2085_v27 = vshll.u32 %v2024_v46, 16  ;;  %v1448_v17 = vpop.f32.mrf.mxu3  ;;  %v2083_v54 = vshrl.u32 %v2024_v46, 16  ;;  %4187 = vmatpush.bf16.msrb.mxu1 %v7145_v42 }
 0x16b   :  { %v1495_v44 = vpop.f32.mrf.mxu0  ;;  %v2452_v49 = vrot.slane %v2451_v26, 4  ;;  %v2080_v21 = vrot.slane %v2078_v43, 1  ;;  %v1745_v59 = vunpack.c.l.b16 %v8084_v56  ;;  %v1746_v9 = vunpack.c.l.b16 %v8086_v51 }
 0x16c   :  { %v1496_v53 = vadd.f32 %v1495_v44, %v1447_v52  ;;  %v2480_v29 = vrot.slane %v2479_v24, 4  ;;  %v2087_v12 = vrot.slane %v2085_v27, 1  ;;  %v1748_v57 = vunpack.c.l.b16 %v8088_v8  ;;  %v1355_v44 = vpop.f32.mrf.mxu1 }
 0x16d   :  { %v2457_v36 = vsel %vm7806_vm8, %v2452_v49, %v2456_v31  ;;  %v2081_v23 = vor.u32 %v2080_v21, %v2076_v7  ;;  %v1785_v60 = vunpack.c.l.b16 %v1641_v41  ;;  %v1747_v52 = vunpack.c.l.b16 %v8103_v1  ;;  %v8127_v41 = vld [vmem:[#allocation2 + $0x5c] sm:$0x1] }
 0x16e   :  { %1529 = vst [vmem:[%s9481_s3 + $0x20] sm:$0xff] %v1496_v53  ;;  %v1544_v28 = vadd.f32 %v1543_v11, %v1496_v53  ;;  %v1567_v32 = vmul.f32 %v1496_v53, %v1496_v53  ;;  %v2485_v16 = vsel %vm7806_vm8, %v2480_v29, %v2484_v37  ;;  %v2813_v0 = vunpack.c.l.b16 %v2457_v36  ;;  %3274 = vmatmul.bf16.gmra.mxu0 %v2864_v6  ;;  %v1399_v38 = vpop.f32.mrf.mxu2  ;;  %v8129_v53 = vld [vmem:[#allocation2 + $0x58] sm:$0xf] }
 0x16f   :  { %v2817_v10 = vunpack.c.l.b16 %v2485_v16  ;;  %v1400_v4 = vadd.f32 %v1399_v38, %v8066_v2  ;;  %v2088_v18 = vor.u32 %v2087_v12, %v2083_v54  ;;  %v2170_v58 = vunpack.c.l.b16 %v2081_v23  ;;  %v7169_v2 = vld [vmem:[%s9479_s2 + $0x2e0] sm:$0xff] }
 0x170   :  { %v1582_v19 = vadd.f32 %v1581_v48, %v1567_v32  ;;  %v2172_v3 = vunpack.c.h.b16 %v2081_v23  ;;  %v2814_v33 = vunpack.c.h.b16 %v2457_v36  ;;  %v2818_v46 = vunpack.c.h.b16 %v2485_v16  ;;  %4334 = vmatpush.bf16.msrb.mxu0 %v7169_v2 }
 0x171   :  { %v2865_v11 = vpack.c.b16 %v2817_v10, %v2813_v0  ;;  %v1449_v55 = vadd.f32 %v1448_v17, %v1400_v4  ;;  %v2174_v5 = vunpack.c.l.b16 %v2088_v18  ;;  %v2176_v50 = vunpack.c.h.b16 %v2088_v18  ;;  %v1690_v10 = vld [vmem:[#allocation2 + $0x60] sm:$0xe] }
 0x172   :  { %v2234_v40 = vpack.c.b16 %v2170_v58, %v1965_v35  ;;  %v2236_v20 = vpack.c.b16 %v2172_v3, %v1966_v13  ;;  %v2866_v31 = vpack.c.b16 %v2818_v46, %v2814_v33  ;;  %v1786_v48 = vunpack.c.l.b16 %v1642_v45  ;;  %v1451_v25 = vpop.f32.mrf.mxu3 }
 0x173   :  { %3132 = vmatmul.bf16.gmra.mxu1 %v2865_v11  ;;  %v1497_v63 = vpop.f32.mrf.mxu0  ;;  %v2238_v61 = vpack.c.b16 %v2174_v5, %v1967_v14  ;;  %v2240_v34 = vpack.c.b16 %v2176_v50, %v1968_v15  ;;  %v1801_v26 = vpack.c.b16 %v1746_v9, %v1785_v60  ;;  %v8132_v60 = vld [vmem:[#allocation2 + $0x64] sm:$0x1]  ;;  %v1969_v58 = vunpack.c.l.b16 %v8129_v53 }
 0x174   :  { %v1498_v22 = vadd.f32 %v1497_v63, %v1449_v55  ;;  %v2459_v35 = vshrl.u32 %v2234_v40, 16  ;;  %v2462_v30 = vshll.u32 %v2234_v40, 16  ;;  %v2468_v13 = vshll.u32 %v2236_v20, 16  ;;  %3181 = vmatmul.bf16.gmra.mxu2 %v2866_v31 }
 0x175   :  { %v2487_v7 = vshrl.u32 %v2238_v61, 16  ;;  %v2490_v43 = vshll.u32 %v2238_v61, 16  ;;  %v2496_v24 = vshll.u32 %v2240_v34, 16  ;;  %v1802_v39 = vpack.c.b16 %v1748_v57, %v1786_v48 }
 0x176   :  { %1530 = vst [vmem:[%s9481_s3 + $0x28] sm:$0xff] %v1498_v22  ;;  %v1545_v14 = vadd.f32 %v1544_v28, %v1498_v22  ;;  %v1568_v15 = vmul.f32 %v1498_v22, %v1498_v22  ;;  %v2461_v37 = vrot.slane %v2459_v35, 4  ;;  %v2464_v6 = vrot.slane %v2462_v30, 5  ;;  %v1402_v27 = vpop.f32.mrf.mxu2  ;;  %v1689_v28 = vld [vmem:[#allocation2 + $0x58] sm:$0xe] }
 0x177   :  { %v2470_v49 = vrot.slane %v2468_v13, 5  ;;  %v2489_v17 = vrot.slane %v2487_v7, 4  ;;  %v2492_v21 = vrot.slane %v2490_v43, 5  ;;  %v2498_v54 = vrot.slane %v2496_v24, 5  ;;  %v7152_v7 = vld [vmem:[%s9479_s2 + $0x258] sm:$0xff] }
 0x178   :  { %v1583_v29 = vadd.f32 %v1582_v19, %v1568_v15  ;;  %v2465_v12 = vor.u32 %v2464_v6, %v2461_v37  ;;  %v1403_v36 = vadd.f32 %v1402_v27, %v8092_v47  ;;  %v1866_v23 = vshrl.u32 %v1801_v26, 16  ;;  %v7160_v43 = vld [vmem:[%s9479_s2 + $0x298] sm:$0xff]  ;;  %v1358_v15 = vpop.f32.mrf.mxu1  ;;  %4237 = vmatpush.bf16.msrb.mxu2 %v7152_v7 }
 0x179   :  { %v2493_v32 = vor.u32 %v2492_v21, %v2489_v17  ;;  %v1868_v16 = vshll.u32 %v1801_v26, 16  ;;  %v1873_v0 = vshrl.u32 %v1802_v39, 16  ;;  %v1875_v38 = vshll.u32 %v1802_v39, 16  ;;  %v8158_v17 = vld [vmem:[#allocation2 + $0x60] sm:$0xf]  ;;  %4286 = vmatpush.bf16.msrb.mxu3 %v7160_v43 }
 0x17a   :  { %v2466_v4 = vrot.slane %v2465_v12, 4  ;;  %v1452_v18 = vadd.f32 %v1451_v25, %v1403_v36  ;;  %v1970_v45 = vunpack.c.l.b16 %v8127_v41  ;;  %v1972_v47 = vunpack.c.l.b16 %v8132_v60  ;;  %v1453_v13 = vpop.f32.mrf.mxu3 }
 0x17b   :  { %v2494_v3 = vrot.slane %v2493_v32, 4  ;;  %v1500_v19 = vpop.f32.mrf.mxu0  ;;  %v1870_v33 = vrot.slane %v1868_v16, 1  ;;  %v1877_v46 = vrot.slane %v1875_v38, 1  ;;  %v2009_v5 = vunpack.c.l.b16 %v1689_v28  ;;  %v8165_v16 = vld [vmem:[#allocation2 + $0x64] sm:$0x1] }
 0x17c   :  { %v2471_v11 = vsel %vm7806_vm8, %v2466_v4, %v2470_v49  ;;  %v1501_v55 = vadd.f32 %v1500_v19, %v1452_v18  ;;  %v2010_v50 = vunpack.c.l.b16 %v1690_v10  ;;  %v1971_v12 = vunpack.c.l.b16 %v8158_v17 }
 0x17d   :  { %v2499_v42 = vsel %vm7806_vm8, %v2494_v3, %v2498_v54  ;;  %v2815_v2 = vunpack.c.l.b16 %v2471_v11  ;;  %v1871_v40 = vor.u32 %v1870_v33, %v1866_v23  ;;  %v1878_v20 = vor.u32 %v1877_v46, %v1873_v0  ;;  %v8170_v3 = vld [vmem:[#allocation2 + $0x60] sm:$0xf] }
 0x17e   :  { %v2819_v31 = vunpack.c.l.b16 %v2499_v42  ;;  %1531 = vst [vmem:[%s9481_s3 + $0x30] sm:$0xff] %v1501_v55  ;;  %v1546_v48 = vadd.f32 %v1545_v14, %v1501_v55  ;;  %v1569_v63 = vmul.f32 %v1501_v55, %v1501_v55  ;;  %v2816_v61 = vunpack.c.h.b16 %v2471_v11  ;;  %v1404_v34 = vpop.f32.mrf.mxu2  ;;  %v8172_v55 = vld [vmem:[#allocation2 + $0x6c] sm:$0x1] }
 0x17f   :  { %v2177_v26 = vunpack.c.l.b16 %v1871_v40  ;;  %v2179_v22 = vunpack.c.h.b16 %v1871_v40  ;;  %v2181_v35 = vunpack.c.l.b16 %v1878_v20  ;;  %v2183_v30 = vunpack.c.h.b16 %v1878_v20  ;;  %v1643_v40 = vld [vmem:[#allocation2 + $0x60] sm:$0xe] }
 0x180   :  { %v2867_v24 = vpack.c.b16 %v2819_v31, %v2815_v2  ;;  %v1584_v25 = vadd.f32 %v1583_v29, %v1569_v63  ;;  %v2820_v39 = vunpack.c.h.b16 %v2499_v42  ;;  %v1405_v14 = vadd.f32 %v1404_v34, %v1355_v44 }
 0x181   :  { %v2241_v37 = vpack.c.b16 %v2177_v26, %v1745_v59  ;;  %v2243_v6 = vpack.c.b16 %v2179_v22, %v1746_v9  ;;  %v2245_v27 = vpack.c.b16 %v2181_v35, %v1747_v52  ;;  %v2247_v49 = vpack.c.b16 %v2183_v30, %v1748_v57 }
 0x182   :  { %3230 = vmatmul.bf16.gmra.mxu3 %v2867_v24  ;;  %v2868_v21 = vpack.c.b16 %v2820_v39, %v2816_v61  ;;  %v1454_v54 = vadd.f32 %v1453_v13, %v1405_v14  ;;  %v2025_v44 = vpack.c.b16 %v1970_v45, %v2009_v5  ;;  %v2026_v56 = vpack.c.b16 %v1972_v47, %v2010_v50  ;;  %v1456_v61 = vpop.f32.mrf.mxu3  ;;  %v1360_v13 = vpop.f32.mrf.mxu1 }
 0x183   :  { %v2501_v51 = vshrl.u32 %v2241_v37, 16  ;;  %v2504_v59 = vshll.u32 %v2241_v37, 16  ;;  %v2510_v9 = vshll.u32 %v2243_v6, 16  ;;  %v2529_v1 = vshrl.u32 %v2245_v27, 16  ;;  %v1502_v52 = vpop.f32.mrf.mxu0  ;;  %v7144_v6 = vld [vmem:[%s9479_s2 + $0x218] sm:$0xff] }
 0x184   :  { %v2532_v8 = vshll.u32 %v2245_v27, 16  ;;  %v2538_v57 = vshll.u32 %v2247_v49, 16  ;;  %3279 = vmatmul.bf16.gmra.mxu0 %v2868_v21  ;;  %v1503_v29 = vadd.f32 %v1502_v52, %v1454_v54  ;;  %v2090_v32 = vshrl.u32 %v2025_v44, 16  ;;  %v7168_v27 = vld [vmem:[%s9479_s2 + $0x2d8] sm:$0xff]  ;;  %4188 = vmatpush.bf16.msrb.mxu1 %v7144_v6 }
 0x185   :  { %v2503_v36 = vrot.slane %v2501_v51, 4  ;;  %v2506_v23 = vrot.slane %v2504_v59, 5  ;;  %v2531_v28 = vrot.slane %v2529_v1, 4  ;;  %v2512_v0 = vrot.slane %v2510_v9, 5  ;;  %4335 = vmatpush.bf16.msrb.mxu0 %v7168_v27 }
 0x186   :  { %v2534_v38 = vrot.slane %v2532_v8, 5  ;;  %1532 = vst [vmem:[%s9481_s3 + $0x38] sm:$0xff] %v1503_v29  ;;  %v1547_v10 = vadd.f32 %v1546_v48, %v1503_v29  ;;  %v1570_v4 = vmul.f32 %v1503_v29, %v1503_v29  ;;  %v1407_v18 = vpop.f32.mrf.mxu2  ;;  %v2092_v33 = vshll.u32 %v2025_v44, 16  ;;  %v1644_v44 = vld [vmem:[#allocation2 + $0x68] sm:$0xe] }
 0x187   :  { %v2507_v19 = vor.u32 %v2506_v23, %v2503_v36  ;;  %v2097_v46 = vshrl.u32 %v2026_v56, 16  ;;  %v2099_v11 = vshll.u32 %v2026_v56, 16  ;;  %v2540_v50 = vrot.slane %v2538_v57, 5 }
 0x188   :  { %v2535_v5 = vor.u32 %v2534_v38, %v2531_v28  ;;  %v1585_v42 = vadd.f32 %v1584_v25, %v1570_v4  ;;  %v1408_v2 = vadd.f32 %v1407_v18, %v1358_v15  ;;  %v2094_v31 = vrot.slane %v2092_v33, 1  ;;  %v8200_v28 = vld [vmem:[#allocation2 + $0x68] sm:$0xf] }
 0x189   :  { %v2508_v20 = vrot.slane %v2507_v19, 4  ;;  %v2101_v63 = vrot.slane %v2099_v11, 1  ;;  %v1749_v48 = vunpack.c.l.b16 %v8170_v3  ;;  %v1750_v22 = vunpack.c.l.b16 %v8165_v16  ;;  %v8207_v33 = vld [vmem:[#allocation2 + $0x68] sm:$0xf] }
 0x18a   :  { %v2536_v34 = vrot.slane %v2535_v5, 4  ;;  %v1457_v26 = vadd.f32 %v1456_v61, %v1408_v2  ;;  %v1752_v35 = vunpack.c.l.b16 %v8172_v55  ;;  %v2095_v7 = vor.u32 %v2094_v31, %v2090_v32  ;;  %v8213_v61 = vld [vmem:[#allocation2 + $0x74] sm:$0x1] }
 0x18b   :  { %v2513_v30 = vsel %vm7806_vm8, %v2508_v20, %v2512_v0  ;;  %v2102_v43 = vor.u32 %v2101_v63, %v2097_v46  ;;  %v1505_v24 = vpop.f32.mrf.mxu0  ;;  %v1787_v25 = vunpack.c.l.b16 %v1643_v40  ;;  %v1788_v32 = vunpack.c.l.b16 %v1644_v44  ;;  %v8211_v40 = vpop.f32.mrf.mxu1 }
 0x18c   :  { %v2541_v39 = vsel %vm7806_vm8, %v2536_v34, %v2540_v50  ;;  %v2821_v14 = vunpack.c.l.b16 %v2513_v30  ;;  %v2822_v15 = vunpack.c.h.b16 %v2513_v30  ;;  %v1506_v37 = vadd.f32 %v1505_v24, %v1457_v26  ;;  %v1691_v34 = vld [vmem:[#allocation2 + $0x68] sm:$0xe]  ;;  %v1692_v24 = vld [vmem:[#allocation2 + $0x70] sm:$0xe] }
 0x18d   :  { %v2825_v49 = vunpack.c.l.b16 %v2541_v39  ;;  %v2178_v17 = vunpack.c.l.b16 %v2095_v7  ;;  %v2180_v21 = vunpack.c.h.b16 %v2095_v7  ;;  %v2182_v54 = vunpack.c.l.b16 %v2102_v43 }
 0x18e   :  { %v2184_v56 = vunpack.c.h.b16 %v2102_v43  ;;  %v2826_v51 = vunpack.c.h.b16 %v2541_v39  ;;  %1533 = vst [vmem:[%s9481_s3 + $0x100] sm:$0xff] %v1506_v37  ;;  %v8190_v59 = vadd.f32 %v1547_v10, %v1506_v37  ;;  %v1571_v9 = vmul.f32 %v1506_v37, %v1506_v37  ;;  %v1458_v43 = vpop.f32.mrf.mxu3 }
 0x18f   :  { %v2869_v1 = vpack.c.b16 %v2825_v49, %v2821_v14  ;;  %v2242_v52 = vpack.c.b16 %v2178_v17, %v1969_v58  ;;  %v2244_v8 = vpack.c.b16 %v2180_v21, %v1970_v45  ;;  %v2246_v57 = vpack.c.b16 %v2182_v54, %v1971_v12  ;;  %v1409_v45 = vpop.f32.mrf.mxu2 }
 0x190   :  { %v2248_v29 = vpack.c.b16 %v2184_v56, %v1972_v47  ;;  %v2870_v36 = vpack.c.b16 %v2826_v51, %v2822_v15  ;;  %v8198_v23 = vadd.f32 %v1585_v42, %v1571_v9  ;;  %v1803_v41 = vpack.c.b16 %v1750_v22, %v1787_v25  ;;  %v8209_v42 = vld [vmem:[#allocation2 + $0x6c] sm:$0x1] }
 0x191   :  { %3137 = vmatmul.bf16.gmra.mxu1 %v2869_v1  ;;  %v2515_v0 = vshrl.u32 %v2242_v52, 16  ;;  %v2518_v38 = vshll.u32 %v2242_v52, 16  ;;  %v2524_v10 = vshll.u32 %v2244_v8, 16  ;;  %v2543_v4 = vshrl.u32 %v2246_v57, 16  ;;  %v7151_v8 = vld [vmem:[%s9479_s2 + $0x250] sm:$0xff] }
 0x192   :  { %v2546_v53 = vshll.u32 %v2246_v57, 16  ;;  %v2552_v58 = vshll.u32 %v2248_v29, 16  ;;  %3186 = vmatmul.bf16.gmra.mxu2 %v2870_v36  ;;  %v1804_v60 = vpack.c.b16 %v1752_v35, %v1788_v32  ;;  %v1751_v19 = vunpack.c.l.b16 %v8200_v28  ;;  %v7159_v57 = vld [vmem:[%s9479_s2 + $0x290] sm:$0xff] }
 0x193   :  { %v2517_v47 = vrot.slane %v2515_v0, 4  ;;  %v2520_v12 = vrot.slane %v2518_v38, 5  ;;  %v2545_v18 = vrot.slane %v2543_v4, 4  ;;  %v2526_v46 = vrot.slane %v2524_v10, 5  ;;  %v1507_v49 = vpop.f32.mrf.mxu0  ;;  %4238 = vmatpush.bf16.msrb.mxu2 %v7151_v8  ;;  %4287 = vmatpush.bf16.msrb.mxu3 %v7159_v57 }
 0x194   :  { %v2548_v11 = vrot.slane %v2546_v53, 5  ;;  %v1880_v5 = vshrl.u32 %v1803_v41, 16  ;;  %v1882_v50 = vshll.u32 %v1803_v41, 16  ;;  %v1887_v20 = vshrl.u32 %v1804_v60, 16 }
 0x195   :  { %v2521_v2 = vor.u32 %v2520_v12, %v2517_v47  ;;  %v1889_v31 = vshll.u32 %v1804_v60, 16  ;;  %v1410_v63 = vadd.f32 %v1409_v45, %v1360_v13  ;;  %v2554_v30 = vrot.slane %v2552_v58, 5  ;;  %v8240_v45 = vld [vmem:[#allocation2 + $0x70] sm:$0xf] }
 0x196   :  { %v2549_v26 = vor.u32 %v2548_v11, %v2545_v18  ;;  %v1884_v7 = vrot.slane %v1882_v50, 1  ;;  %v1973_v25 = vunpack.c.l.b16 %v8207_v33  ;;  %v1974_v37 = vunpack.c.l.b16 %v8209_v42 }
 0x197   :  { %v2522_v39 = vrot.slane %v2521_v2, 4  ;;  %v1891_v14 = vrot.slane %v1889_v31, 1  ;;  %v1459_v15 = vadd.f32 %v1458_v43, %v1410_v63  ;;  %v1976_v13 = vunpack.c.l.b16 %v8213_v61  ;;  %v1412_v11 = vpop.f32.mrf.mxu2  ;;  %v8250_v63 = vld [vmem:[#allocation2 + $0x70] sm:$0xf]  ;;  %v8255_v43 = vld [vmem:[#allocation2 + $0x7c] sm:$0x1] }
 0x198   :  { %v2550_v6 = vrot.slane %v2549_v26, 4  ;;  %v1885_v27 = vor.u32 %v1884_v7, %v1880_v5  ;;  %v2011_v17 = vunpack.c.l.b16 %v1691_v34  ;;  %v2012_v56 = vunpack.c.l.b16 %v1692_v24  ;;  %v8253_v7 = vld [vmem:[#allocation2 + $0x74] sm:$0x1] }
 0x199   :  { %v2527_v21 = vsel %vm7806_vm8, %v2522_v39, %v2526_v46  ;;  %v1892_v54 = vor.u32 %v1891_v14, %v1887_v20  ;;  %v1508_v44 = vadd.f32 %v1507_v49, %v1459_v15  ;;  %v1975_v55 = vunpack.c.l.b16 %v8240_v45 }
 0x19a   :  { %v2555_v51 = vsel %vm7806_vm8, %v2550_v6, %v2554_v30  ;;  %v2823_v9 = vunpack.c.l.b16 %v2527_v21  ;;  %v2185_v1 = vunpack.c.l.b16 %v1885_v27  ;;  %v2187_v52 = vunpack.c.h.b16 %v1885_v27  ;;  %v1461_v6 = vpop.f32.mrf.mxu3  ;;  %v1645_v27 = vld [vmem:[#allocation2 + $0x70] sm:$0xe] }
 0x19b   :  { %v2827_v29 = vunpack.c.l.b16 %v2555_v51  ;;  %v2189_v36 = vunpack.c.l.b16 %v1892_v54  ;;  %v2191_v28 = vunpack.c.h.b16 %v1892_v54  ;;  %v2824_v32 = vunpack.c.h.b16 %v2527_v21  ;;  %1534 = vst [vmem:[%s9481_s3 + $0x108] sm:$0xff] %v1508_v44 }
 0x19c   :  { %v2249_v0 = vpack.c.b16 %v2185_v1, %v1749_v48  ;;  %v2251_v38 = vpack.c.b16 %v2187_v52, %v1750_v22  ;;  %v2828_v10 = vunpack.c.h.b16 %v2555_v51  ;;  %v8236_v4 = vadd.f32 %v8190_v59, %v1508_v44  ;;  %v8242_v59 = vpop.f32.mrf.mxu1  ;;  %v1510_v51 = vpop.f32.mrf.mxu0 }
 0x19d   :  { %v2871_v53 = vpack.c.b16 %v2827_v29, %v2823_v9  ;;  %v2253_v58 = vpack.c.b16 %v2189_v36, %v1751_v19  ;;  %v2255_v41 = vpack.c.b16 %v2191_v28, %v1752_v35  ;;  %v1572_v60 = vmul.f32 %v1508_v44, %v1508_v44 }
 0x19e   :  { %v2557_v47 = vshrl.u32 %v2249_v0, 16  ;;  %v2560_v3 = vshll.u32 %v2249_v0, 16  ;;  %v2566_v48 = vshll.u32 %v2251_v38, 16  ;;  %v2872_v12 = vpack.c.b16 %v2828_v10, %v2824_v32  ;;  %v7143_v0 = vld [vmem:[%s9479_s2 + $0x210] sm:$0xff] }
 0x19f   :  { %3235 = vmatmul.bf16.gmra.mxu3 %v2871_v53  ;;  %v2585_v16 = vshrl.u32 %v2253_v58, 16  ;;  %v2588_v22 = vshll.u32 %v2253_v58, 16  ;;  %v2594_v18 = vshll.u32 %v2255_v41, 16  ;;  %v1587_v46 = vadd.f32 %v8198_v23, %v1572_v60  ;;  %v7167_v38 = vld [vmem:[%s9479_s2 + $0x2d0] sm:$0xff]  ;;  %v1646_v60 = vld [vmem:[#allocation2 + $0x78] sm:$0xe]  ;;  %4189 = vmatpush.bf16.msrb.mxu1 %v7143_v0 }
 0x1a0   :  { %v2559_v19 = vrot.slane %v2557_v47, 4  ;;  %v2562_v5 = vrot.slane %v2560_v3, 5  ;;  %3284 = vmatmul.bf16.gmra.mxu0 %v2872_v12  ;;  %v2027_v35 = vpack.c.b16 %v1974_v37, %v2011_v17  ;;  %v2568_v50 = vrot.slane %v2566_v48, 5 }
 0x1a1   :  { %v2587_v2 = vrot.slane %v2585_v16, 4  ;;  %v2590_v20 = vrot.slane %v2588_v22, 5  ;;  %v2028_v31 = vpack.c.b16 %v1976_v13, %v2012_v56  ;;  %v1413_v30 = vadd.f32 %v1412_v11, %v8211_v40  ;;  %4336 = vmatpush.bf16.msrb.mxu0 %v7167_v38 }
 0x1a2   :  { %v2563_v34 = vor.u32 %v2562_v5, %v2559_v19  ;;  %v2104_v26 = vshrl.u32 %v2027_v35, 16  ;;  %v2106_v23 = vshll.u32 %v2027_v35, 16  ;;  %v2596_v39 = vrot.slane %v2594_v18, 5 }
 0x1a3   :  { %v2591_v24 = vor.u32 %v2590_v20, %v2587_v2  ;;  %v2111_v14 = vshrl.u32 %v2028_v31, 16  ;;  %v2113_v15 = vshll.u32 %v2028_v31, 16  ;;  %v1462_v21 = vadd.f32 %v1461_v6, %v1413_v30 }
 0x1a4   :  { %v2564_v49 = vrot.slane %v2563_v34, 4  ;;  %v2108_v17 = vrot.slane %v2106_v23, 1  ;;  %v1753_v54 = vunpack.c.l.b16 %v8250_v63  ;;  %v1754_v40 = vunpack.c.l.b16 %v8253_v7  ;;  %v8273_v3 = vpop.f32.mrf.mxu1  ;;  %v8293_v23 = vld [vmem:[#allocation2 + $0x78] sm:$0xf] }
 0x1a5   :  { %v2592_v44 = vrot.slane %v2591_v24, 4  ;;  %v2115_v56 = vrot.slane %v2113_v15, 1  ;;  %v1756_v9 = vunpack.c.l.b16 %v8255_v43  ;;  %v1511_v8 = vadd.f32 %v1510_v51, %v1462_v21  ;;  %v8295_v15 = vld [vmem:[#allocation2 + $0x7c] sm:$0x1]  ;;  %v8298_v21 = vld [vmem:[#allocation2 + $0x84] sm:$0x1] }
 0x1a6   :  { %v2569_v1 = vsel %vm7806_vm8, %v2564_v49, %v2568_v50  ;;  %v2109_v52 = vor.u32 %v2108_v17, %v2104_v26  ;;  %v1789_v57 = vunpack.c.l.b16 %v1645_v27  ;;  %v8286_v50 = vld [vmem:[#allocation2 + $0x78] sm:$0xf] }
 0x1a7   :  { %v2597_v29 = vsel %vm7806_vm8, %v2592_v44, %v2596_v39  ;;  %v2829_v36 = vunpack.c.l.b16 %v2569_v1  ;;  %v2116_v28 = vor.u32 %v2115_v56, %v2111_v14  ;;  %v2830_v32 = vunpack.c.h.b16 %v2569_v1  ;;  %1535 = vst [vmem:[%s9481_s3 + $0x110] sm:$0xff] %v1511_v8  ;;  %v1693_v44 = vld [vmem:[#allocation2 + $0x78] sm:$0xe] }
 0x1a8   :  { %v2833_v10 = vunpack.c.l.b16 %v2597_v29  ;;  %v2186_v53 = vunpack.c.l.b16 %v2109_v52  ;;  %v2188_v58 = vunpack.c.h.b16 %v2109_v52  ;;  %v2834_v41 = vunpack.c.h.b16 %v2597_v29  ;;  %v1463_v52 = vpop.f32.mrf.mxu3 }
 0x1a9   :  { %v2190_v45 = vunpack.c.l.b16 %v2116_v28  ;;  %v2192_v47 = vunpack.c.h.b16 %v2116_v28  ;;  %v8276_v48 = vadd.f32 %v8236_v4, %v1511_v8  ;;  %v1573_v12 = vmul.f32 %v1511_v8, %v1511_v8  ;;  %v1694_v8 = vld [vmem:[#allocation2 + $0x80] sm:$0xe] }
 0x1aa   :  { %v2873_v16 = vpack.c.b16 %v2833_v10, %v2829_v36  ;;  %v2250_v22 = vpack.c.b16 %v2186_v53, %v1973_v25  ;;  %v2252_v18 = vpack.c.b16 %v2188_v58, %v1974_v37  ;;  %v2874_v11 = vpack.c.b16 %v2834_v41, %v2830_v32 }
 0x1ab   :  { %v2254_v19 = vpack.c.b16 %v2190_v45, %v1975_v55  ;;  %v2256_v5 = vpack.c.b16 %v2192_v47, %v1976_v13  ;;  %v8284_v35 = vadd.f32 %v1587_v46, %v1573_v12  ;;  %v1790_v4 = vunpack.c.l.b16 %v1646_v60  ;;  %v1414_v13 = vpop.f32.mrf.mxu2 }
 0x1ac   :  { %3142 = vmatmul.bf16.gmra.mxu1 %v2873_v16  ;;  %v2571_v2 = vshrl.u32 %v2250_v22, 16  ;;  %v2574_v20 = vshll.u32 %v2250_v22, 16  ;;  %v2580_v31 = vshll.u32 %v2252_v18, 16  ;;  %3191 = vmatmul.bf16.gmra.mxu2 %v2874_v11  ;;  %v1805_v33 = vpack.c.b16 %v1754_v40, %v1789_v57  ;;  %v8302_v10 = vpop.f32.mrf.mxu1  ;;  %v7150_v11 = vld [vmem:[%s9479_s2 + $0x248] sm:$0xff] }
 0x1ad   :  { %v2599_v42 = vshrl.u32 %v2254_v19, 16  ;;  %v2602_v25 = vshll.u32 %v2254_v19, 16  ;;  %v2608_v37 = vshll.u32 %v2256_v5, 16  ;;  %v1806_v61 = vpack.c.b16 %v1756_v9, %v1790_v4  ;;  %v7158_v19 = vld [vmem:[%s9479_s2 + $0x288] sm:$0xff]  ;;  %4239 = vmatpush.bf16.msrb.mxu2 %v7150_v11 }
 0x1ae   :  { %v2573_v46 = vrot.slane %v2571_v2, 4  ;;  %v2576_v55 = vrot.slane %v2574_v20, 5  ;;  %v2582_v34 = vrot.slane %v2580_v31, 5  ;;  %v1755_v26 = vunpack.c.l.b16 %v8286_v50  ;;  %4288 = vmatpush.bf16.msrb.mxu3 %v7158_v19 }
 0x1af   :  { %v2601_v30 = vrot.slane %v2599_v42, 4  ;;  %v2604_v24 = vrot.slane %v2602_v25, 5  ;;  %v1894_v39 = vshrl.u32 %v1805_v33, 16  ;;  %v1896_v14 = vshll.u32 %v1805_v33, 16 }
 0x1b0   :  { %v2577_v6 = vor.u32 %v2576_v55, %v2573_v46  ;;  %v1901_v27 = vshrl.u32 %v1806_v61, 16  ;;  %v1903_v49 = vshll.u32 %v1806_v61, 16  ;;  %v1415_v17 = vadd.f32 %v1414_v13, %v8242_v59  ;;  %v1512_v59 = vpop.f32.mrf.mxu0  ;;  %v8327_v46 = vld [vmem:[#allocation2 + $0x80] sm:$0xf] }
 0x1b1   :  { %v2605_v56 = vor.u32 %v2604_v24, %v2601_v30  ;;  %v2610_v51 = vrot.slane %v2608_v37, 5  ;;  %v1898_v1 = vrot.slane %v1896_v14, 1  ;;  %v1977_v57 = vunpack.c.l.b16 %v8293_v23 }
 0x1b2   :  { %v2578_v29 = vrot.slane %v2577_v6, 4  ;;  %v1905_v36 = vrot.slane %v1903_v49, 1  ;;  %v1464_v28 = vadd.f32 %v1463_v52, %v1415_v17  ;;  %v1978_v32 = vunpack.c.l.b16 %v8295_v15  ;;  %v1466_v17 = vpop.f32.mrf.mxu3 }
 0x1b3   :  { %v2606_v0 = vrot.slane %v2605_v56, 4  ;;  %v1899_v38 = vor.u32 %v1898_v1, %v1894_v39  ;;  %v1980_v53 = vunpack.c.l.b16 %v8298_v21  ;;  %v2013_v58 = vunpack.c.l.b16 %v1693_v44  ;;  %v1417_v24 = vpop.f32.mrf.mxu2  ;;  %v8335_v44 = vld [vmem:[#allocation2 + $0x80] sm:$0xf] }
 0x1b4   :  { %v2583_v41 = vsel %vm7806_vm8, %v2578_v29, %v2582_v34  ;;  %v1906_v60 = vor.u32 %v1905_v36, %v1901_v27  ;;  %v1513_v45 = vadd.f32 %v1512_v59, %v1464_v28  ;;  %v2014_v47 = vunpack.c.l.b16 %v1694_v8  ;;  %v8337_v1 = vpop.f32.mrf.mxu1  ;;  %v8340_v29 = vld [vmem:[#allocation2 + $0x84] sm:$0x1]  ;;  %v8342_v36 = vld [vmem:[#allocation2 + $0x8c] sm:$0x1] }
 0x1b5   :  { %v2611_v12 = vsel %vm7806_vm8, %v2606_v0, %v2610_v51  ;;  %v2831_v16 = vunpack.c.l.b16 %v2583_v41  ;;  %v2193_v22 = vunpack.c.l.b16 %v1899_v38  ;;  %v2195_v18 = vunpack.c.h.b16 %v1899_v38 }
 0x1b6   :  { %v2835_v5 = vunpack.c.l.b16 %v2611_v12  ;;  %v2197_v50 = vunpack.c.l.b16 %v1906_v60  ;;  %v2199_v4 = vunpack.c.h.b16 %v1906_v60  ;;  %v2832_v2 = vunpack.c.h.b16 %v2583_v41  ;;  %1536 = vst [vmem:[%s9481_s3 + $0x118] sm:$0xff] %v1513_v45 }
 0x1b7   :  { %v2257_v20 = vpack.c.b16 %v2193_v22, %v1753_v54  ;;  %v2259_v31 = vpack.c.b16 %v2195_v18, %v1754_v40  ;;  %v2836_v33 = vunpack.c.h.b16 %v2611_v12  ;;  %v8323_v42 = vadd.f32 %v8276_v48, %v1513_v45 }
 0x1b8   :  { %v2875_v25 = vpack.c.b16 %v2835_v5, %v2831_v16  ;;  %v2261_v37 = vpack.c.b16 %v2197_v50, %v1755_v26  ;;  %v2263_v61 = vpack.c.b16 %v2199_v4, %v1756_v9  ;;  %v1574_v13 = vmul.f32 %v1513_v45, %v1513_v45  ;;  %v1515_v8 = vpop.f32.mrf.mxu0 }
 0x1b9   :  { %v2613_v55 = vshrl.u32 %v2257_v20, 16  ;;  %v2616_v63 = vshll.u32 %v2257_v20, 16  ;;  %v2622_v54 = vshll.u32 %v2259_v31, 16  ;;  %v2876_v34 = vpack.c.b16 %v2836_v33, %v2832_v2  ;;  %v7142_v31 = vld [vmem:[%s9479_s2 + $0x208] sm:$0xff] }
 0x1ba   :  { %3240 = vmatmul.bf16.gmra.mxu3 %v2875_v25  ;;  %v2641_v7 = vshrl.u32 %v2261_v37, 16  ;;  %v2644_v40 = vshll.u32 %v2261_v37, 16  ;;  %v2650_v30 = vshll.u32 %v2263_v61, 16  ;;  %v1589_v48 = vadd.f32 %v8284_v35, %v1574_v13  ;;  %v7166_v33 = vld [vmem:[%s9479_s2 + $0x2c8] sm:$0xff]  ;;  %4190 = vmatpush.bf16.msrb.mxu1 %v7142_v31 }
 0x1bb   :  { %v2615_v39 = vrot.slane %v2613_v55, 4  ;;  %v2618_v14 = vrot.slane %v2616_v63, 5  ;;  %3289 = vmatmul.bf16.gmra.mxu0 %v2876_v34  ;;  %v1979_v43 = vunpack.c.l.b16 %v8327_v46  ;;  %v2029_v9 = vpack.c.b16 %v1978_v32, %v2013_v58  ;;  %v1647_v58 = vld [vmem:[#allocation2 + $0x80] sm:$0xe]  ;;  %v1648_v46 = vld [vmem:[#allocation2 + $0x88] sm:$0xe] }
 0x1bc   :  { %v2624_v26 = vrot.slane %v2622_v54, 5  ;;  %v2643_v6 = vrot.slane %v2641_v7, 4  ;;  %v2646_v27 = vrot.slane %v2644_v40, 5  ;;  %v2030_v49 = vpack.c.b16 %v1980_v53, %v2014_v47  ;;  %4337 = vmatpush.bf16.msrb.mxu0 %v7166_v33 }
 0x1bd   :  { %v2619_v56 = vor.u32 %v2618_v14, %v2615_v39  ;;  %v2118_v35 = vshrl.u32 %v2029_v9, 16  ;;  %v2120_v51 = vshll.u32 %v2029_v9, 16  ;;  %v1418_v52 = vadd.f32 %v1417_v24, %v8273_v3 }
 0x1be   :  { %v2647_v28 = vor.u32 %v2646_v27, %v2643_v6  ;;  %v2652_v0 = vrot.slane %v2650_v30, 5  ;;  %v2125_v38 = vshrl.u32 %v2030_v49, 16  ;;  %v2127_v59 = vshll.u32 %v2030_v49, 16  ;;  %v1468_v6 = vpop.f32.mrf.mxu3  ;;  %v1419_v27 = vpop.f32.mrf.mxu2 }
 0x1bf   :  { %v2620_v41 = vrot.slane %v2619_v56, 4  ;;  %v2122_v60 = vrot.slane %v2120_v51, 1  ;;  %v1467_v45 = vadd.f32 %v1466_v17, %v1418_v52  ;;  %v1757_v47 = vunpack.c.l.b16 %v8335_v44 }
 0x1c0   :  { %v2648_v12 = vrot.slane %v2647_v28, 4  ;;  %v2129_v16 = vrot.slane %v2127_v59, 1  ;;  %v1758_v22 = vunpack.c.l.b16 %v8340_v29  ;;  %v1760_v3 = vunpack.c.l.b16 %v8342_v36 }
 0x1c1   :  { %v2625_v18 = vsel %vm7806_vm8, %v2620_v41, %v2624_v26  ;;  %v2123_v11 = vor.u32 %v2122_v60, %v2118_v35  ;;  %v1516_v19 = vadd.f32 %v1515_v8, %v1467_v45  ;;  %v1791_v5 = vunpack.c.l.b16 %v1647_v58  ;;  %v8371_v26 = vld [vmem:[#allocation2 + $0x88] sm:$0xf]  ;;  %v8382_v58 = vld [vmem:[#allocation2 + $0x8c] sm:$0x1] }
 0x1c2   :  { %v2653_v50 = vsel %vm7806_vm8, %v2648_v12, %v2652_v0  ;;  %v2837_v4 = vunpack.c.l.b16 %v2625_v18  ;;  %v2130_v2 = vor.u32 %v2129_v16, %v2125_v38  ;;  %v2838_v20 = vunpack.c.h.b16 %v2625_v18  ;;  %v8380_v8 = vld [vmem:[#allocation2 + $0x88] sm:$0xf]  ;;  %v8385_v16 = vld [vmem:[#allocation2 + $0x94] sm:$0x1] }
 0x1c3   :  { %v2841_v25 = vunpack.c.l.b16 %v2653_v50  ;;  %v2194_v37 = vunpack.c.l.b16 %v2123_v11  ;;  %v2196_v61 = vunpack.c.h.b16 %v2123_v11  ;;  %v2842_v13 = vunpack.c.h.b16 %v2653_v50  ;;  %1537 = vst [vmem:[%s9481_s3 + $0x120] sm:$0xff] %v1516_v19  ;;  %v1695_v18 = vld [vmem:[#allocation2 + $0x88] sm:$0xe]  ;;  %v1696_v50 = vld [vmem:[#allocation2 + $0x90] sm:$0xe] }
 0x1c4   :  { %v2198_v55 = vunpack.c.l.b16 %v2130_v2  ;;  %v2200_v63 = vunpack.c.h.b16 %v2130_v2  ;;  %v8361_v54 = vadd.f32 %v8323_v42, %v1516_v19  ;;  %v1575_v34 = vmul.f32 %v1516_v19, %v1516_v19 }
 0x1c5   :  { %v2877_v7 = vpack.c.b16 %v2841_v25, %v2837_v4  ;;  %v2258_v40 = vpack.c.b16 %v2194_v37, %v1977_v57  ;;  %v2260_v30 = vpack.c.b16 %v2196_v61, %v1978_v32  ;;  %v2878_v24 = vpack.c.b16 %v2842_v13, %v2838_v20  ;;  %v8375_v57 = vpop.f32.mrf.mxu1  ;;  %v1517_v32 = vpop.f32.mrf.mxu0 }
 0x1c6   :  { %v2262_v39 = vpack.c.b16 %v2198_v55, %v1979_v43  ;;  %v2264_v14 = vpack.c.b16 %v2200_v63, %v1980_v53  ;;  %v8369_v9 = vadd.f32 %v1589_v48, %v1575_v34  ;;  %v1792_v42 = vunpack.c.l.b16 %v1648_v46 }
 0x1c7   :  { %3147 = vmatmul.bf16.gmra.mxu1 %v2877_v7  ;;  %v2627_v49 = vshrl.u32 %v2258_v40, 16  ;;  %v2630_v17 = vshll.u32 %v2258_v40, 16  ;;  %v2636_v23 = vshll.u32 %v2260_v30, 16  ;;  %3196 = vmatmul.bf16.gmra.mxu2 %v2878_v24  ;;  %v1807_v15 = vpack.c.b16 %v1758_v22, %v1791_v5  ;;  %v7149_v24 = vld [vmem:[%s9479_s2 + $0x240] sm:$0xff] }
 0x1c8   :  { %v2655_v21 = vshrl.u32 %v2262_v39, 16  ;;  %v2658_v53 = vshll.u32 %v2262_v39, 16  ;;  %v2664_v48 = vshll.u32 %v2264_v14, 16  ;;  %v1808_v43 = vpack.c.b16 %v1760_v3, %v1792_v42  ;;  %v1471_v39 = vpop.f32.mrf.mxu3  ;;  %v7157_v14 = vld [vmem:[%s9479_s2 + $0x280] sm:$0xff]  ;;  %4240 = vmatpush.bf16.msrb.mxu2 %v7149_v24 }
 0x1c9   :  { %v2629_v56 = vrot.slane %v2627_v49, 4  ;;  %v2632_v35 = vrot.slane %v2630_v17, 5  ;;  %v2638_v51 = vrot.slane %v2636_v23, 5  ;;  %v1759_v52 = vunpack.c.l.b16 %v8371_v26  ;;  %v1422_v26 = vpop.f32.mrf.mxu2  ;;  %v7141_v42 = vld [vmem:[%s9479_s2 + $0x200] sm:$0xff]  ;;  %4289 = vmatpush.bf16.msrb.mxu3 %v7157_v14 }
 0x1ca   :  { %v2657_v28 = vrot.slane %v2655_v21, 4  ;;  %v2660_v0 = vrot.slane %v2658_v53, 5  ;;  %v1908_v38 = vshrl.u32 %v1807_v15, 16  ;;  %v1910_v59 = vshll.u32 %v1807_v15, 16  ;;  %4191 = vmatpush.bf16.msrb.mxu1 %v7141_v42 }
 0x1cb   :  { %v2633_v41 = vor.u32 %v2632_v35, %v2629_v56  ;;  %v1915_v60 = vshrl.u32 %v1808_v43, 16  ;;  %v1917_v45 = vshll.u32 %v1808_v43, 16  ;;  %v1420_v12 = vadd.f32 %v1419_v27, %v8302_v10  ;;  %v7165_v43 = vld [vmem:[%s9479_s2 + $0x2c0] sm:$0xff] }
 0x1cc   :  { %v2661_v11 = vor.u32 %v2660_v0, %v2657_v28  ;;  %v2666_v19 = vrot.slane %v2664_v48, 5  ;;  %v1912_v5 = vrot.slane %v1910_v59, 1  ;;  %v1981_v4 = vunpack.c.l.b16 %v8380_v8  ;;  %4338 = vmatpush.bf16.msrb.mxu0 %v7165_v43 }
 0x1cd   :  { %v2634_v2 = vrot.slane %v2633_v41, 4  ;;  %v1919_v20 = vrot.slane %v1917_v45, 1  ;;  %v1469_v31 = vadd.f32 %v1468_v6, %v1420_v12  ;;  %v1982_v33 = vunpack.c.l.b16 %v8382_v58  ;;  %v8406_v23 = vpop.f32.mrf.mxu1  ;;  %v1520_v15 = vpop.f32.mrf.mxu0 }
 0x1ce   :  { %v2662_v25 = vrot.slane %v2661_v11, 4  ;;  %v1913_v37 = vor.u32 %v1912_v5, %v1908_v38  ;;  %v1984_v61 = vunpack.c.l.b16 %v8385_v16  ;;  %v2015_v13 = vunpack.c.l.b16 %v1695_v18  ;;  %v7180_v16 = vld [vmem:[%s9479_s2 + $0x338] sm:$0xff] }
 0x1cf   :  { %v2639_v10 = vsel %vm7806_vm8, %v2634_v2, %v2638_v51  ;;  %v1920_v46 = vor.u32 %v1919_v20, %v1915_v60  ;;  %v1518_v55 = vadd.f32 %v1517_v32, %v1469_v31  ;;  %v2016_v63 = vunpack.c.l.b16 %v1696_v50  ;;  %v8431_v20 = vld [vmem:[#allocation2 + $0x10] sm:$0xf]  ;;  %v3398_v31 = vld [vmem:[#allocation2 + $0xc] sm:$0x1]  ;;  %5962 = vmatpush.bf16.msra.mxu1 %v7180_v16 }
 0x1d0   :  { %v2667_v34 = vsel %vm7806_vm8, %v2662_v25, %v2666_v19  ;;  %v2839_v7 = vunpack.c.l.b16 %v2639_v10  ;;  %v2201_v40 = vunpack.c.l.b16 %v1913_v37  ;;  %v2203_v30 = vunpack.c.h.b16 %v1913_v37  ;;  %v8428_v19 = vld [vmem:[#allocation2 + $0x8] sm:$0xf]  ;;  %v8433_v25 = vpop.f32.mrf.mxu3 }
 0x1d1   :  { %v2843_v6 = vunpack.c.l.b16 %v2667_v34  ;;  %v2205_v27 = vunpack.c.l.b16 %v1920_v46  ;;  %v2207_v49 = vunpack.c.h.b16 %v1920_v46  ;;  %v2840_v17 = vunpack.c.h.b16 %v2639_v10  ;;  %1538 = vst [vmem:[%s9481_s3 + $0x128] sm:$0xff] %v1518_v55  ;;  %v1424_v37 = vpop.f32.mrf.mxu2 }
 0x1d2   :  { %v2265_v32 = vpack.c.b16 %v2201_v40, %v1757_v47  ;;  %v2267_v21 = vpack.c.b16 %v2203_v30, %v1758_v22  ;;  %v2844_v53 = vunpack.c.h.b16 %v2667_v34  ;;  %v8413_v48 = vadd.f32 %v8361_v54, %v1518_v55  ;;  %v8420_v47 = vld [vmem:[#allocation2 + $0x90] sm:$0xf]  ;;  %v3399_v34 = vld [vmem:[#allocation2 + $0x14] sm:$0x1] }
 0x1d3   :  { %v2879_v56 = vpack.c.b16 %v2843_v6, %v2839_v7  ;;  %v2269_v35 = vpack.c.b16 %v2205_v27, %v1759_v52  ;;  %v2271_v51 = vpack.c.b16 %v2207_v49, %v1760_v3  ;;  %v1576_v44 = vmul.f32 %v1518_v55, %v1518_v55 }
 0x1d4   :  { %v2669_v29 = vshrl.u32 %v2265_v32, 16  ;;  %v2672_v22 = vshll.u32 %v2265_v32, 16  ;;  %v2678_v28 = vshll.u32 %v2267_v21, 16  ;;  %v2880_v54 = vpack.c.b16 %v2844_v53, %v2840_v17 }
 0x1d5   :  { %3245 = vmatmul.bf16.gmra.mxu3 %v2879_v56  ;;  %v2697_v0 = vshrl.u32 %v2269_v35, 16  ;;  %v2700_v38 = vshll.u32 %v2269_v35, 16  ;;  %v2706_v59 = vshll.u32 %v2271_v51, 16  ;;  %v1591_v41 = vadd.f32 %v8369_v9, %v1576_v44  ;;  %v8435_v7 = vpop.f32.mrf.mxu1 }
 0x1d6   :  { %v2671_v60 = vrot.slane %v2669_v29, 4  ;;  %v2674_v52 = vrot.slane %v2672_v22, 5  ;;  %3294 = vmatmul.bf16.gmra.mxu0 %v2880_v54  ;;  %v1983_v36 = vunpack.c.l.b16 %v8420_v47  ;;  %v2031_v3 = vpack.c.b16 %v1982_v33, %v2015_v13 }
 0x1d7   :  { %v2680_v45 = vrot.slane %v2678_v28, 5  ;;  %v2699_v12 = vrot.slane %v2697_v0, 4  ;;  %v2702_v18 = vrot.slane %v2700_v38, 5  ;;  %v2032_v11 = vpack.c.b16 %v1984_v61, %v2016_v63  ;;  %v8437_v63 = vpop.f32.mrf.mxu0 }
 0x1d8   :  { %v2675_v5 = vor.u32 %v2674_v52, %v2671_v60  ;;  %v2132_v50 = vshrl.u32 %v2031_v3, 16  ;;  %v2134_v2 = vshll.u32 %v2031_v3, 16  ;;  %v1423_v9 = vadd.f32 %v1422_v26, %v8337_v1  ;;  %v8456_v60 = vpop.f32.mrf.mxu3  ;;  %v7196_v52 = vld [vmem:[%s9479_s2 + $0x3b8] sm:$0xff] }
 0x1d9   :  { %v2703_v13 = vor.u32 %v2702_v18, %v2699_v12  ;;  %v2708_v10 = vrot.slane %v2706_v59, 5  ;;  %v2139_v46 = vshrl.u32 %v2032_v11, 16  ;;  %v2141_v55 = vshll.u32 %v2032_v11, 16  ;;  %v7188_v59 = vld [vmem:[%s9479_s2 + $0x378] sm:$0xff]  ;;  %v3431_v12 = vld [vmem:[#allocation2 + $0x14] sm:$0x1]  ;;  %6060 = vmatpush.bf16.msra.mxu3 %v7196_v52 }
 0x1da   :  { %v2676_v40 = vrot.slane %v2675_v5, 4  ;;  %v2136_v30 = vrot.slane %v2134_v2, 1  ;;  %v1472_v24 = vadd.f32 %v1471_v39, %v1423_v9  ;;  %v3479_v1 = vunpack.c.l.b16 %v8428_v19  ;;  %6011 = vmatpush.bf16.msra.mxu2 %v7188_v59 }
 0x1db   :  { %v2704_v14 = vrot.slane %v2703_v13, 4  ;;  %v2143_v26 = vrot.slane %v2141_v55, 1  ;;  %v3480_v42 = vunpack.c.l.b16 %v3398_v31  ;;  %v3481_v6 = vunpack.c.l.b16 %v8431_v20  ;;  %v3432_v31 = vld [vmem:[#allocation2 + $0x1c] sm:$0x1] }
 0x1dc   :  { %v2681_v27 = vsel %vm7806_vm8, %v2676_v40, %v2680_v45  ;;  %v2137_v49 = vor.u32 %v2136_v30, %v2132_v50  ;;  %v1521_v17 = vadd.f32 %v1520_v15, %v1472_v24  ;;  %v3482_v32 = vunpack.c.l.b16 %v3399_v34  ;;  %v3416_v45 = vld [vmem:[#allocation2 + $0x18] sm:$0xf] }
 0x1dd   :  { %v2709_v21 = vsel %vm7806_vm8, %v2704_v14, %v2708_v10  ;;  %v2845_v53 = vunpack.c.l.b16 %v2681_v27  ;;  %v2144_v43 = vor.u32 %v2143_v26, %v2139_v46  ;;  %v2846_v56 = vunpack.c.h.b16 %v2681_v27  ;;  %v8467_v18 = vpop.f32.mrf.mxu1 }
 0x1de   :  { %v2849_v39 = vunpack.c.l.b16 %v2709_v21  ;;  %v2202_v35 = vunpack.c.l.b16 %v2137_v49  ;;  %v2204_v51 = vunpack.c.h.b16 %v2137_v49  ;;  %v2850_v44 = vunpack.c.h.b16 %v2709_v21  ;;  %1539 = vst [vmem:[%s9481_s3 + $0x130] sm:$0xff] %v1521_v17 }
 0x1df   :  { %v2206_v47 = vunpack.c.l.b16 %v2144_v43  ;;  %v2208_v29 = vunpack.c.h.b16 %v2144_v43  ;;  %v1554_v22 = vadd.f32 %v8413_v48, %v1521_v17  ;;  %v1577_v15 = vmul.f32 %v1521_v17, %v1521_v17  ;;  %v3167_v48 = vpop.f32.mrf.mxu2  ;;  %v8469_v11 = vpop.f32.mrf.mxu0 }
 0x1e0   :  { %v2881_v28 = vpack.c.b16 %v2849_v39, %v2845_v53  ;;  %v2266_v54 = vpack.c.b16 %v2202_v35, %v1981_v4  ;;  %v2268_v0 = vpack.c.b16 %v2204_v51, %v1982_v33  ;;  %v2882_v38 = vpack.c.b16 %v2850_v44, %v2846_v56  ;;  %v3415_v33 = vld [vmem:[#allocation2 + $0x10] sm:$0xf]  ;;  %v8490_v53 = vpop.f32.mrf.mxu3 }
 0x1e1   :  { %v2270_v3 = vpack.c.b16 %v2206_v47, %v1983_v36  ;;  %v2272_v8 = vpack.c.b16 %v2208_v29, %v1984_v61  ;;  %v8463_v4 = vadd.f32 %v1591_v41, %v1577_v15  ;;  %v8465_v58 = vpack.c.b16 %v3480_v42, %v3479_v1  ;;  %v7204_v61 = vld [vmem:[%s9479_s2 + $0x3f8] sm:$0xff] }
 0x1e2   :  { %3152 = vmatmul.bf16.gmra.mxu1 %v2881_v28  ;;  %v2683_v19 = vshrl.u32 %v2266_v54, 16  ;;  %v2686_v5 = vshll.u32 %v2266_v54, 16  ;;  %v2692_v50 = vshll.u32 %v2268_v0, 16  ;;  %3201 = vmatmul.bf16.gmra.mxu2 %v2882_v38  ;;  %v8471_v36 = vpack.c.b16 %v3482_v32, %v3481_v6  ;;  %v3384_v38 = vld [vmem:[#allocation2 + $0x18] sm:$0xf] }
 0x1e3   :  { %v2711_v41 = vshrl.u32 %v2270_v3, 16  ;;  %v2714_v2 = vshll.u32 %v2270_v3, 16  ;;  %v2720_v9 = vshll.u32 %v2272_v8, 16  ;;  %v1425_v20 = vadd.f32 %v1424_v37, %v8375_v57  ;;  %6109 = vmatpush.bf16.msra.mxu0 %v7204_v61 }
 0x1e4   :  { %v2685_v13 = vrot.slane %v2683_v19, 4  ;;  %v2688_v10 = vrot.slane %v2686_v5, 5  ;;  %v8480_v46 = vpack.c.b16 %v3481_v6, %v3479_v1  ;;  %v3671_v55 = vunpack.c.l.b16 %v3415_v33 }
 0x1e5   :  { %v2694_v34 = vrot.slane %v2692_v50, 5  ;;  %v2713_v40 = vrot.slane %v2711_v41, 4  ;;  %v2716_v30 = vrot.slane %v2714_v2, 5  ;;  %v1474_v24 = vadd.f32 %v8433_v25, %v1425_v20  ;;  %v8497_v35 = vpop.f32.mrf.mxu1 }
 0x1e6   :  { %v2689_v14 = vor.u32 %v2688_v10, %v2685_v13  ;;  %v3672_v26 = vunpack.c.l.b16 %v3431_v12  ;;  %v3673_v42 = vunpack.c.l.b16 %v3416_v45  ;;  %v3674_v27 = vunpack.c.l.b16 %v3432_v31 }
 0x1e7   :  { %v2717_v57 = vor.u32 %v2716_v30, %v2713_v40  ;;  %v2722_v37 = vrot.slane %v2720_v9, 5  ;;  %v1523_v49 = vadd.f32 %v8437_v63, %v1474_v24  ;;  %v3530_v17 = vshll.u32 %v8465_v58, 16  ;;  %v8492_v25 = vpop.f32.mrf.mxu2  ;;  %v8499_v51 = vpop.f32.mrf.mxu0 }
 0x1e8   :  { %v2690_v1 = vrot.slane %v2689_v14, 4  ;;  %v8485_v6 = vpack.c.b16 %v3672_v26, %v3671_v55  ;;  %v8487_v32 = vpack.c.b16 %v3674_v27, %v3673_v42  ;;  %v3528_v21 = vshrl.u32 %v8465_v58, 16  ;;  %v3400_v58 = vld [vmem:[#allocation2 + $0x1c] sm:$0x1]  ;;  %v8518_v10 = vpop.f32.mrf.mxu3  ;;  %v3417_v14 = vld [vmem:[#allocation2 + $0x20] sm:$0xf] }
 0x1e9   :  { %v2718_v43 = vrot.slane %v2717_v57, 4  ;;  %1540 = vst [vmem:[%s9481_s3 + $0x138] sm:$0xff] %v1523_v49  ;;  %v1555_v56 = vadd.f32 %v1554_v22, %v1523_v49  ;;  %v1578_v63 = vmul.f32 %v1523_v49, %v1523_v49  ;;  %v3532_v39 = vrot.slane %v3530_v17, 1  ;;  %v3418_v26 = vld [vmem:[#allocation2 + $0x28] sm:$0xf] }
 0x1ea   :  { %v2695_v44 = vsel %vm7806_vm8, %v2690_v1, %v2694_v34  ;;  %v8503_v47 = vpack.c.b16 %v3673_v42, %v3671_v55  ;;  %v3537_v29 = vshll.u32 %v8471_v36, 16  ;;  %v3168_v15 = vadd.f32 %v3167_v48, %v8406_v23  ;;  %v3385_v23 = vld [vmem:[#allocation2 + $0x20] sm:$0xf]  ;;  %v3401_v48 = vld [vmem:[#allocation2 + $0x24] sm:$0x1]  ;;  %v7195_v55 = vld [vmem:[%s9479_s2 + $0x3b0] sm:$0xff] }
 0x1eb   :  { %v2723_v28 = vsel %vm7806_vm8, %v2718_v43, %v2722_v37  ;;  %v2847_v54 = vunpack.c.l.b16 %v2695_v44  ;;  %v2848_v22 = vunpack.c.h.b16 %v2695_v44  ;;  %v1556_v0 = vrot.slane %v1555_v56, 4  ;;  %v3433_v17 = vld [vmem:[#allocation2 + $0x24] sm:$0x1]  ;;  %v7179_v1 = vld [vmem:[%s9479_s2 + $0x330] sm:$0xff]  ;;  %6061 = vmatpush.bf16.msra.mxu3 %v7195_v55 }
 0x1ec   :  { %v2851_v59 = vunpack.c.l.b16 %v2723_v28  ;;  %v2852_v52 = vunpack.c.h.b16 %v2723_v28  ;;  %v1593_v3 = vadd.f32 %v8463_v4, %v1578_v63  ;;  %v3533_v8 = vor.u32 %v3532_v39, %v3528_v21  ;;  %v7203_v21 = vld [vmem:[%s9479_s2 + $0x3f0] sm:$0xff]  ;;  %v3434_v39 = vld [vmem:[#allocation2 + $0x2c] sm:$0x1]  ;;  %5963 = vmatpush.bf16.msra.mxu1 %v7179_v1 }
 0x1ed   :  { %v1557_v33 = vadd.f32 %v1556_v0, %v1555_v56  ;;  %v3535_v45 = vshrl.u32 %v8471_v36, 16  ;;  %v3539_v12 = vrot.slane %v3537_v29, 1  ;;  %v3217_v19 = vadd.f32 %v8456_v60, %v3168_v15  ;;  %v7187_v60 = vld [vmem:[%s9479_s2 + $0x370] sm:$0xff]  ;;  %v8549_v44 = vpop.f32.mrf.mxu1  ;;  %6110 = vmatpush.bf16.msra.mxu0 %v7203_v21 }
 0x1ee   :  { %v2883_v5 = vpack.c.b16 %v2851_v59, %v2847_v54  ;;  %v2884_v50 = vpack.c.b16 %v2852_v52, %v2848_v22  ;;  %v1594_v16 = vrot.slane %v1593_v3, 4  ;;  %v3483_v61 = vunpack.c.l.b16 %v3384_v38  ;;  %6012 = vmatpush.bf16.msra.mxu2 %v7187_v60 }
 0x1ef   :  { %v1558_v41 = vrot.slane %v1557_v33, 2  ;;  %v3540_v2 = vor.u32 %v3539_v12, %v3535_v45  ;;  %v8513_v9 = vadd.f32 %v8469_v11, %v3217_v19  ;;  %v3484_v4 = vunpack.c.l.b16 %v3400_v58  ;;  %v3172_v34 = vpop.f32.mrf.mxu2  ;;  %v8532_v42 = vpop.f32.mrf.mxu0 }
 0x1f0   :  { %3250 = vmatmul.bf16.gmra.mxu3 %v2883_v5  ;;  %3299 = vmatmul.bf16.gmra.mxu0 %v2884_v50  ;;  %v1595_v20 = vadd.f32 %v1594_v16, %v1593_v3  ;;  %v3831_v31 = vunpack.c.l.b16 %v3533_v8  ;;  %v3485_v36 = vunpack.c.l.b16 %v3385_v23  ;;  %v3486_v13 = vunpack.c.l.b16 %v3401_v48  ;;  %v3402_v48 = vld [vmem:[#allocation2 + $0x2c] sm:$0x1]  ;;  %v8565_v5 = vpop.f32.mrf.mxu3 }
 0x1f1   :  { %v1559_v11 = vadd.f32 %v1558_v41, %v1557_v33  ;;  %v3833_v40 = vunpack.c.l.b16 %v3540_v2  ;;  %6629 = vst [vmem:[%s9481_s3 + $0x40] sm:$0xff] %v8513_v9  ;;  %v8529_v30 = vmul.f32 %v8513_v9, %v8513_v9  ;;  %v3720_v24 = vshrl.u32 %v8485_v6, 16  ;;  %v3387_v2 = vld [vmem:[#allocation2 + $0x30] sm:$0xf] }
 0x1f2   :  { %4192 = vmatmul.bf16.vlgmr.msrb.gmra.mxu1 %v8480_v46  ;;  %v1596_v27 = vrot.slane %v1595_v20, 2  ;;  %v8535_v57 = vpack.c.b16 %v3484_v4, %v3483_v61  ;;  %v8537_v37 = vpack.c.b16 %v3486_v13, %v3485_v36  ;;  %v3722_v49 = vshll.u32 %v8485_v6, 16  ;;  %v3403_v4 = vld [vmem:[#allocation2 + $0x34] sm:$0x1] }
 0x1f3   :  { %v1560_v43 = vrot.slane %v1559_v11, 1  ;;  %v3929_v56 = vpack.c.b16 %v3833_v40, %v3831_v31  ;;  %v8546_v46 = vpack.c.b16 %v3485_v36, %v3483_v61  ;;  %v3729_v63 = vshll.u32 %v8487_v32, 16 }
 0x1f4   :  { %v1597_v6 = vadd.f32 %v1596_v27, %v1595_v20  ;;  %v3724_v29 = vrot.slane %v3722_v49, 1  ;;  %v3170_v15 = vadd.f32 %v8492_v25, %v8435_v7  ;;  %v3675_v28 = vunpack.c.l.b16 %v3417_v14  ;;  %v3386_v25 = vld [vmem:[#allocation2 + $0x28] sm:$0xf] }
 0x1f5   :  { %4241 = vmatmul.bf16.vlgmr.msrb.gmra.mxu2 %v3929_v56  ;;  %v3727_v54 = vshrl.u32 %v8487_v32, 16  ;;  %v3731_v22 = vrot.slane %v3729_v63, 1  ;;  %v3676_v0 = vunpack.c.l.b16 %v3433_v17  ;;  %v3677_v38 = vunpack.c.l.b16 %v3418_v26 }
 0x1f6   :  { %v1598_v59 = vrot.slane %v1597_v6, 1  ;;  %v3725_v52 = vor.u32 %v3724_v29, %v3720_v24  ;;  %v3219_v3 = vadd.f32 %v8490_v53, %v3170_v15  ;;  %v3678_v8 = vunpack.c.l.b16 %v3434_v39  ;;  %v3436_v29 = vld [vmem:[#allocation2 + $0x3c] sm:$0x1] }
 0x1f7   :  { %v8555_v58 = vadd.f32 %v1560_v43, %v1559_v11  ;;  %v3732_v33 = vor.u32 %v3731_v22, %v3727_v54  ;;  %v8557_v45 = vpack.c.b16 %v3676_v0, %v3675_v28  ;;  %v8559_v7 = vpack.c.b16 %v3677_v38, %v3675_v28  ;;  %v3174_v53 = vpop.f32.mrf.mxu2  ;;  %v8569_v20 = vpop.f32.mrf.mxu0  ;;  %v7186_v22 = vld [vmem:[%s9479_s2 + $0x368] sm:$0xff] }
 0x1f8   :  { %v8561_v12 = vadd.f32 %v1598_v59, %v1597_v6  ;;  %v3832_v19 = vunpack.c.l.b16 %v3725_v52  ;;  %v3268_v32 = vadd.f32 %v8499_v51, %v3219_v3  ;;  %v3542_v23 = vshrl.u32 %v8535_v57, 16  ;;  %v3420_v6 = vld [vmem:[#allocation2 + $0x38] sm:$0xf]  ;;  %v3226_v0 = vpop.f32.mrf.mxu3  ;;  %6013 = vmatpush.bf16.msra.mxu2 %v7186_v22 }
 0x1f9   :  { %v3834_v50 = vunpack.c.l.b16 %v3732_v33  ;;  %v3706_v16 = vpack.c.b16 %v3678_v8, %v3677_v38  ;;  %v3544_v61 = vshll.u32 %v8535_v57, 16  ;;  %v3551_v41 = vshll.u32 %v8537_v37, 16  ;;  %v7194_v38 = vld [vmem:[%s9479_s2 + $0x3a8] sm:$0xff] }
 0x1fa   :  { %6630 = vst [vmem:[%s9481_s3 + $0x48] sm:$0xff] %v3268_v32  ;;  %v3322_v51 = vadd.f32 %v3268_v32, %v8513_v9  ;;  %v3345_v31 = vmul.f32 %v3268_v32, %v3268_v32  ;;  %v3173_v36 = vadd.f32 %v3172_v34, %v8467_v18  ;;  %v3487_v13 = vunpack.c.l.b16 %v3386_v25  ;;  %v8581_v9 = vpop.f32.mrf.mxu1  ;;  %v8583_v18 = vld [vmem:[#allocation2 + $0x30] sm:$0xf]  ;;  %6062 = vmatpush.bf16.msra.mxu3 %v7194_v38 }
 0x1fb   :  { %v3546_v60 = vrot.slane %v3544_v61, 1  ;;  %v3549_v55 = vshrl.u32 %v8537_v37, 16  ;;  %v3553_v11 = vrot.slane %v3551_v41, 1  ;;  %v3488_v40 = vunpack.c.l.b16 %v3402_v48  ;;  %v7202_v48 = vld [vmem:[%s9479_s2 + $0x3e8] sm:$0xff]  ;;  %v3404_v61 = vld [vmem:[#allocation2 + $0x3c] sm:$0x1] }
 0x1fc   :  { %v3360_v24 = vadd.f32 %v3345_v31, %v8529_v30  ;;  %v3222_v14 = vadd.f32 %v8518_v10, %v3173_v36  ;;  %v3489_v26 = vunpack.c.l.b16 %v3387_v2  ;;  %v3490_v27 = vunpack.c.l.b16 %v3403_v4  ;;  %v3435_v10 = vld [vmem:[#allocation2 + $0x34] sm:$0x1]  ;;  %6111 = vmatpush.bf16.msra.mxu0 %v7202_v48 }
 0x1fd   :  { %v3931_v57 = vpack.c.b16 %v3834_v50, %v3832_v19  ;;  %v3547_v49 = vor.u32 %v3546_v60, %v3542_v23  ;;  %v3554_v17 = vor.u32 %v3553_v11, %v3549_v55  ;;  %v8579_v1 = vpack.c.b16 %v3488_v40, %v3487_v13  ;;  %v7178_v23 = vld [vmem:[%s9479_s2 + $0x328] sm:$0xff]  ;;  %v3389_v60 = vld [vmem:[#allocation2 + $0x40] sm:$0xf]  ;;  %v3405_v55 = vld [vmem:[#allocation2 + $0x44] sm:$0x1] }
 0x1fe   :  { %v3271_v34 = vadd.f32 %v8532_v42, %v3222_v14  ;;  %v8586_v37 = vpack.c.b16 %v3490_v27, %v3489_v26  ;;  %v3734_v21 = vshrl.u32 %v8557_v45, 16  ;;  %v3736_v30 = vshll.u32 %v8557_v45, 16  ;;  %5964 = vmatpush.bf16.msra.mxu1 %v7178_v23 }
 0x1ff   :  { %v3837_v43 = vunpack.c.l.b16 %v3554_v17  ;;  %v8590_v56 = vpack.c.b16 %v3489_v26, %v3487_v13  ;;  %v3741_v63 = vshrl.u32 %v3706_v16, 16  ;;  %v3743_v39 = vshll.u32 %v3706_v16, 16  ;;  %v3275_v33 = vpop.f32.mrf.mxu0 }
 0x200   :  { %4290 = vmatmul.bf16.vlgmr.msrb.gmra.mxu3 %v8503_v47  ;;  %4339 = vmatmul.bf16.vlgmr.msrb.gmra.mxu0 %v3931_v57  ;;  %6631 = vst [vmem:[%s9481_s3 + $0x50] sm:$0xff] %v3271_v34  ;;  %v3323_v42 = vadd.f32 %v3322_v51, %v3271_v34  ;;  %v3346_v15 = vmul.f32 %v3271_v34, %v3271_v34  ;;  %v3738_v28 = vrot.slane %v3736_v30, 1  ;;  %v3679_v54 = vunpack.c.l.b16 %v8583_v18  ;;  %v3177_v47 = vpop.f32.mrf.mxu2 }
 0x201   :  { %v3835_v59 = vunpack.c.l.b16 %v3547_v49  ;;  %v3745_v52 = vrot.slane %v3743_v39, 1  ;;  %v3175_v3 = vadd.f32 %v3174_v53, %v8497_v35  ;;  %v3680_v8 = vunpack.c.l.b16 %v3435_v10  ;;  %v3421_v39 = vld [vmem:[#allocation2 + $0x40] sm:$0xf] }
 0x202   :  { %4197 = vmatmul.bf16.gmra.mxu1 %v8546_v46  ;;  %v3361_v45 = vadd.f32 %v3360_v24, %v3346_v15  ;;  %v3739_v25 = vor.u32 %v3738_v28, %v3734_v21  ;;  %v3681_v19 = vunpack.c.l.b16 %v3420_v6  ;;  %v3682_v32 = vunpack.c.l.b16 %v3436_v29  ;;  %v3388_v46 = vld [vmem:[#allocation2 + $0x38] sm:$0xf]  ;;  %v8625_v49 = vpop.f32.mrf.mxu1  ;;  %v3422_v28 = vld [vmem:[#allocation2 + $0x48] sm:$0xf] }
 0x203   :  { %v3933_v50 = vpack.c.b16 %v3837_v43, %v3835_v59  ;;  %v3746_v16 = vor.u32 %v3745_v52, %v3741_v63  ;;  %v3224_v35 = vadd.f32 %v8565_v5, %v3175_v3  ;;  %v8612_v53 = vpack.c.b16 %v3680_v8, %v3679_v54  ;;  %v3438_v59 = vld [vmem:[#allocation2 + $0x4c] sm:$0x1] }
 0x204   :  { %v3836_v41 = vunpack.c.l.b16 %v3739_v25  ;;  %v3708_v2 = vpack.c.b16 %v3682_v32, %v3681_v19  ;;  %v3556_v4 = vshrl.u32 %v8579_v1, 16  ;;  %v3558_v51 = vshll.u32 %v8579_v1, 16 }
 0x205   :  { %4246 = vmatmul.bf16.gmra.mxu2 %v3933_v50  ;;  %v3838_v31 = vunpack.c.l.b16 %v3746_v16  ;;  %v3273_v36 = vadd.f32 %v8569_v20, %v3224_v35  ;;  %v3563_v13 = vshrl.u32 %v8586_v37, 16  ;;  %v3565_v5 = vshll.u32 %v8586_v37, 16  ;;  %v3228_v37 = vpop.f32.mrf.mxu3 }
 0x206   :  { %v3560_v11 = vrot.slane %v3558_v51, 1  ;;  %v3178_v40 = vadd.f32 %v3177_v47, %v8549_v44  ;;  %v3491_v24 = vunpack.c.l.b16 %v3388_v46  ;;  %v3492_v14 = vunpack.c.l.b16 %v3404_v61 }
 0x207   :  { %6632 = vst [vmem:[%s9481_s3 + $0x58] sm:$0xff] %v3273_v36  ;;  %v3324_v26 = vadd.f32 %v3323_v42, %v3273_v36  ;;  %v3347_v27 = vmul.f32 %v3273_v36, %v3273_v36  ;;  %v8623_v57 = vpack.c.b16 %v3681_v19, %v3679_v54  ;;  %v3567_v20 = vrot.slane %v3565_v5, 1  ;;  %v3277_v63 = vpop.f32.mrf.mxu0  ;;  %v3437_v54 = vld [vmem:[#allocation2 + $0x44] sm:$0x1] }
 0x208   :  { %v3561_v17 = vor.u32 %v3560_v11, %v3556_v4  ;;  %v3227_v1 = vadd.f32 %v3226_v0, %v3178_v40  ;;  %v3493_v18 = vunpack.c.l.b16 %v3389_v60  ;;  %v3494_v34 = vunpack.c.l.b16 %v3405_v55  ;;  %v3179_v21 = vpop.f32.mrf.mxu2  ;;  %v3406_v60 = vld [vmem:[#allocation2 + $0x5c] sm:$0x1] }
 0x209   :  { %v3935_v44 = vpack.c.b16 %v3838_v31, %v3836_v41  ;;  %v3362_v30 = vadd.f32 %v3361_v45, %v3347_v27  ;;  %v3568_v10 = vor.u32 %v3567_v20, %v3563_v13  ;;  %v8627_v43 = vpack.c.b16 %v3492_v14, %v3491_v24  ;;  %v3390_v41 = vld [vmem:[#allocation2 + $0x58] sm:$0xf]  ;;  %v7185_v31 = vld [vmem:[%s9479_s2 + $0x360] sm:$0xff] }
 0x20a   :  { %v3839_v6 = vunpack.c.l.b16 %v3561_v17  ;;  %v3276_v29 = vadd.f32 %v3275_v33, %v3227_v1  ;;  %v8629_v42 = vpack.c.b16 %v3494_v34, %v3493_v18  ;;  %v3748_v15 = vshrl.u32 %v8612_v53, 16  ;;  %v7193_v13 = vld [vmem:[%s9479_s2 + $0x3a0] sm:$0xff]  ;;  %v3135_v11 = vpop.f32.mrf.mxu1  ;;  %6014 = vmatpush.bf16.msra.mxu2 %v7185_v31 }
 0x20b   :  { %v3841_v22 = vunpack.c.l.b16 %v3568_v10  ;;  %v3750_v0 = vshll.u32 %v8612_v53, 16  ;;  %v3755_v38 = vshrl.u32 %v3708_v2, 16  ;;  %v3757_v47 = vshll.u32 %v3708_v2, 16  ;;  %v3407_v27 = vld [vmem:[#allocation2 + $0x64] sm:$0x1]  ;;  %6063 = vmatpush.bf16.msra.mxu3 %v7193_v13 }
 0x20c   :  { %6633 = vst [vmem:[%s9481_s3 + $0x60] sm:$0xff] %v3276_v29  ;;  %v3325_v52 = vadd.f32 %v3324_v26, %v3276_v29  ;;  %v3348_v3 = vmul.f32 %v3276_v29, %v3276_v29  ;;  %v3180_v8 = vadd.f32 %v3179_v21, %v8581_v9  ;;  %v3683_v33 = vunpack.c.l.b16 %v3421_v39  ;;  %v3391_v26 = vld [vmem:[#allocation2 + $0x60] sm:$0xf] }
 0x20d   :  { %v8637_v45 = vpack.c.b16 %v3493_v18, %v3491_v24  ;;  %v3752_v25 = vrot.slane %v3750_v0, 1  ;;  %v3759_v19 = vrot.slane %v3757_v47, 1  ;;  %v3684_v32 = vunpack.c.l.b16 %v3437_v54  ;;  %v3231_v36 = vpop.f32.mrf.mxu3  ;;  %v7177_v34 = vld [vmem:[%s9479_s2 + $0x320] sm:$0xff]  ;;  %v3424_v47 = vld [vmem:[#allocation2 + $0x68] sm:$0xf] }
 0x20e   :  { %v3363_v23 = vadd.f32 %v3362_v30, %v3348_v3  ;;  %v3229_v48 = vadd.f32 %v3228_v37, %v3180_v8  ;;  %v3685_v50 = vunpack.c.l.b16 %v3422_v28  ;;  %v3686_v16 = vunpack.c.l.b16 %v3438_v59  ;;  %v7201_v37 = vld [vmem:[%s9479_s2 + $0x3e0] sm:$0xff]  ;;  %5965 = vmatpush.bf16.msra.mxu1 %v7177_v34 }
 0x20f   :  { %v3937_v35 = vpack.c.b16 %v3841_v22, %v3839_v6  ;;  %v3753_v53 = vor.u32 %v3752_v25, %v3748_v15  ;;  %v3760_v46 = vor.u32 %v3759_v19, %v3755_v38  ;;  %v8639_v61 = vpack.c.b16 %v3684_v32, %v3683_v33  ;;  %v3280_v14 = vpop.f32.mrf.mxu0  ;;  %6112 = vmatpush.bf16.msra.mxu0 %v7201_v37  ;;  %v3423_v28 = vld [vmem:[#allocation2 + $0x60] sm:$0xf]  ;;  %v3439_v54 = vld [vmem:[#allocation2 + $0x64] sm:$0x1] }
 0x210   :  { %4295 = vmatmul.bf16.gmra.mxu3 %v8559_v7  ;;  %4344 = vmatmul.bf16.gmra.mxu0 %v3935_v44  ;;  %v3278_v9 = vadd.f32 %v3277_v63, %v3229_v48  ;;  %v8642_v2 = vpack.c.b16 %v3686_v16, %v3685_v50  ;;  %v3570_v4 = vshrl.u32 %v8627_v43, 16  ;;  %v3572_v51 = vshll.u32 %v8627_v43, 16  ;;  %v3182_v5 = vpop.f32.mrf.mxu2 }
 0x211   :  { %v3840_v7 = vunpack.c.l.b16 %v3753_v53  ;;  %v3842_v55 = vunpack.c.l.b16 %v3760_v46  ;;  %v3577_v40 = vshrl.u32 %v8629_v42, 16  ;;  %v3579_v24 = vshll.u32 %v8629_v42, 16 }
 0x212   :  { %4202 = vmatmul.bf16.gmra.mxu1 %v8590_v56  ;;  %6634 = vst [vmem:[%s9481_s3 + $0x68] sm:$0xff] %v3278_v9  ;;  %v3326_v20 = vadd.f32 %v3325_v52, %v3278_v9  ;;  %v3349_v17 = vmul.f32 %v3278_v9, %v3278_v9  ;;  %v3574_v1 = vrot.slane %v3572_v51, 1  ;;  %v3495_v18 = vunpack.c.l.b16 %v3390_v41  ;;  %v8678_v51 = vld [vmem:[#allocation2 + $0x68] sm:$0xf]  ;;  %v3138_v31 = vpop.f32.mrf.mxu1 }
 0x213   :  { %v8664_v21 = vpack.c.b16 %v3685_v50, %v3683_v33  ;;  %v3581_v56 = vrot.slane %v3579_v24, 1  ;;  %v3183_v44 = vadd.f32 %v3182_v5, %v8625_v49  ;;  %v3496_v30 = vunpack.c.l.b16 %v3406_v60  ;;  %v3440_v33 = vld [vmem:[#allocation2 + $0x6c] sm:$0x1] }
 0x214   :  { %v3364_v10 = vadd.f32 %v3363_v23, %v3349_v17  ;;  %v3575_v43 = vor.u32 %v3574_v1, %v3570_v4  ;;  %v3497_v63 = vunpack.c.l.b16 %v3391_v26  ;;  %v3498_v39 = vunpack.c.l.b16 %v3407_v27  ;;  %v3409_v27 = vld [vmem:[#allocation2 + $0x74] sm:$0x1] }
 0x215   :  { %4251 = vmatmul.bf16.gmra.mxu2 %v3937_v35  ;;  %v3939_v6 = vpack.c.b16 %v3842_v55, %v3840_v7  ;;  %v3582_v29 = vor.u32 %v3581_v56, %v3577_v40  ;;  %v3232_v42 = vadd.f32 %v3231_v36, %v3183_v44  ;;  %v3519_v15 = vpack.c.b16 %v3496_v30, %v3495_v18  ;;  %v3233_v32 = vpop.f32.mrf.mxu3  ;;  %v3393_v7 = vld [vmem:[#allocation2 + $0x70] sm:$0xf]  ;;  %v3408_v55 = vld [vmem:[#allocation2 + $0x6c] sm:$0x1] }
 0x216   :  { %v3843_v22 = vunpack.c.l.b16 %v3575_v43  ;;  %v3520_v0 = vpack.c.b16 %v3498_v39, %v3497_v63  ;;  %v3762_v38 = vshrl.u32 %v8639_v61, 16  ;;  %v3764_v49 = vshll.u32 %v8639_v61, 16 }
 0x217   :  { %v3845_v59 = vunpack.c.l.b16 %v3582_v29  ;;  %v3281_v52 = vadd.f32 %v3280_v14, %v3232_v42  ;;  %v3769_v3 = vshrl.u32 %v8642_v2, 16  ;;  %v3771_v8 = vshll.u32 %v8642_v2, 16  ;;  %v3282_v46 = vpop.f32.mrf.mxu0  ;;  %v7184_v42 = vld [vmem:[%s9479_s2 + $0x358] sm:$0xff] }
 0x218   :  { %v8671_v25 = vpack.c.b16 %v3497_v63, %v3495_v18  ;;  %v3766_v19 = vrot.slane %v3764_v49, 1  ;;  %v3184_v23 = vpop.f32.mrf.mxu2  ;;  %v3687_v48 = vunpack.c.l.b16 %v3423_v28  ;;  %v3688_v50 = vunpack.c.l.b16 %v3439_v54  ;;  %v8697_v54 = vld [vmem:[#allocation2 + $0x70] sm:$0xf]  ;;  %v3441_v49 = vld [vmem:[#allocation2 + $0x74] sm:$0x1]  ;;  %6015 = vmatpush.bf16.msra.mxu2 %v7184_v42 }
 0x219   :  { %6635 = vst [vmem:[%s9481_s3 + $0x70] sm:$0xff] %v3281_v52  ;;  %v3327_v16 = vadd.f32 %v3326_v20, %v3281_v52  ;;  %v3350_v35 = vmul.f32 %v3281_v52, %v3281_v52  ;;  %v3773_v53 = vrot.slane %v3771_v8, 1  ;;  %v3689_v61 = vunpack.c.l.b16 %v3424_v47 }
 0x21a   :  { %v8676_v41 = vpack.c.b16 %v3845_v59, %v3843_v22  ;;  %v3767_v9 = vor.u32 %v3766_v19, %v3762_v38  ;;  %v3185_v2 = vadd.f32 %v3184_v23, %v3135_v11  ;;  %v3690_v4 = vunpack.c.l.b16 %v3440_v33  ;;  %v3426_v38 = vld [vmem:[#allocation2 + $0x78] sm:$0xf]  ;;  %v3442_v23 = vld [vmem:[#allocation2 + $0x7c] sm:$0x1] }
 0x21b   :  { %v3365_v36 = vadd.f32 %v3364_v10, %v3350_v35  ;;  %v3774_v13 = vor.u32 %v3773_v53, %v3769_v3  ;;  %v8680_v5 = vpack.c.b16 %v3688_v50, %v3687_v48  ;;  %v8682_v60 = vpack.c.b16 %v3689_v61, %v3687_v48  ;;  %v7176_v33 = vld [vmem:[%s9479_s2 + $0x318] sm:$0xff] }
 0x21c   :  { %v3844_v40 = vunpack.c.l.b16 %v3767_v9  ;;  %v3234_v24 = vadd.f32 %v3233_v32, %v3185_v2  ;;  %v3584_v14 = vshrl.u32 %v3519_v15, 16  ;;  %v3586_v26 = vshll.u32 %v3519_v15, 16  ;;  %v7192_v15 = vld [vmem:[%s9479_s2 + $0x398] sm:$0xff]  ;;  %5966 = vmatpush.bf16.msra.mxu1 %v7176_v33  ;;  %v3140_v9 = vpop.f32.mrf.mxu1 }
 0x21d   :  { %v3846_v20 = vunpack.c.l.b16 %v3774_v13  ;;  %v3591_v17 = vshrl.u32 %v3520_v0, 16  ;;  %v3593_v11 = vshll.u32 %v3520_v0, 16  ;;  %v3499_v1 = vunpack.c.l.b16 %v8678_v51  ;;  %v7200_v32 = vld [vmem:[%s9479_s2 + $0x3d8] sm:$0xff]  ;;  %6064 = vmatpush.bf16.msra.mxu3 %v7192_v15 }
 0x21e   :  { %v3283_v18 = vadd.f32 %v3282_v46, %v3234_v24  ;;  %v3588_v34 = vrot.slane %v3586_v26, 1  ;;  %v3500_v37 = vunpack.c.l.b16 %v3408_v55  ;;  %v3501_v56 = vunpack.c.l.b16 %v3393_v7  ;;  %6113 = vmatpush.bf16.msra.mxu0 %v7200_v32  ;;  %v3394_v55 = vld [vmem:[#allocation2 + $0x78] sm:$0xf]  ;;  %v3395_v26 = vld [vmem:[#allocation2 + $0x80] sm:$0xf] }
 0x21f   :  { %v8685_v44 = vpack.c.b16 %v3846_v20, %v3844_v40  ;;  %v3712_v30 = vpack.c.b16 %v3690_v4, %v3689_v61  ;;  %v3595_v10 = vrot.slane %v3593_v11, 1  ;;  %v3502_v43 = vunpack.c.l.b16 %v3409_v27  ;;  %v3285_v3 = vpop.f32.mrf.mxu0  ;;  %v3410_v27 = vld [vmem:[#allocation2 + $0x7c] sm:$0x1]  ;;  %v3444_v32 = vld [vmem:[#allocation2 + $0x8c] sm:$0x1] }
 0x220   :  { %4300 = vmatmul.bf16.gmra.mxu3 %v8623_v57  ;;  %4349 = vmatmul.bf16.gmra.mxu0 %v3939_v6  ;;  %6636 = vst [vmem:[%s9481_s3 + $0x78] sm:$0xff] %v3283_v18  ;;  %v3328_v63 = vadd.f32 %v3327_v16, %v3283_v18  ;;  %v3351_v39 = vmul.f32 %v3283_v18, %v3283_v18  ;;  %v3187_v28 = vpop.f32.mrf.mxu2  ;;  %v3776_v0 = vshrl.u32 %v8680_v5, 16  ;;  %v3778_v19 = vshll.u32 %v8680_v5, 16 }
 0x221   :  { %v3589_v29 = vor.u32 %v3588_v34, %v3584_v14  ;;  %v3596_v57 = vor.u32 %v3595_v10, %v3591_v17  ;;  %v3188_v6 = vadd.f32 %v3187_v28, %v3138_v31  ;;  %v8699_v22 = vpack.c.b16 %v3500_v37, %v3499_v1  ;;  %v3411_v34 = vld [vmem:[#allocation2 + $0x84] sm:$0x1] }
 0x222   :  { %4207 = vmatmul.bf16.gmra.mxu1 %v8637_v45  ;;  %v3366_v47 = vadd.f32 %v3365_v36, %v3351_v39  ;;  %v3236_v52 = vpop.f32.mrf.mxu3  ;;  %v3522_v8 = vpack.c.b16 %v3502_v43, %v3501_v56  ;;  %v3783_v50 = vshrl.u32 %v3712_v30, 16  ;;  %v3785_v16 = vshll.u32 %v3712_v30, 16 }
 0x223   :  { %v3847_v59 = vunpack.c.l.b16 %v3589_v29  ;;  %v3849_v48 = vunpack.c.l.b16 %v3596_v57  ;;  %v3237_v45 = vadd.f32 %v3236_v52, %v3188_v6  ;;  %v3780_v35 = vrot.slane %v3778_v19, 1  ;;  %v3427_v6 = vld [vmem:[#allocation2 + $0x80] sm:$0xf]  ;;  %v3428_v19 = vld [vmem:[#allocation2 + $0x88] sm:$0xf] }
 0x224   :  { %v3691_v53 = vunpack.c.l.b16 %v8697_v54  ;;  %v3692_v46 = vunpack.c.l.b16 %v3441_v49  ;;  %v3693_v61 = vunpack.c.l.b16 %v3426_v38  ;;  %v8712_v4 = vpack.c.b16 %v3501_v56, %v3499_v1 }
 0x225   :  { %4256 = vmatmul.bf16.gmra.mxu2 %v8676_v41  ;;  %v3286_v2 = vadd.f32 %v3285_v3, %v3237_v45  ;;  %v3787_v51 = vrot.slane %v3785_v16, 1  ;;  %v3694_v31 = vunpack.c.l.b16 %v3442_v23  ;;  %v8714_v36 = vpack.c.b16 %v3849_v48, %v3847_v59  ;;  %v3443_v59 = vld [vmem:[#allocation2 + $0x84] sm:$0x1] }
 0x226   :  { %v3781_v13 = vor.u32 %v3780_v35, %v3776_v0  ;;  %v8716_v5 = vpack.c.b16 %v3692_v46, %v3691_v53  ;;  %v3598_v7 = vshrl.u32 %v8699_v22, 16  ;;  %v3600_v11 = vshll.u32 %v8699_v22, 16 }
 0x227   :  { %6637 = vst [vmem:[%s9481_s3 + $0x140] sm:$0xff] %v3286_v2  ;;  %v3329_v40 = vadd.f32 %v3328_v63, %v3286_v2  ;;  %v3352_v41 = vmul.f32 %v3286_v2, %v3286_v2  ;;  %v3788_v24 = vor.u32 %v3787_v51, %v3783_v50  ;;  %v8722_v14 = vpack.c.b16 %v3694_v31, %v3693_v61  ;;  %v3287_v22 = vpop.f32.mrf.mxu0  ;;  %v7191_v2 = vld [vmem:[%s9479_s2 + $0x390] sm:$0xff] }
 0x228   :  { %v3848_v20 = vunpack.c.l.b16 %v3781_v13  ;;  %v3189_v17 = vpop.f32.mrf.mxu2  ;;  %v3605_v1 = vshrl.u32 %v3522_v8, 16  ;;  %v3607_v18 = vshll.u32 %v3522_v8, 16  ;;  %v3503_v10 = vunpack.c.l.b16 %v3394_v55  ;;  %6065 = vmatpush.bf16.msra.mxu3 %v7191_v2  ;;  %v3446_v2 = vld [vmem:[#allocation2 + $0x9c] sm:$0x1] }
 0x229   :  { %v3367_v37 = vadd.f32 %v3366_v47, %v3352_v41  ;;  %v3850_v56 = vunpack.c.l.b16 %v3788_v24  ;;  %v3190_v30 = vadd.f32 %v3189_v17, %v3140_v9  ;;  %v3602_v39 = vrot.slane %v3600_v11, 1  ;;  %v3143_v16 = vpop.f32.mrf.mxu1  ;;  %v7183_v9 = vld [vmem:[%s9479_s2 + $0x350] sm:$0xff]  ;;  %v8756_v41 = vld [vmem:[#allocation2 + $0x8] sm:$0xf]  ;;  %v8768_v11 = vld [vmem:[#allocation2 + $0xc] sm:$0x1] }
 0x22a   :  { %v3238_v43 = vpop.f32.mrf.mxu3  ;;  %v3609_v63 = vrot.slane %v3607_v18, 1  ;;  %v3504_v29 = vunpack.c.l.b16 %v3410_v27  ;;  %v3505_v42 = vunpack.c.l.b16 %v3395_v26  ;;  %v8727_v54 = vpack.c.b16 %v3693_v61, %v3691_v53  ;;  %6016 = vmatpush.bf16.msra.mxu2 %v7183_v9  ;;  %v7199_v27 = vld [vmem:[%s9479_s2 + $0x3d0] sm:$0xff] }
 0x22b   :  { %v8725_v15 = vpack.c.b16 %v3850_v56, %v3848_v20  ;;  %v3239_v28 = vadd.f32 %v3238_v43, %v3190_v30  ;;  %v3506_v57 = vunpack.c.l.b16 %v3411_v34  ;;  %v3603_v0 = vor.u32 %v3602_v39, %v3598_v7  ;;  %6114 = vmatpush.bf16.msra.mxu0 %v7199_v27 }
 0x22c   :  { %v3610_v38 = vor.u32 %v3609_v63, %v3605_v1  ;;  %v8729_v49 = vpack.c.b16 %v3504_v29, %v3503_v10  ;;  %v3790_v47 = vshrl.u32 %v8716_v5, 16  ;;  %v3792_v8 = vshll.u32 %v8716_v5, 16 }
 0x22d   :  { %v3288_v52 = vadd.f32 %v3287_v22, %v3239_v28  ;;  %v8732_v3 = vpack.c.b16 %v3506_v57, %v3505_v42  ;;  %v3797_v33 = vshrl.u32 %v8722_v14, 16  ;;  %v3851_v23 = vunpack.c.l.b16 %v3603_v0  ;;  %v8778_v28 = vld [vmem:[#allocation2 + $0x14] sm:$0x1]  ;;  %v3397_v22 = vld [vmem:[#allocation2 + $0x90] sm:$0xf] }
 0x22e   :  { %v3853_v48 = vunpack.c.l.b16 %v3610_v38  ;;  %v3799_v45 = vshll.u32 %v8722_v14, 16  ;;  %v3695_v50 = vunpack.c.l.b16 %v3427_v6  ;;  %v3794_v46 = vrot.slane %v3792_v8, 1  ;;  %v7175_v14 = vld [vmem:[%s9479_s2 + $0x310] sm:$0xff]  ;;  %v3396_v6 = vld [vmem:[#allocation2 + $0x88] sm:$0xf] }
 0x22f   :  { %6638 = vst [vmem:[%s9481_s3 + $0x148] sm:$0xff] %v3288_v52  ;;  %v8740_v35 = vadd.f32 %v3329_v40, %v3288_v52  ;;  %v3353_v53 = vmul.f32 %v3288_v52, %v3288_v52  ;;  %v3696_v61 = vunpack.c.l.b16 %v3443_v59  ;;  %v8750_v31 = vpack.c.b16 %v3505_v42, %v3503_v10  ;;  %5967 = vmatpush.bf16.msra.mxu1 %v7175_v14  ;;  %v3412_v0 = vld [vmem:[#allocation2 + $0x8c] sm:$0x1] }
 0x230   :  { %4305 = vmatmul.bf16.gmra.mxu3 %v8664_v21  ;;  %4354 = vmatmul.bf16.gmra.mxu0 %v8685_v44  ;;  %v3192_v51 = vpop.f32.mrf.mxu2  ;;  %v3801_v13 = vrot.slane %v3799_v45, 1  ;;  %v3697_v5 = vunpack.c.l.b16 %v3428_v19  ;;  %v3698_v7 = vunpack.c.l.b16 %v3444_v32  ;;  %v8754_v40 = vpack.c.b16 %v3853_v48, %v3851_v23 }
 0x231   :  { %v8752_v55 = vadd.f32 %v3367_v37, %v3353_v53  ;;  %v3795_v21 = vor.u32 %v3794_v46, %v3790_v47  ;;  %v3715_v44 = vpack.c.b16 %v3696_v61, %v3695_v50  ;;  %v8759_v24 = vadd.f32 %v3192_v51, %v3143_v16  ;;  %v8773_v37 = vld [vmem:[#allocation2 + $0x10] sm:$0xf]  ;;  %v3445_v16 = vld [vmem:[#allocation2 + $0x94] sm:$0x1]  ;;  %v3145_v53 = vpop.f32.mrf.mxu1 }
 0x232   :  { %4212 = vmatmul.bf16.gmra.mxu1 %v8671_v25  ;;  %v3802_v26 = vor.u32 %v3801_v13, %v3797_v33  ;;  %v3716_v20 = vpack.c.b16 %v3698_v7, %v3697_v5  ;;  %v3612_v17 = vshrl.u32 %v8729_v49, 16  ;;  %v3614_v25 = vshll.u32 %v8729_v49, 16  ;;  %v3429_v33 = vld [vmem:[#allocation2 + $0x90] sm:$0xf] }
 0x233   :  { %v3852_v1 = vunpack.c.l.b16 %v3795_v21  ;;  %v3619_v18 = vshrl.u32 %v8732_v3, 16  ;;  %v3621_v34 = vshll.u32 %v8732_v3, 16  ;;  %v8775_v30 = vpack.c.b16 %v3697_v5, %v3695_v50  ;;  %v3430_v50 = vld [vmem:[#allocation2 + $0x98] sm:$0xf] }
 0x234   :  { %v3854_v56 = vunpack.c.l.b16 %v3802_v26  ;;  %v3804_v10 = vshrl.u32 %v3715_v44, 16  ;;  %v3806_v43 = vshll.u32 %v3715_v44, 16  ;;  %v3616_v39 = vrot.slane %v3614_v25, 1 }
 0x235   :  { %4261 = vmatmul.bf16.gmra.mxu2 %v8714_v36  ;;  %v3623_v63 = vrot.slane %v3621_v34, 1  ;;  %v3811_v29 = vshrl.u32 %v3716_v20, 16  ;;  %v3813_v42 = vshll.u32 %v3716_v20, 16  ;;  %v4585_v38 = vunpack.c.l.b16 %v8756_v41  ;;  %v3413_v36 = vld [vmem:[#allocation2 + $0x94] sm:$0x1] }
 0x236   :  { %v8780_v57 = vpack.c.b16 %v3854_v56, %v3852_v1  ;;  %v4586_v49 = vunpack.c.l.b16 %v8768_v11  ;;  %v4587_v47 = vunpack.c.l.b16 %v8773_v37  ;;  %v3617_v59 = vor.u32 %v3616_v39, %v3612_v17  ;;  %v4490_v34 = vld [vmem:[#allocation2 + $0x10] sm:$0xe]  ;;  %v7181_v37 = vld [vmem:[%s9479_s2 + $0x340] sm:$0xff] }
 0x237   :  { %v3624_v52 = vor.u32 %v3623_v63, %v3619_v18  ;;  %v3507_v3 = vunpack.c.l.b16 %v3396_v6  ;;  %v3508_v8 = vunpack.c.l.b16 %v3412_v0  ;;  %v3509_v32 = vunpack.c.l.b16 %v3397_v22  ;;  %v4489_v18 = vld [vmem:[#allocation2 + $0x8] sm:$0xe]  ;;  %v8798_v6 = vld [vmem:[#allocation2 + $0x14] sm:$0x1] }
 0x238   :  { %v3194_v19 = vpop.f32.mrf.mxu2  ;;  %v3510_v23 = vunpack.c.l.b16 %v3413_v36  ;;  %v3808_v48 = vrot.slane %v3806_v43, 1  ;;  %v3815_v45 = vrot.slane %v3813_v42, 1  ;;  %v3855_v46 = vunpack.c.l.b16 %v3617_v59  ;;  %v3290_v43 = vpop.f32.mrf.mxu0  ;;  %v8796_v42 = vld [vmem:[#allocation2 + $0x10] sm:$0xf]  ;;  %v8803_v36 = vld [vmem:[#allocation2 + $0x18] sm:$0xf] }
 0x239   :  { %v3857_v61 = vunpack.c.l.b16 %v3624_v52  ;;  %v3525_v9 = vpack.c.b16 %v3508_v8, %v3507_v3  ;;  %v4588_v51 = vunpack.c.l.b16 %v8778_v28  ;;  %v8786_v13 = vadd.f32 %v3194_v19, %v3145_v53 }
 0x23a   :  { %v3809_v5 = vor.u32 %v3808_v48, %v3804_v10  ;;  %v3816_v7 = vor.u32 %v3815_v45, %v3811_v29  ;;  %v3699_v21 = vunpack.c.l.b16 %v3429_v33  ;;  %v3526_v14 = vpack.c.b16 %v3510_v23, %v3509_v32  ;;  %v4537_v23 = vld [vmem:[#allocation2 + $0x10] sm:$0xe]  ;;  %v7190_v45 = vld [vmem:[%s9479_s2 + $0x388] sm:$0xff] }
 0x23b   :  { %v8788_v44 = vpack.c.b16 %v3857_v61, %v3855_v46  ;;  %v3700_v26 = vunpack.c.l.b16 %v3445_v16  ;;  %v3701_v27 = vunpack.c.l.b16 %v3430_v50  ;;  %v3702_v1 = vunpack.c.l.b16 %v3446_v2  ;;  %v4538_v61 = vld [vmem:[#allocation2 + $0x18] sm:$0xe]  ;;  %6066 = vmatpush.bf16.msra.mxu3 %v7190_v45 }
 0x23c   :  { %v3856_v20 = vunpack.c.l.b16 %v3809_v5  ;;  %v3858_v17 = vunpack.c.l.b16 %v3816_v7  ;;  %v3628_v25 = vshll.u32 %v3525_v9, 16  ;;  %v8790_v39 = vpack.c.b16 %v3509_v32, %v3507_v3  ;;  %v8807_v32 = vld [vmem:[#allocation2 + $0x1c] sm:$0x1]  ;;  %v7174_v7 = vld [vmem:[%s9479_s2 + $0x308] sm:$0xff] }
 0x23d   :  { %v3241_v56 = vpop.f32.mrf.mxu3  ;;  %v8792_v63 = vpack.c.b16 %v3700_v26, %v3699_v21  ;;  %v8794_v10 = vpack.c.b16 %v3701_v27, %v3699_v21  ;;  %v3626_v29 = vshrl.u32 %v3525_v9, 16  ;;  %v3633_v52 = vshrl.u32 %v3526_v14, 16  ;;  %v7198_v21 = vld [vmem:[%s9479_s2 + $0x3c8] sm:$0xff]  ;;  %5968 = vmatpush.bf16.msra.mxu1 %v7174_v7 }
 0x23e   :  { %v3242_v22 = vadd.f32 %v3241_v56, %v8759_v24  ;;  %v8801_v0 = vpack.c.b16 %v3858_v17, %v3856_v20  ;;  %v3630_v59 = vrot.slane %v3628_v25, 1  ;;  %v8805_v8 = vpack.c.b16 %v3702_v1, %v3701_v27  ;;  %v7182_v24 = vld [vmem:[%s9479_s2 + $0x348] sm:$0xff]  ;;  %v8838_v1 = vld [vmem:[#allocation2 + $0x1c] sm:$0x1]  ;;  %6115 = vmatpush.bf16.msra.mxu0 %v7198_v21 }
 0x23f   :  { %v3635_v3 = vshll.u32 %v3526_v14, 16  ;;  %v4633_v33 = vunpack.c.l.b16 %v4489_v18  ;;  %v4634_v19 = vunpack.c.l.b16 %v4490_v34  ;;  %v4809_v16 = vunpack.c.l.b16 %v8796_v42  ;;  %6017 = vmatpush.bf16.msra.mxu2 %v7182_v24  ;;  %v7173_v42 = vld [vmem:[%s9479_s2 + $0x300] sm:$0xff] }
 0x240   :  { %4310 = vmatmul.bf16.gmra.mxu3 %v8682_v60  ;;  %4359 = vmatmul.bf16.gmra.mxu0 %v8725_v15  ;;  %v3291_v48 = vadd.f32 %v3290_v43, %v3242_v22  ;;  %v3631_v50 = vor.u32 %v3630_v59, %v3626_v29  ;;  %v4810_v53 = vunpack.c.l.b16 %v8798_v6  ;;  %v4811_v9 = vunpack.c.l.b16 %v8803_v36 }
 0x241   :  { %v3637_v46 = vrot.slane %v3635_v3, 1  ;;  %v4649_v60 = vpack.c.b16 %v4586_v49, %v4633_v33  ;;  %v4650_v15 = vpack.c.b16 %v4588_v51, %v4634_v19  ;;  %v4812_v14 = vunpack.c.l.b16 %v8807_v32  ;;  %5969 = vmatpush.bf16.msra.mxu1 %v7173_v42 }
 0x242   :  { %4217 = vmatmul.bf16.gmra.mxu1 %v8712_v4  ;;  %6639 = vst [vmem:[%s9481_s3 + $0x150] sm:$0xff] %v3291_v48  ;;  %v3331_v2 = vadd.f32 %v8740_v35, %v3291_v48  ;;  %v3354_v5 = vmul.f32 %v3291_v48, %v3291_v48  ;;  %v4857_v26 = vunpack.c.l.b16 %v4537_v23  ;;  %v8836_v4 = vld [vmem:[#allocation2 + $0x18] sm:$0xf]  ;;  %v3859_v20 = vunpack.c.l.b16 %v3631_v50  ;;  %v3292_v48 = vpop.f32.mrf.mxu0 }
 0x243   :  { %v3638_v27 = vor.u32 %v3637_v46, %v3633_v52  ;;  %v4666_v17 = vshrl.u32 %v4649_v60, 16  ;;  %v4668_v35 = vshll.u32 %v4649_v60, 16  ;;  %v4675_v18 = vshll.u32 %v4650_v15, 16  ;;  %v8844_v52 = vld [vmem:[#allocation2 + $0x20] sm:$0xf]  ;;  %6018 = vmatpush.bf16.msra.mxu2 %v7181_v37 }
 0x244   :  { %v3369_v25 = vadd.f32 %v8752_v55, %v3354_v5  ;;  %v4858_v34 = vunpack.c.l.b16 %v4538_v61  ;;  %v4873_v56 = vpack.c.b16 %v4810_v53, %v4857_v26  ;;  %v4673_v59 = vshrl.u32 %v4650_v15, 16  ;;  %v8853_v61 = vld [vmem:[#allocation2 + $0x24] sm:$0x1] }
 0x245   :  { %4266 = vmatmul.bf16.gmra.mxu2 %v8754_v40  ;;  %v3243_v43 = vpop.f32.mrf.mxu3  ;;  %v3861_v29 = vunpack.c.l.b16 %v3638_v27  ;;  %v4670_v22 = vrot.slane %v4668_v35, 1  ;;  %v4589_v3 = vunpack.c.l.b16 %v8836_v4  ;;  %v4677_v55 = vrot.slane %v4675_v18, 1 }
 0x246   :  { %v3244_v33 = vadd.f32 %v3243_v43, %v8786_v13  ;;  %v4874_v19 = vpack.c.b16 %v4812_v14, %v4858_v34  ;;  %v4590_v23 = vunpack.c.l.b16 %v8838_v1  ;;  %v4890_v45 = vshrl.u32 %v4873_v56, 16  ;;  %v3148_v34 = vpop.f32.mrf.mxu1 }
 0x247   :  { %v8851_v24 = vpack.c.b16 %v3861_v29, %v3859_v20  ;;  %v4671_v40 = vor.u32 %v4670_v22, %v4666_v17  ;;  %v4892_v50 = vshll.u32 %v4873_v56, 16  ;;  %v4678_v60 = vor.u32 %v4677_v55, %v4673_v59 }
 0x248   :  { %v3293_v46 = vadd.f32 %v3292_v48, %v3244_v33  ;;  %v4899_v15 = vshll.u32 %v4874_v19, 16  ;;  %v4591_v5 = vunpack.c.l.b16 %v8844_v52  ;;  %v4897_v26 = vshrl.u32 %v4874_v19, 16 }
 0x249   :  { %v5001_v13 = vunpack.c.l.b16 %v4671_v40  ;;  %v5003_v7 = vunpack.c.h.b16 %v4671_v40  ;;  %v4894_v21 = vrot.slane %v4892_v50, 1  ;;  %v5005_v35 = vunpack.c.l.b16 %v4678_v60 }
 0x24a   :  { %6640 = vst [vmem:[%s9481_s3 + $0x158] sm:$0xff] %v3293_v46  ;;  %v8859_v27 = vadd.f32 %v3331_v2, %v3293_v46  ;;  %v3355_v20 = vmul.f32 %v3293_v46, %v3293_v46  ;;  %v3197_v17 = vpop.f32.mrf.mxu2  ;;  %v5007_v18 = vunpack.c.h.b16 %v4678_v60  ;;  %v4592_v22 = vunpack.c.l.b16 %v8853_v61 }
 0x24b   :  { %v5065_v56 = vpack.c.b16 %v5001_v13, %v4585_v38  ;;  %v5067_v43 = vpack.c.b16 %v5003_v7, %v4586_v49  ;;  %v4895_v29 = vor.u32 %v4894_v21, %v4890_v45  ;;  %v5069_v2 = vpack.c.b16 %v5005_v35, %v4587_v47  ;;  %v4491_v13 = vld [vmem:[#allocation2 + $0x18] sm:$0xe]  ;;  %v4492_v7 = vld [vmem:[#allocation2 + $0x20] sm:$0xe] }
 0x24c   :  { %v8866_v59 = vadd.f32 %v3369_v25, %v3355_v20  ;;  %v5071_v33 = vpack.c.b16 %v5007_v18, %v4588_v51  ;;  %v4901_v55 = vrot.slane %v4899_v15, 1  ;;  %v3198_v45 = vadd.f32 %v3197_v17, %v3148_v34 }
 0x24d   :  { %v5130_v19 = vshrl.u32 %v5065_v56, 16  ;;  %v5133_v48 = vshll.u32 %v5065_v56, 16  ;;  %v5139_v40 = vshll.u32 %v5067_v43, 16  ;;  %v5002_v41 = vunpack.c.l.b16 %v4895_v29  ;;  %v7189_v56 = vld [vmem:[%s9479_s2 + $0x380] sm:$0xff] }
 0x24e   :  { %v5158_v38 = vshrl.u32 %v5069_v2, 16  ;;  %v5161_v50 = vshll.u32 %v5069_v2, 16  ;;  %v5167_v11 = vshll.u32 %v5071_v33, 16  ;;  %v4902_v49 = vor.u32 %v4901_v55, %v4897_v26  ;;  %v3150_v2 = vpop.f32.mrf.mxu1  ;;  %6067 = vmatpush.bf16.msra.mxu3 %v7189_v56 }
 0x24f   :  { %v5132_v46 = vrot.slane %v5130_v19, 4  ;;  %v5135_v60 = vrot.slane %v5133_v48, 5  ;;  %v5004_v25 = vunpack.c.h.b16 %v4895_v29  ;;  %v5141_v28 = vrot.slane %v5139_v40, 5 }
 0x250   :  { %4315 = vmatmul.bf16.gmra.mxu3 %v8727_v54  ;;  %4364 = vmatmul.bf16.gmra.mxu0 %v8780_v57  ;;  %v5160_v47 = vrot.slane %v5158_v38, 4  ;;  %v5163_v51 = vrot.slane %v5161_v50, 5  ;;  %v5006_v15 = vunpack.c.l.b16 %v4902_v49  ;;  %v5008_v26 = vunpack.c.h.b16 %v4902_v49 }
 0x251   :  { %v5136_v21 = vor.u32 %v5135_v60, %v5132_v46  ;;  %v5066_v20 = vpack.c.b16 %v5002_v41, %v4809_v16  ;;  %v5068_v17 = vpack.c.b16 %v5004_v25, %v4810_v53  ;;  %v5169_v57 = vrot.slane %v5167_v11, 5 }
 0x252   :  { %4222 = vmatmul.bf16.gmra.mxu1 %v8750_v31  ;;  %v5164_v54 = vor.u32 %v5163_v51, %v5160_v47  ;;  %v5070_v35 = vpack.c.b16 %v5006_v15, %v4811_v9  ;;  %v4635_v18 = vunpack.c.l.b16 %v4491_v13  ;;  %v3199_v34 = vpop.f32.mrf.mxu2  ;;  %v5072_v31 = vpack.c.b16 %v5008_v26, %v4812_v14 }
 0x253   :  { %v5137_v6 = vrot.slane %v5136_v21, 4  ;;  %v5144_v16 = vshrl.u32 %v5066_v20, 16  ;;  %v4636_v53 = vunpack.c.l.b16 %v4492_v7  ;;  %v5147_v29 = vshll.u32 %v5066_v20, 16 }
 0x254   :  { %v5165_v43 = vrot.slane %v5164_v54, 4  ;;  %v5153_v36 = vshll.u32 %v5068_v17, 16  ;;  %v5172_v9 = vshrl.u32 %v5070_v35, 16  ;;  %v5175_v19 = vshll.u32 %v5070_v35, 16  ;;  %v7197_v54 = vld [vmem:[%s9479_s2 + $0x3c0] sm:$0xff] }
 0x255   :  { %4271 = vmatmul.bf16.gmra.mxu2 %v8788_v44  ;;  %v5142_v33 = vsel %vm7806_vm8, %v5137_v6, %v5141_v28  ;;  %v5146_v55 = vrot.slane %v5144_v16, 4  ;;  %v5181_v48 = vshll.u32 %v5072_v31, 16  ;;  %v3200_v40 = vadd.f32 %v3199_v34, %v3150_v2  ;;  %v3295_v44 = vpop.f32.mrf.mxu0  ;;  %6116 = vmatpush.bf16.msra.mxu0 %v7197_v54 }
 0x256   :  { %v5170_v32 = vsel %vm7806_vm8, %v5165_v43, %v5169_v57  ;;  %v5642_v14 = vunpack.c.l.b16 %v5142_v33  ;;  %v5149_v41 = vrot.slane %v5147_v29, 5  ;;  %v5155_v50 = vrot.slane %v5153_v36, 5 }
 0x257   :  { %v5646_v38 = vunpack.c.l.b16 %v5170_v32  ;;  %v5174_v11 = vrot.slane %v5172_v9, 4  ;;  %v5177_v49 = vrot.slane %v5175_v19, 5  ;;  %v5183_v25 = vrot.slane %v5181_v48, 5  ;;  %v8921_v19 = vld [vmem:[#allocation2 + $0x24] sm:$0x1] }
 0x258   :  { %v3246_v46 = vpop.f32.mrf.mxu3  ;;  %v5150_v60 = vor.u32 %v5149_v41, %v5146_v55  ;;  %v5647_v13 = vunpack.c.h.b16 %v5170_v32  ;;  %v4651_v37 = vpack.c.b16 %v4590_v23, %v4635_v18  ;;  %v5643_v15 = vunpack.c.h.b16 %v5142_v33 }
 0x259   :  { %v3247_v28 = vadd.f32 %v3246_v46, %v3198_v45  ;;  %v8899_v47 = vpack.c.b16 %v5646_v38, %v5642_v14  ;;  %v5178_v51 = vor.u32 %v5177_v49, %v5174_v11  ;;  %v3818_v7 = vshrl.u32 %v8792_v63, 16  ;;  %v8925_v38 = vld [vmem:[#allocation2 + $0x2c] sm:$0x1] }
 0x25a   :  { %v3820_v21 = vshll.u32 %v8792_v63, 16  ;;  %v3825_v26 = vshrl.u32 %v8805_v8, 16  ;;  %v3827_v20 = vshll.u32 %v8805_v8, 16  ;;  %v5151_v57 = vrot.slane %v5150_v60, 4  ;;  %v4539_v60 = vld [vmem:[#allocation2 + $0x20] sm:$0xe] }
 0x25b   :  { %v3296_v17 = vadd.f32 %v3295_v44, %v3247_v28  ;;  %v5179_v35 = vrot.slane %v5178_v51, 4  ;;  %v4652_v45 = vpack.c.b16 %v4592_v22, %v4636_v53  ;;  %v8910_v56 = vpack.c.b16 %v5647_v13, %v5643_v15  ;;  %v8927_v44 = vld [vmem:[#allocation2 + $0x20] sm:$0xf] }
 0x25c   :  { %v3822_v18 = vrot.slane %v3820_v21, 1  ;;  %v3829_v34 = vrot.slane %v3827_v20, 1  ;;  %v4682_v42 = vshll.u32 %v4651_v37, 16  ;;  %v5156_v6 = vsel %vm7806_vm8, %v5151_v57, %v5155_v50  ;;  %v4540_v50 = vld [vmem:[#allocation2 + $0x28] sm:$0xe] }
 0x25d   :  { %6641 = vst [vmem:[%s9481_s3 + $0x160] sm:$0xff] %v3296_v17  ;;  %v3333_v63 = vadd.f32 %v8859_v27, %v3296_v17  ;;  %v3356_v8 = vmul.f32 %v3296_v17, %v3296_v17  ;;  %v4680_v31 = vshrl.u32 %v4651_v37, 16  ;;  %v5184_v53 = vsel %vm7806_vm8, %v5179_v35, %v5183_v25 }
 0x25e   :  { %v3823_v16 = vor.u32 %v3822_v18, %v3818_v7  ;;  %v3830_v43 = vor.u32 %v3829_v34, %v3825_v26  ;;  %v5644_v29 = vunpack.c.l.b16 %v5156_v6  ;;  %v5648_v2 = vunpack.c.l.b16 %v5184_v53  ;;  %v8937_v7 = vld [vmem:[#allocation2 + $0x28] sm:$0xf] }
 0x25f   :  { %v3153_v36 = vpop.f32.mrf.mxu1  ;;  %v3371_v9 = vadd.f32 %v8866_v59, %v3356_v8  ;;  %v4684_v33 = vrot.slane %v4682_v42, 1  ;;  %v4689_v55 = vshll.u32 %v4652_v45, 16  ;;  %v5645_v14 = vunpack.c.h.b16 %v5156_v6 }
 0x260   :  { %4320 = vmatmul.bf16.gmra.mxu3 %v8775_v30  ;;  %4369 = vmatmul.bf16.gmra.mxu0 %v8801_v0  ;;  %v3248_v27 = vpop.f32.mrf.mxu3  ;;  %v3860_v48 = vunpack.c.l.b16 %v3823_v16  ;;  %v3862_v32 = vunpack.c.l.b16 %v3830_v43  ;;  %v5649_v41 = vunpack.c.h.b16 %v5184_v53  ;;  %v4687_v59 = vshrl.u32 %v4652_v45, 16  ;;  %v3297_v30 = vpop.f32.mrf.mxu0  ;;  %v8964_v43 = vld [vmem:[#allocation2 + $0x2c] sm:$0x1] }
 0x261   :  { %v3249_v11 = vadd.f32 %v3248_v27, %v3200_v40  ;;  %v4685_v49 = vor.u32 %v4684_v33, %v4680_v31  ;;  %v4691_v46 = vrot.slane %v4689_v55, 1  ;;  %v8932_v0 = vpack.c.b16 %v5648_v2, %v5644_v29  ;;  %v8968_v33 = vld [vmem:[#allocation2 + $0x34] sm:$0x1]  ;;  %v8970_v55 = vld [vmem:[#allocation2 + $0x30] sm:$0xf] }
 0x262   :  { %4227 = vmatmul.bf16.gmra.mxu1 %v8790_v39  ;;  %v8930_v25 = vpack.c.b16 %v3862_v32, %v3860_v48  ;;  %v8934_v13 = vpack.c.b16 %v5649_v41, %v5645_v14  ;;  %v4814_v37 = vunpack.c.l.b16 %v8921_v19  ;;  %v4813_v21 = vunpack.c.l.b16 %v8927_v44  ;;  %v4493_v41 = vld [vmem:[#allocation2 + $0x28] sm:$0xe] }
 0x263   :  { %v3298_v28 = vadd.f32 %v3297_v30, %v3249_v11  ;;  %v4692_v51 = vor.u32 %v4691_v46, %v4687_v59  ;;  %v5009_v40 = vunpack.c.l.b16 %v4685_v49  ;;  %v5011_v15 = vunpack.c.h.b16 %v4685_v49 }
 0x264   :  { %v4816_v26 = vunpack.c.l.b16 %v8925_v38  ;;  %v4859_v39 = vunpack.c.l.b16 %v4539_v60  ;;  %v4860_v20 = vunpack.c.l.b16 %v4540_v50  ;;  %v4815_v42 = vunpack.c.l.b16 %v8937_v7 }
 0x265   :  { %6642 = vst [vmem:[%s9481_s3 + $0x168] sm:$0xff] %v3298_v28  ;;  %v8944_v17 = vadd.f32 %v3333_v63, %v3298_v28  ;;  %v3357_v54 = vmul.f32 %v3298_v28, %v3298_v28  ;;  %4276 = vmatmul.bf16.gmra.mxu2 %v8851_v24  ;;  %v3202_v57 = vpop.f32.mrf.mxu2  ;;  %v5013_v35 = vunpack.c.l.b16 %v4692_v51  ;;  %v5015_v45 = vunpack.c.h.b16 %v4692_v51  ;;  %v4494_v51 = vld [vmem:[#allocation2 + $0x30] sm:$0xe] }
 0x266   :  { %v5073_v18 = vpack.c.b16 %v5009_v40, %v4589_v3  ;;  %v5075_v34 = vpack.c.b16 %v5011_v15, %v4590_v23  ;;  %v4875_v8 = vpack.c.b16 %v4814_v37, %v4859_v39  ;;  %v8956_v31 = vadd.f32 %v3202_v57, %v3153_v36  ;;  %v8966_v36 = vld [vmem:[#allocation2 + $0x28] sm:$0xf] }
 0x267   :  { %v3155_v6 = vpop.f32.mrf.mxu1  ;;  %v8954_v63 = vadd.f32 %v3371_v9, %v3357_v54  ;;  %v5077_v24 = vpack.c.b16 %v5013_v35, %v4591_v5  ;;  %v5079_v4 = vpack.c.b16 %v5015_v45, %v4592_v22  ;;  %v4876_v23 = vpack.c.b16 %v4816_v26, %v4860_v20  ;;  %v8976_v35 = vld [vmem:[#allocation2 + $0x30] sm:$0xf] }
 0x268   :  { %v5186_v3 = vshrl.u32 %v5073_v18, 16  ;;  %v5189_v16 = vshll.u32 %v5073_v18, 16  ;;  %v5195_v1 = vshll.u32 %v5075_v34, 16  ;;  %v4906_v2 = vshll.u32 %v4875_v8, 16 }
 0x269   :  { %v5214_v53 = vshrl.u32 %v5077_v24, 16  ;;  %v5217_v29 = vshll.u32 %v5077_v24, 16  ;;  %v5223_v9 = vshll.u32 %v5079_v4, 16  ;;  %v4904_v22 = vshrl.u32 %v4875_v8, 16 }
 0x26a   :  { %v5188_v52 = vrot.slane %v5186_v3, 4  ;;  %v5191_v5 = vrot.slane %v5189_v16, 5  ;;  %v5197_v61 = vrot.slane %v5195_v1, 5  ;;  %v4908_v32 = vrot.slane %v4906_v2, 1 }
 0x26b   :  { %v5216_v27 = vrot.slane %v5214_v53, 4  ;;  %v5219_v48 = vrot.slane %v5217_v29, 5  ;;  %v4911_v14 = vshrl.u32 %v4876_v23, 16  ;;  %v5225_v11 = vrot.slane %v5223_v9, 5 }
 0x26c   :  { %v5192_v50 = vor.u32 %v5191_v5, %v5188_v52  ;;  %v4913_v49 = vshll.u32 %v4876_v23, 16  ;;  %v4594_v59 = vunpack.c.l.b16 %v8964_v43  ;;  %v4909_v28 = vor.u32 %v4908_v32, %v4904_v22 }
 0x26d   :  { %v3300_v46 = vpop.f32.mrf.mxu0  ;;  %v3204_v60 = vpop.f32.mrf.mxu2  ;;  %v5220_v30 = vor.u32 %v5219_v48, %v5216_v27  ;;  %v4593_v40 = vunpack.c.l.b16 %v8966_v36  ;;  %v4595_v15 = vunpack.c.l.b16 %v8970_v55  ;;  %v4596_v54 = vunpack.c.l.b16 %v8968_v33 }
 0x26e   :  { %v5193_v39 = vrot.slane %v5192_v50, 4  ;;  %v4915_v20 = vrot.slane %v4913_v49, 1  ;;  %v4637_v57 = vunpack.c.l.b16 %v4493_v41  ;;  %v8978_v18 = vadd.f32 %v3204_v60, %v3155_v6 }
 0x26f   :  { %v4193_v45 = vpop.f32.mrf.mxu1  ;;  %v5221_v34 = vrot.slane %v5220_v30, 4  ;;  %v5010_v8 = vunpack.c.l.b16 %v4909_v28  ;;  %v5012_v24 = vunpack.c.h.b16 %v4909_v28  ;;  %v4638_v16 = vunpack.c.l.b16 %v4494_v51 }
 0x270   :  { %4325 = vmatmul.bf16.gmra.mxu3 %v8794_v10  ;;  %4374 = vmatmul.bf16.gmra.mxu0 %v8930_v25  ;;  %v5198_v4 = vsel %vm7806_vm8, %v5193_v39, %v5197_v61  ;;  %v4916_v3 = vor.u32 %v4915_v20, %v4911_v14  ;;  %v4653_v1 = vpack.c.b16 %v4594_v59, %v4637_v57  ;;  %v4817_v10 = vunpack.c.l.b16 %v8976_v35  ;;  %v9008_v39 = vld [vmem:[#allocation2 + $0x34] sm:$0x1] }
 0x271   :  { %v5226_v23 = vsel %vm7806_vm8, %v5221_v34, %v5225_v11  ;;  %v5074_v6 = vpack.c.b16 %v5010_v8, %v4813_v21  ;;  %v5076_v53 = vpack.c.b16 %v5012_v24, %v4814_v37  ;;  %v5650_v25 = vunpack.c.l.b16 %v5198_v4  ;;  %v9010_v24 = vld [vmem:[#allocation2 + $0x38] sm:$0xf] }
 0x272   :  { %5970 = vmatmul.bf16.vlgmr.msra.gmra.mxu1 %v8899_v47  ;;  %v5654_v29 = vunpack.c.l.b16 %v5226_v23  ;;  %v5014_v9 = vunpack.c.l.b16 %v4916_v3  ;;  %v5016_v2 = vunpack.c.h.b16 %v4916_v3  ;;  %v5651_v27 = vunpack.c.h.b16 %v5198_v4 }
 0x273   :  { %v3251_v52 = vpop.f32.mrf.mxu3  ;;  %v5200_v5 = vshrl.u32 %v5074_v6, 16  ;;  %v5203_v61 = vshll.u32 %v5074_v6, 16  ;;  %v5209_v22 = vshll.u32 %v5076_v53, 16  ;;  %v5655_v37 = vunpack.c.h.b16 %v5226_v23 }
 0x274   :  { %v3252_v48 = vadd.f32 %v3251_v52, %v8956_v31  ;;  %v5078_v44 = vpack.c.b16 %v5014_v9, %v4815_v42  ;;  %v5080_v19 = vpack.c.b16 %v5016_v2, %v4816_v26  ;;  %v9000_v47 = vpack.c.b16 %v5654_v29, %v5650_v25  ;;  %v9017_v25 = vld [vmem:[#allocation2 + $0x3c] sm:$0x1] }
 0x275   :  { %v3302_v21 = vpop.f32.mrf.mxu0  ;;  %6019 = vmatmul.bf16.vlgmr.msra.gmra.mxu2 %v8910_v56  ;;  %v5202_v32 = vrot.slane %v5200_v5, 4  ;;  %v5205_v14 = vrot.slane %v5203_v61, 5  ;;  %v5211_v41 = vrot.slane %v5209_v22, 5  ;;  %v4654_v7 = vpack.c.b16 %v4596_v54, %v4638_v16  ;;  %v9021_v5 = vld [vmem:[#allocation2 + $0x30] sm:$0xe] }
 0x276   :  { %v3301_v50 = vadd.f32 %v3300_v46, %v3252_v48  ;;  %v5228_v11 = vshrl.u32 %v5078_v44, 16  ;;  %v5231_v49 = vshll.u32 %v5078_v44, 16  ;;  %v5237_v60 = vshll.u32 %v5080_v19, 16 }
 0x277   :  { %v4195_v31 = vpop.f32.mrf.mxu1  ;;  %v5206_v30 = vor.u32 %v5205_v14, %v5202_v32  ;;  %v4694_v38 = vshrl.u32 %v4653_v1, 16  ;;  %v4696_v26 = vshll.u32 %v4653_v1, 16  ;;  %v5711_v34 = vpack.c.b16 %v5655_v37, %v5651_v27 }
 0x278   :  { %6643 = vst [vmem:[%s9481_s3 + $0x170] sm:$0xff] %v3301_v50  ;;  %v3335_v56 = vadd.f32 %v8944_v17, %v3301_v50  ;;  %v3358_v42 = vmul.f32 %v3301_v50, %v3301_v50  ;;  %v4242_v28 = vpop.f32.mrf.mxu2  ;;  %v5230_v51 = vrot.slane %v5228_v11, 4  ;;  %v5233_v46 = vrot.slane %v5231_v49, 5 }
 0x279   :  { %v5207_v20 = vrot.slane %v5206_v30, 4  ;;  %v5239_v57 = vrot.slane %v5237_v60, 5  ;;  %v4698_v8 = vrot.slane %v4696_v26, 1  ;;  %v4701_v16 = vshrl.u32 %v4654_v7, 16 }
 0x27a   :  { %v3373_v4 = vadd.f32 %v8954_v63, %v3358_v42  ;;  %v5234_v3 = vor.u32 %v5233_v46, %v5230_v51  ;;  %v4703_v1 = vshll.u32 %v4654_v7, 16  ;;  %v4243_v6 = vadd.f32 %v4242_v28, %v4193_v45 }
 0x27b   :  { %v3253_v23 = vpop.f32.mrf.mxu3  ;;  %v9015_v17 = vsel %vm7806_vm8, %v5207_v20, %v5211_v41  ;;  %v4699_v53 = vor.u32 %v4698_v8, %v4694_v38  ;;  %v4818_v29 = vunpack.c.l.b16 %v9008_v39  ;;  %v4819_v63 = vunpack.c.l.b16 %v9010_v24 }
 0x27c   :  { %v3254_v9 = vadd.f32 %v3253_v23, %v8978_v18  ;;  %v5235_v2 = vrot.slane %v5234_v3, 4  ;;  %v4705_v52 = vrot.slane %v4703_v1, 1  ;;  %v5652_v45 = vunpack.c.l.b16 %v9015_v17  ;;  %v4542_v3 = vld [vmem:[#allocation2 + $0x38] sm:$0xe] }
 0x27d   :  { %v4340_v61 = vpop.f32.mrf.mxu0  ;;  %v5017_v22 = vunpack.c.l.b16 %v4699_v53  ;;  %v5019_v27 = vunpack.c.h.b16 %v4699_v53  ;;  %v5653_v48 = vunpack.c.h.b16 %v9015_v17  ;;  %v4820_v18 = vunpack.c.l.b16 %v9017_v25 }
 0x27e   :  { %v3303_v44 = vadd.f32 %v3302_v21, %v3254_v9  ;;  %v5240_v19 = vsel %vm7806_vm8, %v5235_v2, %v5239_v57  ;;  %v4706_v37 = vor.u32 %v4705_v52, %v4701_v16  ;;  %v4861_v50 = vunpack.c.l.b16 %v9021_v5 }
 0x27f   :  { %v5656_v32 = vunpack.c.l.b16 %v5240_v19  ;;  %v5081_v14 = vpack.c.b16 %v5017_v22, %v4593_v40  ;;  %v5083_v41 = vpack.c.b16 %v5019_v27, %v4594_v59  ;;  %v4198_v36 = vpop.f32.mrf.mxu1  ;;  %v5657_v59 = vunpack.c.h.b16 %v5240_v19 }
 0x280   :  { %6644 = vst [vmem:[%s9481_s3 + $0x178] sm:$0xff] %v3303_v44  ;;  %v3336_v21 = vadd.f32 %v3335_v56, %v3303_v44  ;;  %v3359_v11 = vmul.f32 %v3303_v44, %v3303_v44  ;;  %6068 = vmatmul.bf16.vlgmr.msra.gmra.mxu3 %v8932_v0  ;;  %6117 = vmatmul.bf16.vlgmr.msra.gmra.mxu0 %v8934_v13  ;;  %v4244_v49 = vpop.f32.mrf.mxu2  ;;  %v5021_v60 = vunpack.c.l.b16 %v4706_v37  ;;  %v5023_v30 = vunpack.c.h.b16 %v4706_v37 }
 0x281   :  { %v4245_v40 = vadd.f32 %v4244_v49, %v4195_v31  ;;  %v5242_v7 = vshrl.u32 %v5081_v14, 16  ;;  %v5245_v43 = vshll.u32 %v5081_v14, 16  ;;  %v9044_v13 = vpack.c.b16 %v5656_v32, %v5652_v45 }
 0x282   :  { %v3337_v38 = vrot.slane %v3336_v21, 4  ;;  %v3374_v26 = vadd.f32 %v3373_v4, %v3359_v11  ;;  %5975 = vmatmul.bf16.gmra.mxu1 %v9000_v47  ;;  %v5085_v56 = vpack.c.b16 %v5021_v60, %v4595_v15  ;;  %v5087_v0 = vpack.c.b16 %v5023_v30, %v4596_v54 }
 0x283   :  { %v4291_v42 = vpop.f32.mrf.mxu3  ;;  %v5244_v28 = vrot.slane %v5242_v7, 4  ;;  %v5247_v51 = vrot.slane %v5245_v43, 5  ;;  %v5251_v46 = vshll.u32 %v5083_v41, 16  ;;  %v5713_v9 = vpack.c.b16 %v5657_v59, %v5653_v48  ;;  %v9055_v59 = vld [vmem:[#allocation2 + $0x38] sm:$0xf] }
 0x284   :  { %v3338_v31 = vadd.f32 %v3337_v38, %v3336_v21  ;;  %v3375_v20 = vrot.slane %v3374_v26, 4  ;;  %v4292_v57 = vadd.f32 %v4291_v42, %v4243_v6  ;;  %v5270_v8 = vshrl.u32 %v5085_v56, 16 }
 0x285   :  { %v4342_v4 = vpop.f32.mrf.mxu0  ;;  %6024 = vmatmul.bf16.gmra.mxu2 %v5711_v34  ;;  %v5248_v47 = vor.u32 %v5247_v51, %v5244_v28  ;;  %v5253_v16 = vrot.slane %v5251_v46, 5  ;;  %v5273_v55 = vshll.u32 %v5085_v56, 16  ;;  %v5279_v15 = vshll.u32 %v5087_v0, 16 }
 0x286   :  { %v3339_v1 = vrot.slane %v3338_v31, 2  ;;  %v3376_v33 = vadd.f32 %v3375_v20, %v3374_v26  ;;  %v4341_v54 = vadd.f32 %v4340_v61, %v4292_v57  ;;  %v5272_v23 = vrot.slane %v5270_v8, 4 }
 0x287   :  { %v5249_v17 = vrot.slane %v5248_v47, 4  ;;  %v5275_v53 = vrot.slane %v5273_v55, 5  ;;  %v4862_v2 = vunpack.c.l.b16 %v4542_v3  ;;  %v5281_v34 = vrot.slane %v5279_v15, 5  ;;  %v4200_v41 = vpop.f32.mrf.mxu1 }
 0x288   :  { %v3340_v52 = vadd.f32 %v3339_v1, %v3338_v31  ;;  %v3377_v5 = vrot.slane %v3376_v33, 2  ;;  %6837 = vst [vmem:[%s9481_s3 + $0x80] sm:$0xff] %v4341_v54  ;;  %v4247_v6 = vpop.f32.mrf.mxu2  ;;  %v4877_v45 = vpack.c.b16 %v4818_v29, %v4861_v50  ;;  %v4419_v22 = vmul.f32 %v4341_v54, %v4341_v54  ;;  %v9062_v31 = vld [vmem:[#allocation2 + $0x3c] sm:$0x1] }
 0x289   :  { %v5254_v61 = vsel %vm7806_vm8, %v5249_v17, %v5253_v16  ;;  %v5276_v27 = vor.u32 %v5275_v53, %v5272_v23  ;;  %v4878_v48 = vpack.c.b16 %v4820_v18, %v4862_v2  ;;  %v4248_v37 = vadd.f32 %v4247_v6, %v4198_v36  ;;  %v9072_v16 = vld [vmem:[#allocation2 + $0x44] sm:$0x1] }
 0x28a   :  { %v3341_v44 = vrot.slane %v3340_v52, 1  ;;  %v3378_v19 = vadd.f32 %v3377_v5, %v3376_v33  ;;  %v4918_v32 = vshrl.u32 %v4877_v45, 16  ;;  %v4920_v11 = vshll.u32 %v4877_v45, 16  ;;  %v4495_v33 = vld [vmem:[#allocation2 + $0x38] sm:$0xe] }
 0x28b   :  { %v4293_v14 = vpop.f32.mrf.mxu3  ;;  %v5277_v21 = vrot.slane %v5276_v27, 4  ;;  %v4925_v49 = vshrl.u32 %v4878_v48, 16  ;;  %v4927_v60 = vshll.u32 %v4878_v48, 16  ;;  %v5658_v43 = vunpack.c.l.b16 %v5254_v61 }
 0x28c   :  { %v3342_v30 = vadd.f32 %v3341_v44, %v3340_v52  ;;  %v3379_v50 = vrot.slane %v3378_v19, 1  ;;  %v4294_v7 = vadd.f32 %v4293_v14, %v4245_v40  ;;  %v4922_v56 = vrot.slane %v4920_v11, 1  ;;  %v4496_v52 = vld [vmem:[#allocation2 + $0x40] sm:$0xe] }
 0x28d   :  { %v4345_v38 = vpop.f32.mrf.mxu0  ;;  %v5282_v26 = vsel %vm7806_vm8, %v5277_v21, %v5281_v34  ;;  %v4929_v0 = vrot.slane %v4927_v60, 1  ;;  %v5659_v36 = vunpack.c.h.b16 %v5254_v61  ;;  %v4597_v8 = vunpack.c.l.b16 %v9055_v59  ;;  %v9084_v61 = vld [vmem:[#allocation2 + $0x40] sm:$0xf] }
 0x28e   :  { %v9060_v42 = vadd.f32 %v3342_v30, %v8555_v58  ;;  %v3380_v28 = vadd.f32 %v3379_v50, %v3378_v19  ;;  %v4343_v51 = vadd.f32 %v4342_v4, %v4294_v7  ;;  %v5662_v46 = vunpack.c.l.b16 %v5282_v26 }
 0x28f   :  { %v4923_v20 = vor.u32 %v4922_v56, %v4918_v32  ;;  %v4930_v40 = vor.u32 %v4929_v0, %v4925_v49  ;;  %v5663_v57 = vunpack.c.h.b16 %v5282_v26  ;;  %v4598_v23 = vunpack.c.l.b16 %v9062_v31  ;;  %v4203_v48 = vpop.f32.mrf.mxu1 }
 0x290   :  { %v9066_v3 = vadd.f32 %v3380_v28, %v8561_v12  ;;  %6838 = vst [vmem:[%s9481_s3 + $0x88] sm:$0xff] %v4343_v51  ;;  %v4397_v47 = vadd.f32 %v4343_v51, %v4341_v54  ;;  %v4420_v58 = vmul.f32 %v4343_v51, %v4343_v51  ;;  %6073 = vmatmul.bf16.gmra.mxu3 %v9044_v13  ;;  %v4249_v4 = vpop.f32.mrf.mxu2  ;;  %v4600_v6 = vunpack.c.l.b16 %v9072_v16  ;;  %v9096_v28 = vld [vmem:[#allocation2 + $0x44] sm:$0x1]  ;;  %v9098_v51 = vld [vmem:[#allocation2 + $0x4c] sm:$0x1] }
 0x291   :  { %6122 = vmatmul.bf16.gmra.mxu0 %v5713_v9  ;;  %v5714_v55 = vpack.c.b16 %v5662_v46, %v5658_v43  ;;  %v5018_v15 = vunpack.c.l.b16 %v4923_v20  ;;  %v5020_v1 = vunpack.c.h.b16 %v4923_v20  ;;  %v4250_v17 = vadd.f32 %v4249_v4, %v4200_v41 }
 0x292   :  { %v4435_v12 = vadd.f32 %v4420_v58, %v4419_v22  ;;  %v5022_v53 = vunpack.c.l.b16 %v4930_v40  ;;  %v5024_v2 = vunpack.c.h.b16 %v4930_v40  ;;  %v5715_v9 = vpack.c.b16 %v5663_v57, %v5659_v36 }
 0x293   :  { %v4296_v5 = vpop.f32.mrf.mxu3  ;;  %5980 = vmatmul.bf16.gmra.mxu1 %v5714_v55  ;;  %v5082_v13 = vpack.c.b16 %v5018_v15, %v4817_v10  ;;  %v5084_v54 = vpack.c.b16 %v5020_v1, %v4818_v29  ;;  %v4639_v27 = vunpack.c.l.b16 %v4495_v33  ;;  %v4640_v39 = vunpack.c.l.b16 %v4496_v52 }
 0x294   :  { %v4297_v34 = vadd.f32 %v4296_v5, %v4248_v37  ;;  %v5086_v45 = vpack.c.b16 %v5022_v53, %v4819_v63  ;;  %v5088_v22 = vpack.c.b16 %v5024_v2, %v4820_v18  ;;  %v4599_v63 = vunpack.c.l.b16 %v9084_v61 }
 0x295   :  { %v4347_v44 = vpop.f32.mrf.mxu0  ;;  %v5256_v35 = vshrl.u32 %v5082_v13, 16  ;;  %v5259_v10 = vshll.u32 %v5082_v13, 16  ;;  %v5265_v19 = vshll.u32 %v5084_v54, 16  ;;  %6029 = vmatmul.bf16.gmra.mxu2 %v5715_v9  ;;  %v4655_v25 = vpack.c.b16 %v4598_v23, %v4639_v27 }
 0x296   :  { %v4346_v29 = vadd.f32 %v4345_v38, %v4297_v34  ;;  %v5284_v32 = vshrl.u32 %v5086_v45, 16  ;;  %v5287_v14 = vshll.u32 %v5086_v45, 16  ;;  %v5293_v37 = vshll.u32 %v5088_v22, 16  ;;  %v9094_v38 = vld [vmem:[#allocation2 + $0x40] sm:$0xf] }
 0x297   :  { %v5258_v41 = vrot.slane %v5256_v35, 4  ;;  %v5261_v24 = vrot.slane %v5259_v10, 5  ;;  %v5267_v50 = vrot.slane %v5265_v19, 5  ;;  %v4656_v43 = vpack.c.b16 %v4600_v6, %v4640_v39  ;;  %v4205_v54 = vpop.f32.mrf.mxu1  ;;  %v4543_v10 = vld [vmem:[#allocation2 + $0x40] sm:$0xe] }
 0x298   :  { %6839 = vst [vmem:[%s9481_s3 + $0x90] sm:$0xff] %v4346_v29  ;;  %v4398_v18 = vadd.f32 %v4397_v47, %v4346_v29  ;;  %v4421_v21 = vmul.f32 %v4346_v29, %v4346_v29  ;;  %v5286_v11 = vrot.slane %v5284_v32, 4  ;;  %v5289_v49 = vrot.slane %v5287_v14, 5  ;;  %v4252_v60 = vpop.f32.mrf.mxu2  ;;  %v4544_v19 = vld [vmem:[#allocation2 + $0x48] sm:$0xe] }
 0x299   :  { %v5262_v30 = vor.u32 %v5261_v24, %v5258_v41  ;;  %v5295_v7 = vrot.slane %v5293_v37, 5  ;;  %v4708_v0 = vshrl.u32 %v4655_v25, 16  ;;  %v4710_v36 = vshll.u32 %v4655_v25, 16 }
 0x29a   :  { %v4436_v26 = vadd.f32 %v4435_v12, %v4421_v21  ;;  %v5290_v56 = vor.u32 %v5289_v49, %v5286_v11  ;;  %v4253_v40 = vadd.f32 %v4252_v60, %v4203_v48  ;;  %v4715_v57 = vshrl.u32 %v4656_v43, 16 }
 0x29b   :  { %v4298_v46 = vpop.f32.mrf.mxu3  ;;  %v5263_v20 = vrot.slane %v5262_v30, 4  ;;  %v4717_v47 = vshll.u32 %v4656_v43, 16  ;;  %v4712_v55 = vrot.slane %v4710_v36, 1  ;;  %v4821_v15 = vunpack.c.l.b16 %v9094_v38 }
 0x29c   :  { %v4299_v58 = vadd.f32 %v4298_v46, %v4250_v17  ;;  %v5291_v4 = vrot.slane %v5290_v56, 4  ;;  %v4822_v12 = vunpack.c.l.b16 %v9096_v28  ;;  %v4824_v53 = vunpack.c.l.b16 %v9098_v51  ;;  %v4519_v46 = vld [vmem:[#allocation2 + $0x48] sm:$0xf] }
 0x29d   :  { %v5268_v1 = vsel %vm7806_vm8, %v5263_v20, %v5267_v50  ;;  %v4719_v33 = vrot.slane %v4717_v47, 1  ;;  %v4713_v13 = vor.u32 %v4712_v55, %v4708_v0  ;;  %v4350_v9 = vpop.f32.mrf.mxu0  ;;  %v4863_v49 = vunpack.c.l.b16 %v4543_v10  ;;  %v9123_v55 = vld [vmem:[#allocation2 + $0x58] sm:$0xf] }
 0x29e   :  { %v4348_v2 = vadd.f32 %v4347_v44, %v4299_v58  ;;  %v5296_v52 = vsel %vm7806_vm8, %v5291_v4, %v5295_v7  ;;  %v5660_v5 = vunpack.c.l.b16 %v5268_v1  ;;  %v5661_v45 = vunpack.c.h.b16 %v5268_v1  ;;  %v9125_v1 = vld [vmem:[#allocation2 + $0x5c] sm:$0x1] }
 0x29f   :  { %v5664_v17 = vunpack.c.l.b16 %v5296_v52  ;;  %v4720_v34 = vor.u32 %v4719_v33, %v4715_v57  ;;  %v5665_v22 = vunpack.c.h.b16 %v5296_v52  ;;  %v5025_v48 = vunpack.c.l.b16 %v4713_v13  ;;  %v4208_v33 = vpop.f32.mrf.mxu1 }
 0x2a0   :  { %6840 = vst [vmem:[%s9481_s3 + $0x98] sm:$0xff] %v4348_v2  ;;  %v4399_v61 = vadd.f32 %v4398_v18, %v4348_v2  ;;  %v4422_v27 = vmul.f32 %v4348_v2, %v4348_v2  ;;  %v5027_v35 = vunpack.c.h.b16 %v4713_v13  ;;  %v4254_v44 = vpop.f32.mrf.mxu2  ;;  %v4864_v60 = vunpack.c.l.b16 %v4544_v19 }
 0x2a1   :  { %v5716_v39 = vpack.c.b16 %v5664_v17, %v5660_v5  ;;  %v5029_v29 = vunpack.c.l.b16 %v4720_v34  ;;  %v5031_v32 = vunpack.c.h.b16 %v4720_v34  ;;  %v5717_v14 = vpack.c.b16 %v5665_v22, %v5661_v45  ;;  %v9127_v17 = vld [vmem:[#allocation2 + $0x60] sm:$0xf] }
 0x2a2   :  { %v4437_v37 = vadd.f32 %v4436_v26, %v4422_v27  ;;  %v5089_v41 = vpack.c.b16 %v5025_v48, %v4597_v8  ;;  %v5091_v24 = vpack.c.b16 %v5027_v35, %v4598_v23  ;;  %v4255_v25 = vadd.f32 %v4254_v44, %v4205_v54 }
 0x2a3   :  { %6078 = vmatmul.bf16.gmra.mxu3 %v5716_v39  ;;  %v4301_v18 = vpop.f32.mrf.mxu3  ;;  %v5093_v21 = vpack.c.b16 %v5029_v29, %v4599_v63  ;;  %v5095_v11 = vpack.c.b16 %v5031_v32, %v4600_v6  ;;  %6127 = vmatmul.bf16.gmra.mxu0 %v5717_v14  ;;  %v4879_v31 = vpack.c.b16 %v4822_v12, %v4863_v49  ;;  %v4823_v45 = vunpack.c.l.b16 %v4519_v46 }
 0x2a4   :  { %v4302_v30 = vadd.f32 %v4301_v18, %v4253_v40  ;;  %v5298_v50 = vshrl.u32 %v5089_v41, 16  ;;  %v5301_v7 = vshll.u32 %v5089_v41, 16  ;;  %v5307_v43 = vshll.u32 %v5091_v24, 16 }
 0x2a5   :  { %v5326_v26 = vshrl.u32 %v5093_v21, 16  ;;  %v5329_v59 = vshll.u32 %v5093_v21, 16  ;;  %v5335_v8 = vshll.u32 %v5095_v11, 16  ;;  %v4880_v20 = vpack.c.b16 %v4824_v53, %v4864_v60  ;;  %v4352_v52 = vpop.f32.mrf.mxu0 }
 0x2a6   :  { %v4351_v23 = vadd.f32 %v4350_v9, %v4302_v30  ;;  %v5300_v56 = vrot.slane %v5298_v50, 4  ;;  %v5303_v0 = vrot.slane %v5301_v7, 5  ;;  %v5309_v63 = vrot.slane %v5307_v43, 5  ;;  %v9136_v7 = vld [vmem:[#allocation2 + $0x64] sm:$0x1] }
 0x2a7   :  { %v5328_v36 = vrot.slane %v5326_v26, 4  ;;  %v5331_v16 = vrot.slane %v5329_v59, 5  ;;  %v5337_v6 = vrot.slane %v5335_v8, 5  ;;  %v4932_v58 = vshrl.u32 %v4879_v31, 16  ;;  %v4498_v43 = vld [vmem:[#allocation2 + $0x60] sm:$0xe]  ;;  %v4210_v28 = vpop.f32.mrf.mxu1 }
 0x2a8   :  { %6841 = vst [vmem:[%s9481_s3 + $0xa0] sm:$0xff] %v4351_v23  ;;  %v4400_v40 = vadd.f32 %v4399_v61, %v4351_v23  ;;  %v4423_v57 = vmul.f32 %v4351_v23, %v4351_v23  ;;  %v5304_v47 = vor.u32 %v5303_v0, %v5300_v56  ;;  %v4257_v4 = vpop.f32.mrf.mxu2  ;;  %v4934_v5 = vshll.u32 %v4879_v31, 16 }
 0x2a9   :  { %v5332_v2 = vor.u32 %v5331_v16, %v5328_v36  ;;  %v4939_v13 = vshrl.u32 %v4880_v20, 16  ;;  %v4941_v54 = vshll.u32 %v4880_v20, 16  ;;  %v4258_v22 = vadd.f32 %v4257_v4, %v4208_v33 }
 0x2aa   :  { %v4438_v9 = vadd.f32 %v4437_v37, %v4423_v57  ;;  %v5305_v34 = vrot.slane %v5304_v47, 4  ;;  %v4936_v48 = vrot.slane %v4934_v5, 1  ;;  %v4601_v44 = vunpack.c.l.b16 %v9123_v55 }
 0x2ab   :  { %v5333_v61 = vrot.slane %v5332_v2, 4  ;;  %v4303_v27 = vpop.f32.mrf.mxu3  ;;  %v4943_v35 = vrot.slane %v4941_v54, 1  ;;  %v4602_v39 = vunpack.c.l.b16 %v9125_v1  ;;  %v4603_v29 = vunpack.c.l.b16 %v9127_v17 }
 0x2ac   :  { %v5310_v10 = vsel %vm7806_vm8, %v5305_v34, %v5309_v63  ;;  %v4304_v19 = vadd.f32 %v4303_v27, %v4255_v25  ;;  %v4937_v37 = vor.u32 %v4936_v48, %v4932_v58  ;;  %v4497_v25 = vld [vmem:[#allocation2 + $0x58] sm:$0xe]  ;;  %v4604_v16 = vunpack.c.l.b16 %v9136_v7 }
 0x2ad   :  { %v5338_v32 = vsel %vm7806_vm8, %v5333_v61, %v5337_v6  ;;  %v5666_v14 = vunpack.c.l.b16 %v5310_v10  ;;  %v4944_v41 = vor.u32 %v4943_v35, %v4939_v13  ;;  %v5667_v21 = vunpack.c.h.b16 %v5310_v10  ;;  %v4355_v58 = vpop.f32.mrf.mxu0  ;;  %v9150_v13 = vld [vmem:[#allocation2 + $0x60] sm:$0xf]  ;;  %v9154_v61 = vld [vmem:[#allocation2 + $0x64] sm:$0x1]  ;;  %v9156_v10 = vld [vmem:[#allocation2 + $0x6c] sm:$0x1] }
 0x2ae   :  { %v5670_v24 = vunpack.c.l.b16 %v5338_v32  ;;  %v4353_v18 = vadd.f32 %v4352_v52, %v4304_v19  ;;  %v5671_v11 = vunpack.c.h.b16 %v5338_v32  ;;  %v5026_v49 = vunpack.c.l.b16 %v4937_v37 }
 0x2af   :  { %v5028_v60 = vunpack.c.h.b16 %v4937_v37  ;;  %v5030_v30 = vunpack.c.l.b16 %v4944_v41  ;;  %v5032_v50 = vunpack.c.h.b16 %v4944_v41  ;;  %v4641_v6 = vunpack.c.l.b16 %v4497_v25  ;;  %v4545_v37 = vld [vmem:[#allocation2 + $0x60] sm:$0xe] }
 0x2b0   :  { %v5718_v26 = vpack.c.b16 %v5670_v24, %v5666_v14  ;;  %6842 = vst [vmem:[%s9481_s3 + $0xa8] sm:$0xff] %v4353_v18  ;;  %v4401_v59 = vadd.f32 %v4400_v40, %v4353_v18  ;;  %v4424_v8 = vmul.f32 %v4353_v18, %v4353_v18  ;;  %v5719_v31 = vpack.c.b16 %v5671_v11, %v5667_v21  ;;  %v4259_v20 = vpop.f32.mrf.mxu2 }
 0x2b1   :  { %v5090_v23 = vpack.c.b16 %v5026_v49, %v4821_v15  ;;  %v5092_v56 = vpack.c.b16 %v5028_v60, %v4822_v12  ;;  %v5094_v0 = vpack.c.b16 %v5030_v30, %v4823_v45  ;;  %v5096_v63 = vpack.c.b16 %v5032_v50, %v4824_v53 }
 0x2b2   :  { %5985 = vmatmul.bf16.gmra.mxu1 %v5718_v26  ;;  %v4439_v36 = vadd.f32 %v4438_v9, %v4424_v8  ;;  %6034 = vmatmul.bf16.gmra.mxu2 %v5719_v31  ;;  %v4642_v46 = vunpack.c.l.b16 %v4498_v43  ;;  %v4657_v51 = vpack.c.b16 %v4602_v39, %v4641_v6  ;;  %v4260_v5 = vadd.f32 %v4259_v20, %v4210_v28  ;;  %v4546_v8 = vld [vmem:[#allocation2 + $0x68] sm:$0xe] }
 0x2b3   :  { %v5312_v40 = vshrl.u32 %v5090_v23, 16  ;;  %v5315_v57 = vshll.u32 %v5090_v23, 16  ;;  %v5321_v47 = vshll.u32 %v5092_v56, 16  ;;  %v5340_v38 = vshrl.u32 %v5094_v0, 16  ;;  %v4306_v15 = vpop.f32.mrf.mxu3 }
 0x2b4   :  { %v5343_v12 = vshll.u32 %v5094_v0, 16  ;;  %v5349_v4 = vshll.u32 %v5096_v63, 16  ;;  %v4307_v33 = vadd.f32 %v4306_v15, %v4258_v22  ;;  %v4658_v45 = vpack.c.b16 %v4604_v16, %v4642_v46 }
 0x2b5   :  { %v5314_v53 = vrot.slane %v5312_v40, 4  ;;  %v5317_v2 = vrot.slane %v5315_v57, 5  ;;  %v5342_v52 = vrot.slane %v5340_v38, 4  ;;  %v5323_v54 = vrot.slane %v5321_v47, 5  ;;  %v4357_v40 = vpop.f32.mrf.mxu0  ;;  %v4213_v57 = vpop.f32.mrf.mxu1 }
 0x2b6   :  { %v5345_v9 = vrot.slane %v5343_v12, 5  ;;  %v4356_v34 = vadd.f32 %v4355_v58, %v4307_v33  ;;  %v5351_v48 = vrot.slane %v5349_v4, 5  ;;  %v4722_v22 = vshrl.u32 %v4657_v51, 16 }
 0x2b7   :  { %v5318_v27 = vor.u32 %v5317_v2, %v5314_v53  ;;  %v4724_v35 = vshll.u32 %v4657_v51, 16  ;;  %v4825_v41 = vunpack.c.l.b16 %v9150_v13  ;;  %v4729_v21 = vshrl.u32 %v4658_v45, 16 }
 0x2b8   :  { %v5346_v19 = vor.u32 %v5345_v9, %v5342_v52  ;;  %6843 = vst [vmem:[%s9481_s3 + $0xb0] sm:$0xff] %v4356_v34  ;;  %v4402_v32 = vadd.f32 %v4401_v59, %v4356_v34  ;;  %v4425_v14 = vmul.f32 %v4356_v34, %v4356_v34  ;;  %v4731_v11 = vshll.u32 %v4658_v45, 16  ;;  %v4262_v17 = vpop.f32.mrf.mxu2 }
 0x2b9   :  { %v5319_v24 = vrot.slane %v5318_v27, 4  ;;  %v4726_v18 = vrot.slane %v4724_v35, 1  ;;  %v4826_v30 = vunpack.c.l.b16 %v9154_v61  ;;  %v4828_v50 = vunpack.c.l.b16 %v9156_v10  ;;  %v4500_v61 = vld [vmem:[#allocation2 + $0x70] sm:$0xe] }
 0x2ba   :  { %v5347_v49 = vrot.slane %v5346_v19, 4  ;;  %v4440_v60 = vadd.f32 %v4439_v36, %v4425_v14  ;;  %v4733_v26 = vrot.slane %v4731_v11, 1  ;;  %v4865_v31 = vunpack.c.l.b16 %v4545_v37  ;;  %v9189_v14 = vld [vmem:[#allocation2 + $0x68] sm:$0xf]  ;;  %v9191_v11 = vld [vmem:[#allocation2 + $0x74] sm:$0x1] }
 0x2bb   :  { %v5324_v25 = vsel %vm7806_vm8, %v5319_v24, %v5323_v54  ;;  %v4727_v43 = vor.u32 %v4726_v18, %v4722_v22  ;;  %v4308_v59 = vpop.f32.mrf.mxu3  ;;  %v4866_v15 = vunpack.c.l.b16 %v4546_v8 }
 0x2bc   :  { %v5352_v23 = vsel %vm7806_vm8, %v5347_v49, %v5351_v48  ;;  %v5668_v56 = vunpack.c.l.b16 %v5324_v25  ;;  %v5669_v0 = vunpack.c.h.b16 %v5324_v25  ;;  %v4309_v63 = vadd.f32 %v4308_v59, %v4260_v5 }
 0x2bd   :  { %v5672_v6 = vunpack.c.l.b16 %v5352_v23  ;;  %v4734_v36 = vor.u32 %v4733_v26, %v4729_v21  ;;  %v5033_v46 = vunpack.c.l.b16 %v4727_v43  ;;  %v5035_v20 = vunpack.c.h.b16 %v4727_v43  ;;  %v4499_v26 = vld [vmem:[#allocation2 + $0x68] sm:$0xe] }
 0x2be   :  { %v5673_v47 = vunpack.c.h.b16 %v5352_v23  ;;  %v4358_v38 = vadd.f32 %v4357_v40, %v4309_v63  ;;  %v4881_v58 = vpack.c.b16 %v4826_v30, %v4865_v31  ;;  %v4882_v34 = vpack.c.b16 %v4828_v50, %v4866_v15 }
 0x2bf   :  { %v5720_v28 = vpack.c.b16 %v5672_v6, %v5668_v56  ;;  %v5037_v12 = vunpack.c.l.b16 %v4734_v36  ;;  %v5039_v4 = vunpack.c.h.b16 %v4734_v36  ;;  %v5097_v33 = vpack.c.b16 %v5033_v46, %v4601_v44 }
 0x2c0   :  { %v5099_v51 = vpack.c.b16 %v5035_v20, %v4602_v39  ;;  %v5721_v53 = vpack.c.b16 %v5673_v47, %v5669_v0  ;;  %6844 = vst [vmem:[%s9481_s3 + $0xb8] sm:$0xff] %v4358_v38  ;;  %v9177_v2 = vadd.f32 %v4402_v32, %v4358_v38  ;;  %v4426_v52 = vmul.f32 %v4358_v38, %v4358_v38  ;;  %v4523_v39 = vld [vmem:[#allocation2 + $0x68] sm:$0xf]  ;;  %v4215_v0 = vpop.f32.mrf.mxu1  ;;  %v4264_v10 = vpop.f32.mrf.mxu2 }
 0x2c1   :  { %6083 = vmatmul.bf16.gmra.mxu3 %v5720_v28  ;;  %v5101_v5 = vpack.c.b16 %v5037_v12, %v4603_v29  ;;  %v5103_v54 = vpack.c.b16 %v5039_v4, %v4604_v16  ;;  %v5354_v55 = vshrl.u32 %v5097_v33, 16  ;;  %v5357_v44 = vshll.u32 %v5097_v33, 16  ;;  %v9187_v29 = vld [vmem:[#allocation2 + $0x6c] sm:$0x1]  ;;  %v4360_v12 = vpop.f32.mrf.mxu0 }
 0x2c2   :  { %v5363_v9 = vshll.u32 %v5099_v51, 16  ;;  %6132 = vmatmul.bf16.gmra.mxu0 %v5721_v53  ;;  %v9183_v1 = vadd.f32 %v4440_v60, %v4426_v52  ;;  %v4946_v45 = vshrl.u32 %v4881_v58, 16  ;;  %v4948_v19 = vshll.u32 %v4881_v58, 16 }
 0x2c3   :  { %v5356_v27 = vrot.slane %v5354_v55, 4  ;;  %v5359_v48 = vrot.slane %v5357_v44, 5  ;;  %v5382_v22 = vshrl.u32 %v5101_v5, 16  ;;  %v5385_v35 = vshll.u32 %v5101_v5, 16  ;;  %v4311_v23 = vpop.f32.mrf.mxu3 }
 0x2c4   :  { %v5365_v7 = vrot.slane %v5363_v9, 5  ;;  %v5391_v16 = vshll.u32 %v5103_v54, 16  ;;  %v4953_v32 = vshrl.u32 %v4882_v34, 16  ;;  %v4955_v21 = vshll.u32 %v4882_v34, 16 }
 0x2c5   :  { %v5360_v37 = vor.u32 %v5359_v48, %v5356_v27  ;;  %v5384_v24 = vrot.slane %v5382_v22, 4  ;;  %v5387_v18 = vrot.slane %v5385_v35, 5  ;;  %v4827_v60 = vunpack.c.l.b16 %v4523_v39 }
 0x2c6   :  { %v5393_v49 = vrot.slane %v5391_v16, 5  ;;  %v4950_v25 = vrot.slane %v4948_v19, 1  ;;  %v4263_v43 = vadd.f32 %v4262_v17, %v4213_v57  ;;  %v4957_v31 = vrot.slane %v4955_v21, 1  ;;  %v9214_v19 = vld [vmem:[#allocation2 + $0x70] sm:$0xf] }
 0x2c7   :  { %v5361_v59 = vrot.slane %v5360_v37, 4  ;;  %v5388_v8 = vor.u32 %v5387_v18, %v5384_v24  ;;  %v4605_v56 = vunpack.c.l.b16 %v9189_v14  ;;  %v4606_v36 = vunpack.c.l.b16 %v9187_v29 }
 0x2c8   :  { %v4951_v63 = vor.u32 %v4950_v25, %v4946_v45  ;;  %v4312_v6 = vadd.f32 %v4311_v23, %v4263_v43  ;;  %v4608_v46 = vunpack.c.l.b16 %v9191_v11  ;;  %v4958_v47 = vor.u32 %v4957_v31, %v4953_v32  ;;  %v9210_v45 = vld [vmem:[#allocation2 + $0x70] sm:$0xf]  ;;  %v9216_v32 = vld [vmem:[#allocation2 + $0x74] sm:$0x1]  ;;  %v9218_v25 = vpop.f32.mrf.mxu1 }
 0x2c9   :  { %v5366_v20 = vsel %vm7806_vm8, %v5361_v59, %v5365_v7  ;;  %v5389_v40 = vrot.slane %v5388_v8, 4  ;;  %v4643_v57 = vunpack.c.l.b16 %v4499_v26  ;;  %v4644_v21 = vunpack.c.l.b16 %v4500_v61  ;;  %v4547_v23 = vld [vmem:[#allocation2 + $0x70] sm:$0xe] }
 0x2ca   :  { %v5674_v38 = vunpack.c.l.b16 %v5366_v20  ;;  %v5034_v15 = vunpack.c.l.b16 %v4951_v63  ;;  %v5036_v58 = vunpack.c.h.b16 %v4951_v63  ;;  %v5675_v28 = vunpack.c.h.b16 %v5366_v20 }
 0x2cb   :  { %v5394_v4 = vsel %vm7806_vm8, %v5389_v40, %v5393_v49  ;;  %v5038_v33 = vunpack.c.l.b16 %v4958_v47  ;;  %v5040_v51 = vunpack.c.h.b16 %v4958_v47  ;;  %v4361_v53 = vadd.f32 %v4360_v12, %v4312_v6  ;;  %v4313_v31 = vpop.f32.mrf.mxu3 }
 0x2cc   :  { %v5678_v52 = vunpack.c.l.b16 %v5394_v4  ;;  %v5098_v5 = vpack.c.b16 %v5034_v15, %v4825_v41  ;;  %v5100_v54 = vpack.c.b16 %v5036_v58, %v4826_v30  ;;  %v5679_v55 = vunpack.c.h.b16 %v5394_v4 }
 0x2cd   :  { %v5102_v44 = vpack.c.b16 %v5038_v33, %v4827_v60  ;;  %v5104_v9 = vpack.c.b16 %v5040_v51, %v4828_v50  ;;  %6845 = vst [vmem:[%s9481_s3 + $0x180] sm:$0xff] %v4361_v53  ;;  %v4404_v39 = vadd.f32 %v9177_v2, %v4361_v53  ;;  %v4427_v34 = vmul.f32 %v4361_v53, %v4361_v53  ;;  %v4548_v51 = vld [vmem:[#allocation2 + $0x78] sm:$0xe] }
 0x2ce   :  { %v5722_v27 = vpack.c.b16 %v5678_v52, %v5674_v38  ;;  %v5368_v13 = vshrl.u32 %v5098_v5, 16  ;;  %v5371_v41 = vshll.u32 %v5098_v5, 16  ;;  %v5377_v48 = vshll.u32 %v5100_v54, 16 }
 0x2cf   :  { %v5396_v30 = vshrl.u32 %v5102_v44, 16  ;;  %v5399_v22 = vshll.u32 %v5102_v44, 16  ;;  %v5405_v35 = vshll.u32 %v5104_v9, 16  ;;  %v5723_v17 = vpack.c.b16 %v5679_v55, %v5675_v28 }
 0x2d0   :  { %5990 = vmatmul.bf16.gmra.mxu1 %v5722_v27  ;;  %v5370_v50 = vrot.slane %v5368_v13, 4  ;;  %v5373_v7 = vrot.slane %v5371_v41, 5  ;;  %v4442_v16 = vadd.f32 %v9183_v1, %v4427_v34  ;;  %v4607_v2 = vunpack.c.l.b16 %v9210_v45  ;;  %v9222_v1 = vld [vmem:[#allocation2 + $0x7c] sm:$0x1] }
 0x2d1   :  { %v5379_v37 = vrot.slane %v5377_v48, 5  ;;  %v5398_v24 = vrot.slane %v5396_v30, 4  ;;  %v5401_v18 = vrot.slane %v5399_v22, 5  ;;  %6039 = vmatmul.bf16.gmra.mxu2 %v5723_v17  ;;  %v5407_v60 = vrot.slane %v5405_v35, 5 }
 0x2d2   :  { %v5374_v49 = vor.u32 %v5373_v7, %v5370_v50  ;;  %v4659_v43 = vpack.c.b16 %v4606_v36, %v4643_v57  ;;  %v4265_v26 = vadd.f32 %v4264_v10, %v4215_v0  ;;  %v4660_v8 = vpack.c.b16 %v4608_v46, %v4644_v21  ;;  %v4362_v0 = vpop.f32.mrf.mxu0 }
 0x2d3   :  { %v5402_v59 = vor.u32 %v5401_v18, %v5398_v24  ;;  %v4829_v63 = vunpack.c.l.b16 %v9214_v19  ;;  %v4830_v6 = vunpack.c.l.b16 %v9216_v32  ;;  %v4832_v28 = vunpack.c.l.b16 %v9222_v1  ;;  %v9248_v24 = vpop.f32.mrf.mxu1 }
 0x2d4   :  { %v5375_v20 = vrot.slane %v5374_v49, 4  ;;  %v4736_v40 = vshrl.u32 %v4659_v43, 16  ;;  %v4738_v47 = vshll.u32 %v4659_v43, 16  ;;  %v4314_v38 = vadd.f32 %v4313_v31, %v4265_v26 }
 0x2d5   :  { %v5403_v15 = vrot.slane %v5402_v59, 4  ;;  %v4743_v58 = vshrl.u32 %v4660_v8, 16  ;;  %v4745_v57 = vshll.u32 %v4660_v8, 16  ;;  %v4867_v53 = vunpack.c.l.b16 %v4547_v23 }
 0x2d6   :  { %v5380_v12 = vsel %vm7806_vm8, %v5375_v20, %v5379_v37  ;;  %v4740_v4 = vrot.slane %v4738_v47, 1  ;;  %v4363_v33 = vadd.f32 %v4362_v0, %v4314_v38  ;;  %v4868_v41 = vunpack.c.l.b16 %v4548_v51  ;;  %v4267_v20 = vpop.f32.mrf.mxu2 }
 0x2d7   :  { %v5408_v52 = vsel %vm7806_vm8, %v5403_v15, %v5407_v60  ;;  %v5676_v5 = vunpack.c.l.b16 %v5380_v12  ;;  %v4747_v54 = vrot.slane %v4745_v57, 1  ;;  %v5677_v55 = vunpack.c.h.b16 %v5380_v12  ;;  %v4527_v60 = vld [vmem:[#allocation2 + $0x78] sm:$0xf] }
 0x2d8   :  { %v5680_v44 = vunpack.c.l.b16 %v5408_v52  ;;  %v4741_v9 = vor.u32 %v4740_v4, %v4736_v40  ;;  %v5681_v34 = vunpack.c.h.b16 %v5408_v52  ;;  %6846 = vst [vmem:[%s9481_s3 + $0x188] sm:$0xff] %v4363_v33  ;;  %v9236_v45 = vadd.f32 %v4404_v39, %v4363_v33  ;;  %v9252_v57 = vld [vmem:[#allocation2 + $0x78] sm:$0xf] }
 0x2d9   :  { %v4748_v27 = vor.u32 %v4747_v54, %v4743_v58  ;;  %v4428_v13 = vmul.f32 %v4363_v33, %v4363_v33  ;;  %v4883_v48 = vpack.c.b16 %v4830_v6, %v4867_v53  ;;  %v4884_v7 = vpack.c.b16 %v4832_v28, %v4868_v41 }
 0x2da   :  { %v5724_v61 = vpack.c.b16 %v5680_v44, %v5676_v5  ;;  %v5041_v30 = vunpack.c.l.b16 %v4741_v9  ;;  %v5043_v22 = vunpack.c.h.b16 %v4741_v9  ;;  %v5725_v35 = vpack.c.b16 %v5681_v34, %v5677_v55  ;;  %v4316_v9 = vpop.f32.mrf.mxu3 }
 0x2db   :  { %v5045_v17 = vunpack.c.l.b16 %v4748_v27  ;;  %v5047_v10 = vunpack.c.h.b16 %v4748_v27  ;;  %v9240_v50 = vadd.f32 %v4442_v16, %v4428_v13  ;;  %v4960_v18 = vshrl.u32 %v4883_v48, 16  ;;  %v9264_v19 = vpop.f32.mrf.mxu1 }
 0x2dc   :  { %6088 = vmatmul.bf16.gmra.mxu3 %v5724_v61  ;;  %v5105_v39 = vpack.c.b16 %v5041_v30, %v4605_v56  ;;  %v5107_v37 = vpack.c.b16 %v5043_v22, %v4606_v36  ;;  %6137 = vmatmul.bf16.gmra.mxu0 %v5725_v35  ;;  %v4962_v21 = vshll.u32 %v4883_v48, 16  ;;  %v4967_v43 = vshrl.u32 %v4884_v7, 16 }
 0x2dd   :  { %v5109_v49 = vpack.c.b16 %v5045_v17, %v4607_v2  ;;  %v5111_v16 = vpack.c.b16 %v5047_v10, %v4608_v46  ;;  %v4969_v26 = vshll.u32 %v4884_v7, 16  ;;  %v4831_v38 = vunpack.c.l.b16 %v4527_v60  ;;  %v9268_v10 = vld [vmem:[#allocation2 + $0x7c] sm:$0x1] }
 0x2de   :  { %v5410_v59 = vshrl.u32 %v5105_v39, 16  ;;  %v5413_v8 = vshll.u32 %v5105_v39, 16  ;;  %v5419_v31 = vshll.u32 %v5107_v37, 16  ;;  %v4964_v14 = vrot.slane %v4962_v21, 1  ;;  %v9270_v37 = vld [vmem:[#allocation2 + $0x84] sm:$0x1] }
 0x2df   :  { %v5438_v56 = vshrl.u32 %v5109_v49, 16  ;;  %v5441_v23 = vshll.u32 %v5109_v49, 16  ;;  %v5447_v29 = vshll.u32 %v5111_v16, 16  ;;  %v4971_v36 = vrot.slane %v4969_v26, 1 }
 0x2e0   :  { %v5412_v40 = vrot.slane %v5410_v59, 4  ;;  %v5415_v47 = vrot.slane %v5413_v8, 5  ;;  %v4965_v15 = vor.u32 %v4964_v14, %v4960_v18  ;;  %v5421_v2 = vrot.slane %v5419_v31, 5  ;;  %v4501_v8 = vld [vmem:[#allocation2 + $0x78] sm:$0xe]  ;;  %v4269_v14 = vpop.f32.mrf.mxu2 }
 0x2e1   :  { %v5440_v58 = vrot.slane %v5438_v56, 4  ;;  %v5443_v11 = vrot.slane %v5441_v23, 5  ;;  %v4972_v46 = vor.u32 %v4971_v36, %v4967_v43  ;;  %v4268_v33 = vadd.f32 %v4267_v20, %v9218_v25  ;;  %v4502_v31 = vld [vmem:[#allocation2 + $0x80] sm:$0xe] }
 0x2e2   :  { %v5416_v0 = vor.u32 %v5415_v47, %v5412_v40  ;;  %v5042_v12 = vunpack.c.l.b16 %v4965_v15  ;;  %v5044_v4 = vunpack.c.h.b16 %v4965_v15  ;;  %v5449_v53 = vrot.slane %v5447_v29, 5  ;;  %v9272_v29 = vld [vmem:[#allocation2 + $0x80] sm:$0xf]  ;;  %v9276_v40 = vld [vmem:[#allocation2 + $0x84] sm:$0x1] }
 0x2e3   :  { %v5444_v51 = vor.u32 %v5443_v11, %v5440_v58  ;;  %v5046_v52 = vunpack.c.l.b16 %v4972_v46  ;;  %v5048_v5 = vunpack.c.h.b16 %v4972_v46  ;;  %v4609_v34 = vunpack.c.l.b16 %v9252_v57 }
 0x2e4   :  { %v5417_v54 = vrot.slane %v5416_v0, 4  ;;  %v5106_v55 = vpack.c.b16 %v5042_v12, %v4829_v63  ;;  %v5108_v44 = vpack.c.b16 %v5044_v4, %v4830_v6  ;;  %v4317_v25 = vadd.f32 %v4316_v9, %v4268_v33  ;;  %v4365_v63 = vpop.f32.mrf.mxu0  ;;  %v9296_v9 = vpop.f32.mrf.mxu1 }
 0x2e5   :  { %v5445_v27 = vrot.slane %v5444_v51, 4  ;;  %v5110_v13 = vpack.c.b16 %v5046_v52, %v4831_v38  ;;  %v5112_v41 = vpack.c.b16 %v5048_v5, %v4832_v28  ;;  %v4610_v36 = vunpack.c.l.b16 %v9268_v10  ;;  %v4318_v5 = vpop.f32.mrf.mxu3 }
 0x2e6   :  { %v5422_v48 = vsel %vm7806_vm8, %v5417_v54, %v5421_v2  ;;  %v5424_v61 = vshrl.u32 %v5106_v55, 16  ;;  %v5427_v30 = vshll.u32 %v5106_v55, 16  ;;  %v5433_v22 = vshll.u32 %v5108_v44, 16  ;;  %v9294_v54 = vld [vmem:[#allocation2 + $0x80] sm:$0xf] }
 0x2e7   :  { %v5450_v32 = vsel %vm7806_vm8, %v5445_v27, %v5449_v53  ;;  %v5682_v6 = vunpack.c.l.b16 %v5422_v48  ;;  %v5452_v35 = vshrl.u32 %v5110_v13, 16  ;;  %v5455_v17 = vshll.u32 %v5110_v13, 16 }
 0x2e8   :  { %v5686_v1 = vunpack.c.l.b16 %v5450_v32  ;;  %v5426_v28 = vrot.slane %v5424_v61, 4  ;;  %v5429_v7 = vrot.slane %v5427_v30, 5  ;;  %v5435_v39 = vrot.slane %v5433_v22, 5 }
 0x2e9   :  { %v5454_v18 = vrot.slane %v5452_v35, 4  ;;  %v5457_v21 = vrot.slane %v5455_v17, 5  ;;  %v5461_v49 = vshll.u32 %v5112_v41, 16  ;;  %v5683_v16 = vunpack.c.h.b16 %v5422_v48  ;;  %v9298_v41 = vld [vmem:[#allocation2 + $0x8c] sm:$0x1] }
 0x2ea   :  { %v5726_v60 = vpack.c.b16 %v5686_v1, %v5682_v6  ;;  %v5430_v43 = vor.u32 %v5429_v7, %v5426_v28  ;;  %v5687_v26 = vunpack.c.h.b16 %v5450_v32  ;;  %v4366_v59 = vadd.f32 %v4365_v63, %v4317_v25  ;;  %v4549_v25 = vld [vmem:[#allocation2 + $0x80] sm:$0xe]  ;;  %v4550_v48 = vld [vmem:[#allocation2 + $0x88] sm:$0xe] }
 0x2eb   :  { %v5458_v56 = vor.u32 %v5457_v21, %v5454_v18  ;;  %v5463_v23 = vrot.slane %v5461_v49, 5  ;;  %v4612_v20 = vunpack.c.l.b16 %v9270_v37  ;;  %v4645_v11 = vunpack.c.l.b16 %v4501_v8  ;;  %v9300_v32 = vld [vmem:[#allocation2 + $0x88] sm:$0xf]  ;;  %v4272_v49 = vpop.f32.mrf.mxu2 }
 0x2ec   :  { %5995 = vmatmul.bf16.gmra.mxu1 %v5726_v60  ;;  %v5431_v47 = vrot.slane %v5430_v43, 4  ;;  %v5727_v38 = vpack.c.b16 %v5687_v26, %v5683_v16  ;;  %6847 = vst [vmem:[%s9481_s3 + $0x190] sm:$0xff] %v4366_v59  ;;  %v4406_v15 = vadd.f32 %v9236_v45, %v4366_v59  ;;  %v4429_v2 = vmul.f32 %v4366_v59, %v4366_v59  ;;  %v4367_v13 = vpop.f32.mrf.mxu0  ;;  %v9303_v28 = vld [vmem:[#allocation2 + $0x88] sm:$0xf]  ;;  %v9306_v16 = vld [vmem:[#allocation2 + $0x8c] sm:$0x1] }
 0x2ed   :  { %v5459_v58 = vrot.slane %v5458_v56, 4  ;;  %v4646_v46 = vunpack.c.l.b16 %v4502_v31  ;;  %v4270_v0 = vadd.f32 %v4269_v14, %v9248_v24  ;;  %v4611_v33 = vunpack.c.l.b16 %v9272_v29 }
 0x2ee   :  { %v5436_v12 = vsel %vm7806_vm8, %v5431_v47, %v5435_v39  ;;  %6044 = vmatmul.bf16.gmra.mxu2 %v5727_v38  ;;  %v4444_v4 = vadd.f32 %v9240_v50, %v4429_v2  ;;  %v4834_v51 = vunpack.c.l.b16 %v9276_v40  ;;  %v4661_v52 = vpack.c.b16 %v4610_v36, %v4645_v11 }
 0x2ef   :  { %v5464_v53 = vsel %vm7806_vm8, %v5459_v58, %v5463_v23  ;;  %v5684_v45 = vunpack.c.l.b16 %v5436_v12  ;;  %v4662_v24 = vpack.c.b16 %v4612_v20, %v4646_v46  ;;  %v5685_v44 = vunpack.c.h.b16 %v5436_v12  ;;  %v9321_v46 = vld [vmem:[#allocation2 + $0x94] sm:$0x1] }
 0x2f0   :  { %v5688_v55 = vunpack.c.l.b16 %v5464_v53  ;;  %v5689_v50 = vunpack.c.h.b16 %v5464_v53  ;;  %v4319_v27 = vadd.f32 %v4318_v5, %v4270_v0  ;;  %v4750_v61 = vshrl.u32 %v4661_v52, 16  ;;  %v4321_v5 = vpop.f32.mrf.mxu3 }
 0x2f1   :  { %v4752_v30 = vshll.u32 %v4661_v52, 16  ;;  %v4757_v22 = vshrl.u32 %v4662_v24, 16  ;;  %v4759_v63 = vshll.u32 %v4662_v24, 16  ;;  %v4833_v1 = vunpack.c.l.b16 %v9294_v54 }
 0x2f2   :  { %v5728_v6 = vpack.c.b16 %v5688_v55, %v5684_v45  ;;  %v5729_v35 = vpack.c.b16 %v5689_v50, %v5685_v44  ;;  %v4368_v17 = vadd.f32 %v4367_v13, %v4319_v27  ;;  %v4836_v18 = vunpack.c.l.b16 %v9298_v41  ;;  %v9329_v50 = vpop.f32.mrf.mxu1 }
 0x2f3   :  { %v4754_v7 = vrot.slane %v4752_v30, 1  ;;  %v4761_v39 = vrot.slane %v4759_v63, 1  ;;  %v4869_v21 = vunpack.c.l.b16 %v4549_v25  ;;  %v4835_v26 = vunpack.c.l.b16 %v9300_v32  ;;  %v4503_v32 = vld [vmem:[#allocation2 + $0x88] sm:$0xe] }
 0x2f4   :  { %6093 = vmatmul.bf16.gmra.mxu3 %v5728_v6  ;;  %6142 = vmatmul.bf16.gmra.mxu0 %v5729_v35  ;;  %6848 = vst [vmem:[%s9481_s3 + $0x198] sm:$0xff] %v4368_v17  ;;  %v4407_v60 = vadd.f32 %v4406_v15, %v4368_v17  ;;  %v4430_v43 = vmul.f32 %v4368_v17, %v4368_v17  ;;  %v4870_v59 = vunpack.c.l.b16 %v4550_v48  ;;  %v4613_v56 = vunpack.c.l.b16 %v9303_v28  ;;  %v4370_v13 = vpop.f32.mrf.mxu0 }
 0x2f5   :  { %v4755_v8 = vor.u32 %v4754_v7, %v4750_v61  ;;  %v4762_v31 = vor.u32 %v4761_v39, %v4757_v22  ;;  %v4885_v14 = vpack.c.b16 %v4834_v51, %v4869_v21  ;;  %v4273_v47 = vadd.f32 %v4272_v49, %v9264_v19 }
 0x2f6   :  { %v9315_v23 = vadd.f32 %v4444_v4, %v4430_v43  ;;  %v4886_v29 = vpack.c.b16 %v4836_v18, %v4870_v59  ;;  %v4614_v38 = vunpack.c.l.b16 %v9306_v16  ;;  %v4616_v25 = vunpack.c.l.b16 %v9321_v46 }
 0x2f7   :  { %v5049_v15 = vunpack.c.l.b16 %v4755_v8  ;;  %v5051_v2 = vunpack.c.h.b16 %v4755_v8  ;;  %v5053_v58 = vunpack.c.l.b16 %v4762_v31  ;;  %v5055_v11 = vunpack.c.h.b16 %v4762_v31 }
 0x2f8   :  { %v4974_v0 = vshrl.u32 %v4885_v14, 16  ;;  %v4976_v12 = vshll.u32 %v4885_v14, 16  ;;  %v4981_v53 = vshrl.u32 %v4886_v29, 16  ;;  %v4983_v45 = vshll.u32 %v4886_v29, 16 }
 0x2f9   :  { %v5113_v4 = vpack.c.b16 %v5049_v15, %v4609_v34  ;;  %v5115_v52 = vpack.c.b16 %v5051_v2, %v4610_v36  ;;  %v5117_v24 = vpack.c.b16 %v5053_v58, %v4611_v33  ;;  %v5119_v19 = vpack.c.b16 %v5055_v11, %v4612_v20 }
 0x2fa   :  { %v4978_v55 = vrot.slane %v4976_v12, 1  ;;  %v4985_v44 = vrot.slane %v4983_v45, 1  ;;  %v4322_v27 = vadd.f32 %v4321_v5, %v4273_v47  ;;  %v4647_v14 = vunpack.c.l.b16 %v4503_v32 }
 0x2fb   :  { %v5466_v48 = vshrl.u32 %v5113_v4, 16  ;;  %v5469_v61 = vshll.u32 %v5113_v4, 16  ;;  %v5475_v57 = vshll.u32 %v5115_v52, 16  ;;  %v5494_v34 = vshrl.u32 %v5117_v24, 16  ;;  %v9347_v52 = vpop.f32.mrf.mxu1 }
 0x2fc   :  { %v5497_v30 = vshll.u32 %v5117_v24, 16  ;;  %v5503_v10 = vshll.u32 %v5119_v19, 16  ;;  %v4979_v36 = vor.u32 %v4978_v55, %v4974_v0  ;;  %v4986_v33 = vor.u32 %v4985_v44, %v4981_v53  ;;  %v4274_v53 = vpop.f32.mrf.mxu2  ;;  %v4372_v24 = vpop.f32.mrf.mxu0 }
 0x2fd   :  { %v5468_v22 = vrot.slane %v5466_v48, 4  ;;  %v5471_v37 = vrot.slane %v5469_v61, 5  ;;  %v5477_v20 = vrot.slane %v5475_v57, 5  ;;  %v5496_v63 = vrot.slane %v5494_v34, 4  ;;  %v9349_v57 = vld [vmem:[#allocation2 + $0x90] sm:$0xf] }
 0x2fe   :  { %v5499_v6 = vrot.slane %v5497_v30, 5  ;;  %v5505_v35 = vrot.slane %v5503_v10, 5  ;;  %v5050_v17 = vunpack.c.l.b16 %v4979_v36  ;;  %v5052_v7 = vunpack.c.h.b16 %v4979_v36 }
 0x2ff   :  { %v5472_v39 = vor.u32 %v5471_v37, %v5468_v22  ;;  %v5054_v21 = vunpack.c.l.b16 %v4986_v33  ;;  %v5056_v49 = vunpack.c.h.b16 %v4986_v33  ;;  %v4371_v43 = vadd.f32 %v4370_v13, %v4322_v27 }
 0x300   :  { %v5500_v59 = vor.u32 %v5499_v6, %v5496_v63  ;;  %v5114_v8 = vpack.c.b16 %v5050_v17, %v4833_v1  ;;  %v5116_v31 = vpack.c.b16 %v5052_v7, %v4834_v51  ;;  %v4663_v37 = vpack.c.b16 %v4614_v38, %v4647_v14 }
 0x301   :  { %v5473_v29 = vrot.slane %v5472_v39, 4  ;;  %v5118_v47 = vpack.c.b16 %v5054_v21, %v4835_v26  ;;  %v5120_v15 = vpack.c.b16 %v5056_v49, %v4836_v18  ;;  %6849 = vst [vmem:[%s9481_s3 + $0x1a0] sm:$0xff] %v4371_v43  ;;  %v9341_v2 = vadd.f32 %v4407_v60, %v4371_v43  ;;  %v4323_v26 = vpop.f32.mrf.mxu3  ;;  %v4504_v60 = vld [vmem:[#allocation2 + $0x90] sm:$0xe] }
 0x302   :  { %v5501_v58 = vrot.slane %v5500_v59, 4  ;;  %v5480_v11 = vshrl.u32 %v5114_v8, 16  ;;  %v5483_v0 = vshll.u32 %v5114_v8, 16  ;;  %v5489_v54 = vshll.u32 %v5116_v31, 16  ;;  %v9360_v49 = vld [vmem:[#allocation2 + $0x90] sm:$0xf] }
 0x303   :  { %v5478_v40 = vsel %vm7806_vm8, %v5473_v29, %v5477_v20  ;;  %v5508_v51 = vshrl.u32 %v5118_v47, 16  ;;  %v5511_v1 = vshll.u32 %v5118_v47, 16  ;;  %v5517_v12 = vshll.u32 %v5120_v15, 16  ;;  %v9366_v31 = vld [vmem:[#allocation2 + $0x9c] sm:$0x1] }
 0x304   :  { %v5506_v41 = vsel %vm7806_vm8, %v5501_v58, %v5505_v35  ;;  %v5690_v18 = vunpack.c.l.b16 %v5478_v40  ;;  %v5482_v45 = vrot.slane %v5480_v11, 4  ;;  %v5485_v4 = vrot.slane %v5483_v0, 5  ;;  %v4551_v58 = vld [vmem:[#allocation2 + $0x90] sm:$0xe] }
 0x305   :  { %v5694_v19 = vunpack.c.l.b16 %v5506_v41  ;;  %v5491_v5 = vrot.slane %v5489_v54, 5  ;;  %v5510_v55 = vrot.slane %v5508_v51, 4  ;;  %v5513_v44 = vrot.slane %v5511_v1, 5  ;;  %v4552_v54 = vld [vmem:[#allocation2 + $0x98] sm:$0xe] }
 0x306   :  { %v5486_v27 = vor.u32 %v5485_v4, %v5482_v45  ;;  %v5519_v13 = vrot.slane %v5517_v12, 5  ;;  %v5691_v48 = vunpack.c.h.b16 %v5478_v40  ;;  %v5695_v61 = vunpack.c.h.b16 %v5506_v41  ;;  %v4277_v12 = vpop.f32.mrf.mxu2  ;;  %v9371_v45 = vpop.f32.mrf.mxu1 }
 0x307   :  { %v5730_v34 = vpack.c.b16 %v5694_v19, %v5690_v18  ;;  %v5514_v30 = vor.u32 %v5513_v44, %v5510_v55  ;;  %v4431_v10 = vmul.f32 %v4371_v43, %v4371_v43  ;;  %v4648_v36 = vunpack.c.l.b16 %v4504_v60  ;;  %v9362_v43 = vld [vmem:[#allocation2 + $0x94] sm:$0x1]  ;;  %v4375_v4 = vpop.f32.mrf.mxu0 }
 0x308   :  { %v5487_v33 = vrot.slane %v5486_v27, 4  ;;  %v5731_v22 = vpack.c.b16 %v5695_v61, %v5691_v48  ;;  %v4275_v20 = vadd.f32 %v4274_v53, %v9296_v9  ;;  %v4615_v6 = vunpack.c.l.b16 %v9349_v57 }
 0x309   :  { %6000 = vmatmul.bf16.gmra.mxu1 %v5730_v34  ;;  %v5515_v63 = vrot.slane %v5514_v30, 4  ;;  %v4446_v32 = vadd.f32 %v9315_v23, %v4431_v10  ;;  %v4664_v35 = vpack.c.b16 %v4616_v25, %v4648_v36  ;;  %v4764_v7 = vshrl.u32 %v4663_v37, 16  ;;  %v4326_v1 = vpop.f32.mrf.mxu3 }
 0x30a   :  { %v5492_v17 = vsel %vm7806_vm8, %v5487_v33, %v5491_v5  ;;  %6049 = vmatmul.bf16.gmra.mxu2 %v5731_v22  ;;  %v4766_v39 = vshll.u32 %v4663_v37, 16  ;;  %v4324_v21 = vadd.f32 %v4323_v26, %v4275_v20  ;;  %v4837_v40 = vunpack.c.l.b16 %v9360_v49  ;;  %v9377_v5 = vld [vmem:[#allocation2 + $0x98] sm:$0xf] }
 0x30b   :  { %v5520_v9 = vsel %vm7806_vm8, %v5515_v63, %v5519_v13  ;;  %v5692_v23 = vunpack.c.l.b16 %v5492_v17  ;;  %v4771_v59 = vshrl.u32 %v4664_v35, 16  ;;  %v4773_v8 = vshll.u32 %v4664_v35, 16 }
 0x30c   :  { %v5696_v14 = vunpack.c.l.b16 %v5520_v9  ;;  %v4768_v29 = vrot.slane %v4766_v39, 1  ;;  %v5693_v47 = vunpack.c.h.b16 %v5492_v17  ;;  %v5697_v15 = vunpack.c.h.b16 %v5520_v9 }
 0x30d   :  { %v4775_v11 = vrot.slane %v4773_v8, 1  ;;  %v4373_v0 = vadd.f32 %v4372_v24, %v4324_v21  ;;  %v4838_v51 = vunpack.c.l.b16 %v9362_v43  ;;  %v4840_v18 = vunpack.c.l.b16 %v9366_v31 }
 0x30e   :  { %v5732_v26 = vpack.c.b16 %v5696_v14, %v5692_v23  ;;  %v4769_v53 = vor.u32 %v4768_v29, %v4764_v7  ;;  %v5733_v41 = vpack.c.b16 %v5697_v15, %v5693_v47  ;;  %v4871_v55 = vunpack.c.l.b16 %v4551_v58  ;;  %v4279_v39 = vpop.f32.mrf.mxu2 }
 0x30f   :  { %v4776_v60 = vor.u32 %v4775_v11, %v4771_v59  ;;  %6850 = vst [vmem:[%s9481_s3 + $0x1a8] sm:$0xff] %v4373_v0  ;;  %v4409_v24 = vadd.f32 %v9341_v2, %v4373_v0  ;;  %v4432_v19 = vmul.f32 %v4373_v0, %v4373_v0  ;;  %v4872_v13 = vunpack.c.l.b16 %v4552_v54  ;;  %v4377_v46 = vpop.f32.mrf.mxu0 }
 0x310   :  { %6098 = vmatmul.bf16.gmra.mxu3 %v5732_v26  ;;  %v5057_v44 = vunpack.c.l.b16 %v4769_v53  ;;  %v5059_v27 = vunpack.c.h.b16 %v4769_v53  ;;  %6147 = vmatmul.bf16.gmra.mxu0 %v5733_v41  ;;  %v4278_v48 = vadd.f32 %v4277_v12, %v9329_v50  ;;  %v4887_v30 = vpack.c.b16 %v4838_v51, %v4871_v55 }
 0x311   :  { %v5061_v61 = vunpack.c.l.b16 %v4776_v60  ;;  %v5063_v57 = vunpack.c.h.b16 %v4776_v60  ;;  %v4447_v34 = vadd.f32 %v4446_v32, %v4432_v19  ;;  %v4839_v36 = vunpack.c.l.b16 %v9377_v5 }
 0x312   :  { %v5121_v2 = vpack.c.b16 %v5057_v44, %v4613_v56  ;;  %v5123_v10 = vpack.c.b16 %v5059_v27, %v4614_v38  ;;  %v4888_v33 = vpack.c.b16 %v4840_v18, %v4872_v13  ;;  %v4988_v37 = vshrl.u32 %v4887_v30, 16  ;;  %v4328_v38 = vpop.f32.mrf.mxu3 }
 0x313   :  { %v5125_v22 = vpack.c.b16 %v5061_v61, %v4615_v6  ;;  %v5127_v50 = vpack.c.b16 %v5063_v57, %v4616_v25  ;;  %v4990_v20 = vshll.u32 %v4887_v30, 16  ;;  %v4327_v17 = vadd.f32 %v4326_v1, %v4278_v48  ;;  %v9391_v6 = vpop.f32.mrf.mxu1 }
 0x314   :  { %v5522_v63 = vshrl.u32 %v5121_v2, 16  ;;  %v5525_v32 = vshll.u32 %v5121_v2, 16  ;;  %v5531_v35 = vshll.u32 %v5123_v10, 16  ;;  %v4995_v23 = vshrl.u32 %v4888_v33, 16 }
 0x315   :  { %v5550_v28 = vshrl.u32 %v5125_v22, 16  ;;  %v5553_v56 = vshll.u32 %v5125_v22, 16  ;;  %v5559_v7 = vshll.u32 %v5127_v50, 16  ;;  %v4992_v16 = vrot.slane %v4990_v20, 1 }
 0x316   :  { %v5524_v21 = vrot.slane %v5522_v63, 4  ;;  %v5527_v9 = vrot.slane %v5525_v32, 5  ;;  %v4997_v59 = vshll.u32 %v4888_v33, 16  ;;  %v5533_v25 = vrot.slane %v5531_v35, 5  ;;  %v6020_v2 = vpop.f32.mrf.mxu2 }
 0x317   :  { %v5552_v8 = vrot.slane %v5550_v28, 4  ;;  %v5555_v14 = vrot.slane %v5553_v56, 5  ;;  %v4993_v29 = vor.u32 %v4992_v16, %v4988_v37  ;;  %v4376_v58 = vadd.f32 %v4375_v4, %v4327_v17  ;;  %v6118_v33 = vpop.f32.mrf.mxu0 }
 0x318   :  { %v5528_v47 = vor.u32 %v5527_v9, %v5524_v21  ;;  %v4999_v15 = vrot.slane %v4997_v59, 1  ;;  %v4280_v11 = vadd.f32 %v4279_v39, %v9347_v52  ;;  %v5561_v54 = vrot.slane %v5559_v7, 5 }
 0x319   :  { %v5556_v0 = vor.u32 %v5555_v14, %v5552_v8  ;;  %v5058_v1 = vunpack.c.l.b16 %v4993_v29  ;;  %v5060_v12 = vunpack.c.h.b16 %v4993_v29  ;;  %6851 = vst [vmem:[%s9481_s3 + $0x1b0] sm:$0xff] %v4376_v58  ;;  %v4410_v41 = vadd.f32 %v4409_v24, %v4376_v58 }
 0x31a   :  { %v5529_v26 = vrot.slane %v5528_v47, 4  ;;  %v5000_v53 = vor.u32 %v4999_v15, %v4995_v23  ;;  %v4433_v60 = vmul.f32 %v4376_v58, %v4376_v58  ;;  %v4329_v52 = vadd.f32 %v4328_v38, %v4280_v11  ;;  %v6069_v30 = vpop.f32.mrf.mxu3 }
 0x31b   :  { %v5557_v19 = vrot.slane %v5556_v0, 4  ;;  %v5122_v5 = vpack.c.b16 %v5058_v1, %v4837_v40  ;;  %v5124_v4 = vpack.c.b16 %v5060_v12, %v4838_v51  ;;  %v5976_v10 = vpop.f32.mrf.mxu1  ;;  %v6021_v31 = vadd.f32 %v6020_v2, %v9371_v45 }
 0x31c   :  { %v5534_v55 = vsel %vm7806_vm8, %v5529_v26, %v5533_v25  ;;  %v5062_v44 = vunpack.c.l.b16 %v5000_v53  ;;  %v5064_v27 = vunpack.c.h.b16 %v5000_v53  ;;  %v4448_v13 = vadd.f32 %v4447_v34, %v4433_v60 }
 0x31d   :  { %v5562_v48 = vsel %vm7806_vm8, %v5557_v19, %v5561_v54  ;;  %v5698_v61 = vunpack.c.l.b16 %v5534_v55  ;;  %v5536_v24 = vshrl.u32 %v5122_v5, 16  ;;  %v5539_v57 = vshll.u32 %v5122_v5, 16 }
 0x31e   :  { %v5702_v49 = vunpack.c.l.b16 %v5562_v48  ;;  %v5126_v40 = vpack.c.b16 %v5062_v44, %v4839_v36  ;;  %v5128_v43 = vpack.c.b16 %v5064_v27, %v4840_v18  ;;  %v5545_v51 = vshll.u32 %v5124_v4, 16  ;;  %v6022_v14 = vpop.f32.mrf.mxu2 }
 0x31f   :  { %v5538_v22 = vrot.slane %v5536_v24, 4  ;;  %v5541_v50 = vrot.slane %v5539_v57, 5  ;;  %v5699_v37 = vunpack.c.h.b16 %v5534_v55  ;;  %v5703_v34 = vunpack.c.h.b16 %v5562_v48  ;;  %v6120_v15 = vpop.f32.mrf.mxu0 }
 0x320   :  { %v5734_v20 = vpack.c.b16 %v5702_v49, %v5698_v61  ;;  %v5547_v63 = vrot.slane %v5545_v51, 5  ;;  %v5564_v32 = vshrl.u32 %v5126_v40, 16  ;;  %v5567_v35 = vshll.u32 %v5126_v40, 16 }
 0x321   :  { %v5542_v17 = vor.u32 %v5541_v50, %v5538_v22  ;;  %v5573_v28 = vshll.u32 %v5128_v43, 16  ;;  %v5735_v56 = vpack.c.b16 %v5703_v34, %v5699_v37  ;;  %v4378_v7 = vadd.f32 %v4377_v46, %v4329_v52 }
 0x322   :  { %6005 = vmatmul.bf16.gmra.mxu1 %v5734_v20  ;;  %v5566_v36 = vrot.slane %v5564_v32, 4  ;;  %v5569_v16 = vrot.slane %v5567_v35, 5  ;;  %v6070_v23 = vadd.f32 %v6069_v30, %v6021_v31  ;;  %v6071_v8 = vpop.f32.mrf.mxu3  ;;  %v6023_v54 = vadd.f32 %v6022_v14, %v9391_v6 }
 0x323   :  { %v5543_v18 = vrot.slane %v5542_v17, 4  ;;  %6054 = vmatmul.bf16.gmra.mxu2 %v5735_v56  ;;  %6852 = vst [vmem:[%s9481_s3 + $0x1b8] sm:$0xff] %v4378_v7  ;;  %v4411_v38 = vadd.f32 %v4410_v41, %v4378_v7  ;;  %v4434_v39 = vmul.f32 %v4378_v7, %v4378_v7  ;;  %v5575_v9 = vrot.slane %v5573_v28, 5  ;;  %v5978_v12 = vpop.f32.mrf.mxu1 }
 0x324   :  { %v5570_v21 = vor.u32 %v5569_v16, %v5566_v36  ;;  %v6119_v47 = vadd.f32 %v6118_v33, %v6070_v23  ;;  %v6072_v19 = vadd.f32 %v6071_v8, %v6023_v54 }
 0x325   :  { %v5548_v59 = vsel %vm7806_vm8, %v5543_v18, %v5547_v63  ;;  %v4412_v46 = vrot.slane %v4411_v38, 4  ;;  %v4449_v25 = vadd.f32 %v4448_v13, %v4434_v39 }
 0x326   :  { %v5571_v29 = vrot.slane %v5570_v21, 4  ;;  %v5700_v45 = vunpack.c.l.b16 %v5548_v59  ;;  %v5701_v58 = vunpack.c.h.b16 %v5548_v59  ;;  %7045 = vst [vmem:[%s9481_s3 + $0xc0] sm:$0xff] %v6119_v47  ;;  %v6121_v44 = vadd.f32 %v6120_v15, %v6072_v19  ;;  %v6025_v13 = vpop.f32.mrf.mxu2 }
 0x327   :  { %v4413_v11 = vadd.f32 %v4412_v46, %v4411_v38  ;;  %v4450_v0 = vrot.slane %v4449_v25, 4  ;;  %v6197_v48 = vmul.f32 %v6119_v47, %v6119_v47  ;;  %v6026_v57 = vadd.f32 %v6025_v13, %v5976_v10  ;;  %v6123_v30 = vpop.f32.mrf.mxu0 }
 0x328   :  { %v5576_v1 = vsel %vm7806_vm8, %v5571_v29, %v5575_v9  ;;  %7046 = vst [vmem:[%s9481_s3 + $0xc8] sm:$0xff] %v6121_v44  ;;  %v6175_v61 = vadd.f32 %v6121_v44, %v6119_v47  ;;  %v6198_v24 = vmul.f32 %v6121_v44, %v6121_v44 }
 0x329   :  { %v5704_v26 = vunpack.c.l.b16 %v5576_v1  ;;  %v5705_v53 = vunpack.c.h.b16 %v5576_v1  ;;  %v4414_v41 = vrot.slane %v4413_v11, 2  ;;  %v4451_v60 = vadd.f32 %v4450_v0, %v4449_v25 }
 0x32a   :  { %v6074_v27 = vpop.f32.mrf.mxu3  ;;  %v6213_v40 = vadd.f32 %v6198_v24, %v6197_v48 }
 0x32b   :  { %v5736_v5 = vpack.c.b16 %v5704_v26, %v5700_v45  ;;  %v5737_v4 = vpack.c.b16 %v5705_v53, %v5701_v58  ;;  %v4415_v52 = vadd.f32 %v4414_v41, %v4413_v11  ;;  %v4452_v55 = vrot.slane %v4451_v60, 2  ;;  %v5981_v22 = vpop.f32.mrf.mxu1 }
 0x32c   :  { %v6075_v43 = vadd.f32 %v6074_v27, %v6026_v57 }
 0x32d   :  { %6103 = vmatmul.bf16.gmra.mxu3 %v5736_v5  ;;  %6152 = vmatmul.bf16.gmra.mxu0 %v5737_v4  ;;  %v4416_v6 = vrot.slane %v4415_v52, 1  ;;  %v4453_v62 = vadd.f32 %v4452_v55, %v4451_v60 }
 0x32e   :  { %v6124_v50 = vadd.f32 %v6123_v30, %v6075_v43  ;;  %v6027_v63 = vpop.f32.mrf.mxu2 }
 0x32f   :  { %v4417_v2 = vadd.f32 %v4416_v6, %v4415_v52  ;;  %v4454_v49 = vrot.slane %v4453_v62, 1  ;;  %v6028_v35 = vadd.f32 %v6027_v63, %v5978_v12  ;;  %v6125_v17 = vpop.f32.mrf.mxu0 }
 0x330   :  { %7047 = vst [vmem:[%s9481_s3 + $0xd0] sm:$0xff] %v6124_v50  ;;  %v6176_v34 = vadd.f32 %v6175_v61, %v6124_v50  ;;  %v6199_v10 = vmul.f32 %v6124_v50, %v6124_v50 }
 0x331   :  { %v9423_v51 = vadd.f32 %v4417_v2, %v9060_v42  ;;  %v4455_v33 = vadd.f32 %v4454_v49, %v4453_v62 }
 0x332   :  { %v6076_v20 = vpop.f32.mrf.mxu3  ;;  %v6214_v32 = vadd.f32 %v6213_v40, %v6199_v10 }
 0x333   :  { %v9426_v37 = vadd.f32 %v4455_v33, %v9066_v3  ;;  %v6077_v28 = vadd.f32 %v6076_v20, %v6028_v35  ;;  %v5983_v56 = vpop.f32.mrf.mxu1 }
 0x335   :  { %v6126_v42 = vadd.f32 %v6125_v17, %v6077_v28 }
 0x336   :  { %v6030_v16 = vpop.f32.mrf.mxu2 }
 0x337   :  { %7048 = vst [vmem:[%s9481_s3 + $0xd8] sm:$0xff] %v6126_v42  ;;  %v6177_v3 = vadd.f32 %v6176_v34, %v6126_v42  ;;  %v6200_v7 = vmul.f32 %v6126_v42, %v6126_v42  ;;  %v6031_v18 = vadd.f32 %v6030_v16, %v5981_v22  ;;  %v6128_v38 = vpop.f32.mrf.mxu0 }
 0x339   :  { %v6215_v31 = vadd.f32 %v6214_v32, %v6200_v7 }
 0x33a   :  { %v6079_v36 = vpop.f32.mrf.mxu3 }
 0x33b   :  { %v6080_v39 = vadd.f32 %v6079_v36, %v6031_v18  ;;  %v5986_v29 = vpop.f32.mrf.mxu1 }
 0x33d   :  { %v6129_v21 = vadd.f32 %v6128_v38, %v6080_v39 }
 0x33e   :  { %v6032_v46 = vpop.f32.mrf.mxu2 }
 0x33f   :  { %7049 = vst [vmem:[%s9481_s3 + $0xe0] sm:$0xff] %v6129_v21  ;;  %v6178_v9 = vadd.f32 %v6177_v3, %v6129_v21  ;;  %v6201_v23 = vmul.f32 %v6129_v21, %v6129_v21  ;;  %v6033_v8 = vadd.f32 %v6032_v46, %v5983_v56  ;;  %v6130_v14 = vpop.f32.mrf.mxu0 }
 0x341   :  { %v6216_v25 = vadd.f32 %v6215_v31, %v6201_v23 }
 0x342   :  { %v6081_v59 = vpop.f32.mrf.mxu3 }
 0x343   :  { %v6082_v45 = vadd.f32 %v6081_v59, %v6033_v8  ;;  %v5988_v53 = vpop.f32.mrf.mxu1 }
 0x345   :  { %v6131_v47 = vadd.f32 %v6130_v14, %v6082_v45 }
 0x346   :  { %v6035_v0 = vpop.f32.mrf.mxu2 }
 0x347   :  { %7050 = vst [vmem:[%s9481_s3 + $0xe8] sm:$0xff] %v6131_v47  ;;  %v6179_v15 = vadd.f32 %v6178_v9, %v6131_v47  ;;  %v6202_v58 = vmul.f32 %v6131_v47, %v6131_v47  ;;  %v6036_v1 = vadd.f32 %v6035_v0, %v5986_v29  ;;  %v6133_v12 = vpop.f32.mrf.mxu0 }
 0x349   :  { %v6217_v54 = vadd.f32 %v6216_v25, %v6202_v58 }
 0x34a   :  { %v6084_v11 = vpop.f32.mrf.mxu3 }
 0x34b   :  { %v6085_v26 = vadd.f32 %v6084_v11, %v6036_v1 }
 0x34d   :  { %v6134_v41 = vadd.f32 %v6133_v12, %v6085_v26  ;;  %v5991_v27 = vpop.f32.mrf.mxu1 }
 0x34e   :  { %v6037_v4 = vpop.f32.mrf.mxu2 }
 0x34f   :  { %7051 = vst [vmem:[%s9481_s3 + $0xf0] sm:$0xff] %v6134_v41  ;;  %v6180_v60 = vadd.f32 %v6179_v15, %v6134_v41  ;;  %v6203_v19 = vmul.f32 %v6134_v41, %v6134_v41  ;;  %v6038_v55 = vadd.f32 %v6037_v4, %v5988_v53  ;;  %v6135_v44 = vpop.f32.mrf.mxu0 }
 0x351   :  { %v6218_v52 = vadd.f32 %v6217_v54, %v6203_v19 }
 0x352   :  { %v6086_v5 = vpop.f32.mrf.mxu3 }
 0x353   :  { %v6087_v6 = vadd.f32 %v6086_v5, %v6038_v55 }
 0x355   :  { %v6136_v62 = vadd.f32 %v6135_v44, %v6087_v6  ;;  %v5993_v22 = vpop.f32.mrf.mxu1 }
 0x356   :  { %v6040_v61 = vpop.f32.mrf.mxu2 }
 0x357   :  { %7052 = vst [vmem:[%s9481_s3 + $0xf8] sm:$0xff] %v6136_v62  ;;  %v6181_v13 = vadd.f32 %v6180_v60, %v6136_v62  ;;  %v6204_v48 = vmul.f32 %v6136_v62, %v6136_v62  ;;  %v6041_v57 = vadd.f32 %v6040_v61, %v5991_v27 }
 0x359   :  { %v6219_v24 = vadd.f32 %v6218_v52, %v6204_v48  ;;  %v6138_v2 = vpop.f32.mrf.mxu0 }
 0x35e   :  { %v6042_v50 = vpop.f32.mrf.mxu2 }
 0x35f   :  { %v6089_v30 = vpop.f32.mrf.mxu3  ;;  %v6043_v10 = vadd.f32 %v6042_v50, %v5993_v22 }
 0x360   :  { %v6090_v49 = vadd.f32 %v6089_v30, %v6041_v57 }
 0x361   :  { %v6140_v32 = vpop.f32.mrf.mxu0 }
 0x362   :  { %v6139_v40 = vadd.f32 %v6138_v2, %v6090_v49 }
 0x364   :  { %7053 = vst [vmem:[%s9481_s3 + $0x1c0] sm:$0xff] %v6139_v40  ;;  %v6182_v43 = vadd.f32 %v6181_v13, %v6139_v40  ;;  %v6205_v33 = vmul.f32 %v6139_v40, %v6139_v40 }
 0x366   :  { %v6220_v34 = vadd.f32 %v6219_v24, %v6205_v33 }
 0x367   :  { %v6091_v20 = vpop.f32.mrf.mxu3 }
 0x368   :  { %v6092_v63 = vadd.f32 %v6091_v20, %v6043_v10 }
 0x369   :  { %v5996_v56 = vpop.f32.mrf.mxu1 }
 0x36a   :  { %v6141_v35 = vadd.f32 %v6140_v32, %v6092_v63 }
 0x36c   :  { %7054 = vst [vmem:[%s9481_s3 + $0x1c8] sm:$0xff] %v6141_v35  ;;  %v6183_v17 = vadd.f32 %v6182_v43, %v6141_v35  ;;  %v6206_v28 = vmul.f32 %v6141_v35, %v6141_v35 }
 0x36e   :  { %v6221_v42 = vadd.f32 %v6220_v34, %v6206_v28 }
 0x371   :  { %v6045_v3 = vpop.f32.mrf.mxu2  ;;  %v6143_v16 = vpop.f32.mrf.mxu0 }
 0x372   :  { %v6046_v7 = vadd.f32 %v6045_v3, %v5996_v56  ;;  %v5998_v39 = vpop.f32.mrf.mxu1 }
 0x377   :  { %v6094_v36 = vpop.f32.mrf.mxu3 }
 0x378   :  { %v6095_v31 = vadd.f32 %v6094_v36, %v6046_v7 }
 0x379   :  { %v6047_v18 = vpop.f32.mrf.mxu2  ;;  %v6145_v59 = vpop.f32.mrf.mxu0 }
 0x37a   :  { %v6144_v38 = vadd.f32 %v6143_v16, %v6095_v31  ;;  %v6048_v21 = vadd.f32 %v6047_v18, %v5998_v39 }
 0x37c   :  { %7055 = vst [vmem:[%s9481_s3 + $0x1d0] sm:$0xff] %v6144_v38  ;;  %v6207_v4 = vmul.f32 %v6144_v38, %v6144_v38  ;;  %v6184_v44 = vadd.f32 %v6183_v17, %v6144_v38 }
 0x37e   :  { %v6222_v13 = vadd.f32 %v6221_v42, %v6207_v4 }
 0x37f   :  { %v6096_v9 = vpop.f32.mrf.mxu3 }
 0x380   :  { %v6097_v23 = vadd.f32 %v6096_v9, %v6048_v21 }
 0x382   :  { %v6146_v46 = vadd.f32 %v6145_v59, %v6097_v23 }
 0x384   :  { %7056 = vst [vmem:[%s9481_s3 + $0x1d8] sm:$0xff] %v6146_v46  ;;  %v6208_v6 = vmul.f32 %v6146_v46, %v6146_v46  ;;  %v6185_v48 = vadd.f32 %v6184_v44, %v6146_v46 }
 0x386   :  { %v6001_v25 = vpop.f32.mrf.mxu1  ;;  %v6223_v57 = vadd.f32 %v6222_v13, %v6208_v6 }
 0x38d   :  { %v6050_v8 = vpop.f32.mrf.mxu2  ;;  %v6148_v45 = vpop.f32.mrf.mxu0 }
 0x38e   :  { %v6051_v14 = vadd.f32 %v6050_v8, %v6001_v25  ;;  %v6003_v11 = vpop.f32.mrf.mxu1 }
 0x393   :  { %v6099_v29 = vpop.f32.mrf.mxu3 }
 0x394   :  { %v6100_v47 = vadd.f32 %v6099_v29, %v6051_v14 }
 0x395   :  { %v6052_v15 = vpop.f32.mrf.mxu2  ;;  %v6150_v12 = vpop.f32.mrf.mxu0 }
 0x396   :  { %v6149_v58 = vadd.f32 %v6148_v45, %v6100_v47  ;;  %v6053_v0 = vadd.f32 %v6052_v15, %v6003_v11 }
 0x398   :  { %7057 = vst [vmem:[%s9481_s3 + $0x1e0] sm:$0xff] %v6149_v58  ;;  %v6209_v61 = vmul.f32 %v6149_v58, %v6149_v58  ;;  %v6186_v30 = vadd.f32 %v6185_v48, %v6149_v58 }
 0x39a   :  { %v6224_v40 = vadd.f32 %v6223_v57, %v6209_v61 }
 0x39b   :  { %v6101_v54 = vpop.f32.mrf.mxu3 }
 0x39c   :  { %v6102_v1 = vadd.f32 %v6101_v54, %v6053_v0 }
 0x39e   :  { %v6151_v26 = vadd.f32 %v6150_v12, %v6102_v1 }
 0x39f   :  { %v6006_v41 = vpop.f32.mrf.mxu1 }
 0x3a0   :  { %7058 = vst [vmem:[%s9481_s3 + $0x1e8] sm:$0xff] %v6151_v26  ;;  %v6210_v2 = vmul.f32 %v6151_v26, %v6151_v26  ;;  %v6187_v43 = vadd.f32 %v6186_v30, %v6151_v26 }
 0x3a2   :  { %v6225_v34 = vadd.f32 %v6224_v40, %v6210_v2 }
 0x3a6   :  { %v6055_v53 = vpop.f32.mrf.mxu2 }
 0x3a7   :  { %v6056_v60 = vadd.f32 %v6055_v53, %v6006_v41  ;;  %v6008_v27 = vpop.f32.mrf.mxu1 }
 0x3aa   :  { %v6153_v5 = vpop.f32.mrf.mxu0 }
 0x3ae   :  { %v6057_v55 = vpop.f32.mrf.mxu2 }
 0x3af   :  { %v6058_v24 = vadd.f32 %v6057_v55, %v6008_v27 }
 0x3b0   :  { %v6104_v19 = vpop.f32.mrf.mxu3 }
 0x3b1   :  { %v6105_v52 = vadd.f32 %v6104_v19, %v6056_v60 }
 0x3b2   :  { %v6155_v50 = vpop.f32.mrf.mxu0 }
 0x3b3   :  { %v6154_v62 = vadd.f32 %v6153_v5, %v6105_v52 }
 0x3b5   :  { %7059 = vst [vmem:[%s9481_s3 + $0x1f0] sm:$0xff] %v6154_v62  ;;  %v6211_v33 = vmul.f32 %v6154_v62, %v6154_v62  ;;  %v6188_v10 = vadd.f32 %v6187_v43, %v6154_v62 }
 0x3b7   :  { %v6226_v63 = vadd.f32 %v6225_v34, %v6211_v33 }
 0x3b8   :  { %v6106_v49 = vpop.f32.mrf.mxu3 }
 0x3b9   :  { %v6107_v22 = vadd.f32 %v6106_v49, %v6058_v24 }
 0x3bb   :  { %v6156_v20 = vadd.f32 %v6155_v50, %v6107_v22 }
 0x3bd   :  { %7060 = vst [vmem:[%s9481_s3 + $0x1f8] sm:$0xff] %v6156_v20  ;;  %v6189_v32 = vadd.f32 %v6188_v10, %v6156_v20  ;;  %v6212_v35 = vmul.f32 %v6156_v20, %v6156_v20 }
 0x3bf   :  { %v6190_v17 = vrot.slane %v6189_v32, 4  ;;  %v6227_v28 = vadd.f32 %v6226_v63, %v6212_v35 }
 0x3c1   :  { %v6191_v42 = vadd.f32 %v6190_v17, %v6189_v32  ;;  %v6228_v56 = vrot.slane %v6227_v28, 4 }
 0x3c3   :  { %v6192_v3 = vrot.slane %v6191_v42, 2  ;;  %v6229_v7 = vadd.f32 %v6228_v56, %v6227_v28 }
 0x3c5   :  { %v6193_v36 = vadd.f32 %v6192_v3, %v6191_v42  ;;  %v6230_v16 = vrot.slane %v6229_v7, 2 }
 0x3c7   :  { %v6194_v31 = vrot.slane %v6193_v36, 1  ;;  %v6231_v18 = vadd.f32 %v6230_v16, %v6229_v7 }
 0x3c9   :  { %v6195_v38 = vadd.f32 %v6194_v31, %v6193_v36  ;;  %v6232_v39 = vrot.slane %v6231_v18, 1 }
 0x3cb   :  { %v6196_v21 = vadd.f32 %v6195_v38, %v9423_v51  ;;  %v6233_v9 = vadd.f32 %v6232_v39, %v6231_v18 }
 0x3cd   :  { %v6234_v23 = vadd.f32 %v6233_v9, %v9426_v37  ;;  %6235 = vst [vmem:[%s9482_s4] sm:$0x1] %v6196_v21 }
 0x3cf   :  { %6236 = vst [vmem:[%s9482_s4 + $0x1] sm:$0x1] %v6234_v23 }

</bundles_post_ra>
